<compile_context>
chip_gen: v6e
topology: v6e:2x2x1
jax: 0.10.0
libtpu: 0.0.40
codegen_flags: <defaults>
</compile_context>

<pallas_src>
import math
from functools import partial

import jax
import jax.numpy as jnp
from jax.experimental import pallas as pl
from jax.experimental.pallas import tpu as pltpu
import numpy as np


def basic_block_kernel(p1_ref, r_ref, w1_ref, s1_ref, b1_ref,
                       w2_ref, s2_ref, b2_ref, o_ref, p2_ref,
                       *, NB, H, W, Cp):
    """One grid step processes NB batch elements (M = NB*H*W rows).

    p1_ref : (NB*H*W, 9*Cin) bf16   pre-im2col'd conv1 patches (wrapper-built)
    r_ref  : (NB*H*W, Cp)    f32    residual (channels zero-padded to Cp)
    w1_ref : (9*Cin, Cp)     bf16   conv1 weights, tap-major along K
    w2_ref : (9*Cp, Cp)      bf16   grouped conv2 weights as dense block-diag
    s*_ref, b*_ref : (1, Cp) f32    folded BatchNorm scale / bias
    o_ref  : (NB*H*W, Cp)    f32    output (lane-dense, Cp % 128 == 0)
    p2_ref : (NB*H, W, 9*Cp) bf16   VMEM scratch: conv2 im2col patches
    """
    HW = H * W

    # ---- conv1: one fused im2col matmul (bf16 operands, f32 accumulate)
    acc1 = jnp.dot(p1_ref[...], w1_ref[...],
                   preferred_element_type=jnp.float32)        # (M, Cp)

    # ---- bn1 (folded affine) + relu, f32 elementwise, lane-dense
    h1 = jnp.maximum(acc1 * s1_ref[...] + b1_ref[...], 0.0)
    h1b = h1.astype(jnp.bfloat16)

    # ---- build conv2 im2col patches in the lane-aligned scratch.
    # Interior of each tap = shifted slice of h1 (kept in registers); only the
    # 1-pixel border strips are written as zeros (cheap, and done every step so
    # it stays correct when the "parallel" grid axis is split across cores).
    zrow = jnp.zeros((1, W, Cp), jnp.bfloat16)
    zcol = jnp.zeros((H, 1, Cp), jnp.bfloat16)
    for nb in range(NB):
        base = nb * H
        img = h1b[nb * HW:(nb + 1) * HW, :].reshape(H, W, Cp)
        for dy in range(3):
            iy0, iy1 = max(0, 1 - dy), H - max(0, dy - 1)
            for dx in range(3):
                jx0, jx1 = max(0, 1 - dx), W - max(0, dx - 1)
                t = dy * 3 + dx
                lane = slice(t * Cp, (t + 1) * Cp)            # 128-aligned
                if dy == 0:
                    p2_ref[base:base + 1, :, lane] = zrow
                elif dy == 2:
                    p2_ref[base + H - 1:base + H, :, lane] = zrow
                if dx == 0:
                    p2_ref[base:base + H, 0:1, lane] = zcol
                elif dx == 2:
                    p2_ref[base:base + H, W - 1:W, lane] = zcol
                p2_ref[base + iy0:base + iy1, jx0:jx1, lane] = \
                    img[iy0 + dy - 1:iy1 + dy - 1,
                        jx0 + dx - 1:jx1 + dx - 1, :]

    # ---- conv2 (grouped 3x3 as dense block-diagonal): one fused matmul
    p2 = p2_ref[...].reshape(NB * HW, 9 * Cp)                 # contiguous merge
    acc2 = jnp.dot(p2, w2_ref[...],
                   preferred_element_type=jnp.float32)        # (M, Cp)

    # ---- bn2 + residual + relu; lane-dense store (last dim = Cp, mult of 128)
    out2 = acc2 * s2_ref[...] + b2_ref[...] + r_ref[...]
    o_ref[...] = jnp.maximum(out2, 0.0)


def _pick_batch_block(B, HW, target_m=512):
    """Largest divisor of B with NB*HW <= target_m, preferring >=2 grid steps."""
    divs = [d for d in range(1, B + 1) if B % d == 0]
    fit = [d for d in divs if d * HW <= target_m] or [1]
    nb = max(fit)
    two_step = [d for d in fit if B // d >= 2]
    if B > 1 and B // nb < 2 and two_step:
        nb = max(two_step)
    return nb


def basic_block_pallas(x_nchw, params, num_group):
    """x_nchw: (B, Cin, H, W). Requires Cin == planes*2 and stride == 1
    (downsample=None in the reference module)."""
    B, Cin, H, W = x_nchw.shape
    w1, w2 = params["w1"], params["w2"]          # (C, Cin, 3, 3), (C, C//G, 3, 3)
    C = w1.shape[0]
    G = num_group
    assert Cin == C, "residual add requires inplanes == planes*2 (downsample=None)"
    assert C % G == 0

    HW = H * W
    Cp = ((C + 127) // 128) * 128                # lane-dense channel padding
    NB = _pick_batch_block(B, HW)

    # NCHW -> NHWC (f32)
    x = jnp.transpose(x_nchw, (0, 2, 3, 1)).astype(jnp.float32)   # (B,H,W,Cin)

    # Wrapper-side im2col for conv1 (tap-major along K); bf16 for the MXU.
    xp = jnp.pad(x, ((0, 0), (1, 1), (1, 1), (0, 0)))
    p1 = jnp.concatenate(
        [xp[:, dy:dy + H, dx:dx + W, :] for dy in range(3) for dx in range(3)],
        axis=-1).reshape(B * HW, 9 * Cin).astype(jnp.bfloat16)

    # Residual, channel-padded to Cp so the in-kernel read/add is lane-dense.
    resid = jnp.pad(x, ((0, 0), (0, 0), (0, 0), (0, Cp - C))).reshape(B * HW, Cp)

    # conv1 weights -> (9*Cin, Cp), tap-major, bf16.
    w1k = jnp.transpose(w1, (2, 3, 1, 0)).reshape(9 * Cin, C)
    w1k = jnp.pad(w1k, ((0, 0), (0, Cp - C))).astype(jnp.bfloat16)

    # grouped conv2 weights -> dense block-diagonal (9*Cp, Cp), bf16.
    cg = C // G
    w2bd = jnp.zeros((9, C, C), jnp.float32)
    for g in range(G):
        blk = w2[g * cg:(g + 1) * cg]                           # (cg, cg, 3, 3)
        blk_k = jnp.transpose(blk, (2, 3, 1, 0)).reshape(9, cg, cg)
        w2bd = w2bd.at[:, g * cg:(g + 1) * cg, g * cg:(g + 1) * cg].set(blk_k)
    w2k = jnp.pad(w2bd, ((0, 0), (0, Cp - C), (0, Cp - C)))
    w2k = w2k.reshape(9 * Cp, Cp).astype(jnp.bfloat16)

    # Fold BatchNorm (inference mode) into scale / bias; pad to Cp with zeros.
    eps = 1e-5
    s1 = params["g1"] / jnp.sqrt(params["v1"] + eps)
    b1 = params["be1"] - params["m1"] * s1
    s2 = params["g2"] / jnp.sqrt(params["v2"] + eps)
    b2 = params["be2"] - params["m2"] * s2
    s1p = jnp.pad(s1, (0, Cp - C)).reshape(1, Cp)
    b1p = jnp.pad(b1, (0, Cp - C)).reshape(1, Cp)
    s2p = jnp.pad(s2, (0, Cp - C)).reshape(1, Cp)
    b2p = jnp.pad(b2, (0, Cp - C)).reshape(1, Cp)

    out = pl.pallas_call(
        partial(basic_block_kernel, NB=NB, H=H, W=W, Cp=Cp),
        out_shape=jax.ShapeDtypeStruct((B * HW, Cp), jnp.float32),
        grid=(B // NB,),
        in_specs=[
            pl.BlockSpec((NB * HW, 9 * Cin), lambda b: (b, 0)),   # conv1 patches
            pl.BlockSpec((NB * HW, Cp), lambda b: (b, 0)),        # residual
            pl.BlockSpec((9 * Cin, Cp), lambda b: (0, 0)),        # w1
            pl.BlockSpec((1, Cp), lambda b: (0, 0)),              # s1
            pl.BlockSpec((1, Cp), lambda b: (0, 0)),              # b1
            pl.BlockSpec((9 * Cp, Cp), lambda b: (0, 0)),         # w2
            pl.BlockSpec((1, Cp), lambda b: (0, 0)),              # s2
            pl.BlockSpec((1, Cp), lambda b: (0, 0)),              # b2
        ],
        out_specs=pl.BlockSpec((NB * HW, Cp), lambda b: (b, 0)),
        scratch_shapes=[pltpu.VMEM((NB * H, W, 9 * Cp), jnp.bfloat16)],
        compiler_params=pltpu.CompilerParams(
            dimension_semantics=("parallel",),
            vmem_limit_bytes=32 * 1024 * 1024),
    )(p1, resid, w1k, s1p, b1p, w2k, s2p, b2p)

    out = out[:, :C].reshape(B, H, W, C)
    return jnp.transpose(out, (0, 3, 1, 2))      # back to NCHW


def basic_block_reference(x_nchw, params, num_group):
    """Pure-JAX reference (lax conv, f32) for correctness checking."""
    eps = 1e-5

    def bn(y, g, be, m, v):
        s = g / jnp.sqrt(v + eps)
        return y * s[None, :, None, None] + (be - m * s)[None, :, None, None]

    y = jax.lax.conv_general_dilated(
        x_nchw, params["w1"], (1, 1), "SAME",
        dimension_numbers=("NCHW", "OIHW", "NCHW"))
    y = jnp.maximum(bn(y, params["g1"], params["be1"], params["m1"], params["v1"]), 0.0)
    y = jax.lax.conv_general_dilated(
        y, params["w2"], (1, 1), "SAME",
        dimension_numbers=("NCHW", "OIHW", "NCHW"),
        feature_group_count=num_group)
    y = bn(y, params["g2"], params["be2"], params["m2"], params["v2"])
    return jnp.maximum(y + x_nchw, 0.0)


if __name__ == "__main__":
    # Shapes consistent with BasicBlock(inplanes=16, planes=8, num_group=4):
    # conv1: 16 -> 16 (planes*2), conv2: grouped 16 -> 16, stride=1,
    # residual add requires inplanes == planes*2.
    B, Cin, H, W = 2, 16, 16, 16
    planes, num_group = 8, 4
    C = planes * 2

    key = jax.random.PRNGKey(0)
    ks = jax.random.split(key, 11)
    params = {
        "w1": jax.random.normal(ks[0], (C, Cin, 3, 3), jnp.float32)
              * (1.0 / math.sqrt(Cin * 9)),
        "w2": jax.random.normal(ks[1], (C, C // num_group, 3, 3), jnp.float32)
              * (1.0 / math.sqrt((C // num_group) * 9)),
        "g1": 0.5 + jax.random.uniform(ks[2], (C,), jnp.float32),
        "be1": 0.1 * jax.random.normal(ks[3], (C,), jnp.float32),
        "m1": 0.1 * jax.random.normal(ks[4], (C,), jnp.float32),
        "v1": 0.5 + jax.random.uniform(ks[5], (C,), jnp.float32),
        "g2": 0.5 + jax.random.uniform(ks[6], (C,), jnp.float32),
        "be2": 0.1 * jax.random.normal(ks[7], (C,), jnp.float32),
        "m2": 0.1 * jax.random.normal(ks[8], (C,), jnp.float32),
        "v2": 0.5 + jax.random.uniform(ks[9], (C,), jnp.float32),
    }
    x = jax.random.normal(ks[10], (B, Cin, H, W), jnp.float32)

    out = basic_block_pallas(x, params, num_group)
    out = jax.block_until_ready(out)

    ref = jax.block_until_ready(basic_block_reference(x, params, num_group))
    # bf16 MXU operands (f32 accumulation) -> loosened tolerance.
    np.testing.assert_allclose(np.asarray(out), np.asarray(ref),
                               rtol=5e-2, atol=5e-2)
    print("KERNEL_OK")
</pallas_src>

<mosaic_0001>
module attributes {stable_mosaic.version = 11 : i64} {
  func.func @basic_block_kernel(%arg0: i32, %arg1: memref<256x144xbf16, #tpu.memory_space<vmem>>, %arg2: memref<256x128xf32, #tpu.memory_space<vmem>>, %arg3: memref<144x128xbf16, #tpu.memory_space<vmem>>, %arg4: memref<1x128xf32, #tpu.memory_space<vmem>>, %arg5: memref<1x128xf32, #tpu.memory_space<vmem>>, %arg6: memref<1152x128xbf16, #tpu.memory_space<vmem>>, %arg7: memref<1x128xf32, #tpu.memory_space<vmem>>, %arg8: memref<1x128xf32, #tpu.memory_space<vmem>>, %arg9: memref<256x128xf32, #tpu.memory_space<vmem>>, %arg10: memref<16x16x1152xbf16, #tpu.memory_space<vmem>>) attributes {dimension_semantics = [#tpu.dimension_semantics<parallel>], iteration_bounds = array<i64: 2>, scalar_prefetch = 0 : i64, scratch_operands = 1 : i64, tpu.core_type = #tpu.core_type<tc>, window_params = [{transform_indices = @transform_0, window_bounds = array<i64: 256, 144>}, {transform_indices = @transform_1, window_bounds = array<i64: 256, 128>}, {pipeline_mode = #tpu.pipeline_mode<synchronous>, transform_indices = @transform_2, window_bounds = array<i64: 144, 128>}, {pipeline_mode = #tpu.pipeline_mode<synchronous>, transform_indices = @transform_3, window_bounds = array<i64: 1, 128>}, {pipeline_mode = #tpu.pipeline_mode<synchronous>, transform_indices = @transform_4, window_bounds = array<i64: 1, 128>}, {pipeline_mode = #tpu.pipeline_mode<synchronous>, transform_indices = @transform_5, window_bounds = array<i64: 1152, 128>}, {pipeline_mode = #tpu.pipeline_mode<synchronous>, transform_indices = @transform_6, window_bounds = array<i64: 1, 128>}, {pipeline_mode = #tpu.pipeline_mode<synchronous>, transform_indices = @transform_7, window_bounds = array<i64: 1, 128>}, {transform_indices = @transform_8, window_bounds = array<i64: 256, 128>}]} {
    %c0 = arith.constant 0 : index
    %c0_0 = arith.constant 0 : index
    %0 = vector.load %arg1[%c0, %c0_0] : memref<256x144xbf16, #tpu.memory_space<vmem>>, vector<256x144xbf16>
    %c0_1 = arith.constant 0 : index
    %c0_2 = arith.constant 0 : index
    %1 = vector.load %arg3[%c0_1, %c0_2] : memref<144x128xbf16, #tpu.memory_space<vmem>>, vector<144x128xbf16>
    %cst = arith.constant dense<0.000000e+00> : vector<256x128xf32>
    %2 = tpu.matmul %0, %1, %cst {dimension_numbers = #tpu.dot_dimension_numbers<[1], [0], [0], [1], [0, 0, 1, 1], [], []>} : vector<256x144xbf16>, vector<144x128xbf16>, vector<256x128xf32> -> vector<256x128xf32>
    %c0_3 = arith.constant 0 : index
    %c0_4 = arith.constant 0 : index
    %3 = vector.load %arg4[%c0_3, %c0_4] : memref<1x128xf32, #tpu.memory_space<vmem>>, vector<1x128xf32>
    %4 = vector.broadcast %3 : vector<1x128xf32> to vector<256x128xf32>
    %5 = arith.mulf %2, %4 : vector<256x128xf32>
    %c0_5 = arith.constant 0 : index
    %c0_6 = arith.constant 0 : index
    %6 = vector.load %arg5[%c0_5, %c0_6] : memref<1x128xf32, #tpu.memory_space<vmem>>, vector<1x128xf32>
    %7 = vector.broadcast %6 : vector<1x128xf32> to vector<256x128xf32>
    %8 = arith.addf %5, %7 : vector<256x128xf32>
    %cst_7 = arith.constant 0.000000e+00 : f32
    %9 = vector.broadcast %cst_7 : f32 to vector<256x128xf32>
    %10 = arith.maximumf %8, %9 : vector<256x128xf32>
    %11 = arith.truncf %10 : vector<256x128xf32> to vector<256x128xbf16>
    %cst_8 = arith.constant 0.000000e+00 : bf16
    %12 = vector.broadcast %cst_8 : bf16 to vector<1x16x128xbf16>
    %cst_9 = arith.constant 0.000000e+00 : bf16
    %13 = vector.broadcast %cst_9 : bf16 to vector<16x1x128xbf16>
    %14 = vector.shape_cast %11 : vector<256x128xbf16> to vector<16x16x128xbf16>
    %c0_10 = arith.constant 0 : index
    %c0_11 = arith.constant 0 : index
    %c0_12 = arith.constant 0 : index
    %15 = vector.load %arg10[%c0_10, %c0_11, %c0_12] : memref<16x16x1152xbf16, #tpu.memory_space<vmem>>, vector<1x16x128xbf16>
    tpu.vector_store %arg10[%c0_10, %c0_11, %c0_12], %12 {strides = array<i32>} : memref<16x16x1152xbf16, #tpu.memory_space<vmem>>, vector<1x16x128xbf16>,
    %c0_13 = arith.constant 0 : index
    %c0_14 = arith.constant 0 : index
    %c0_15 = arith.constant 0 : index
    %16 = vector.load %arg10[%c0_13, %c0_14, %c0_15] : memref<16x16x1152xbf16, #tpu.memory_space<vmem>>, vector<16x1x128xbf16>
    tpu.vector_store %arg10[%c0_13, %c0_14, %c0_15], %13 {strides = array<i32>} : memref<16x16x1152xbf16, #tpu.memory_space<vmem>>, vector<16x1x128xbf16>,
    %17 = vector.extract_strided_slice %14 {offsets = [0, 0, 0], sizes = [15, 15, 128], strides = [1, 1, 1]} : vector<16x16x128xbf16> to vector<15x15x128xbf16>
    %c1 = arith.constant 1 : index
    %c1_16 = arith.constant 1 : index
    %c0_17 = arith.constant 0 : index
    %18 = vector.load %arg10[%c1, %c1_16, %c0_17] : memref<16x16x1152xbf16, #tpu.memory_space<vmem>>, vector<15x15x128xbf16>
    tpu.vector_store %arg10[%c1, %c1_16, %c0_17], %17 {strides = array<i32>} : memref<16x16x1152xbf16, #tpu.memory_space<vmem>>, vector<15x15x128xbf16>,
    %c0_18 = arith.constant 0 : index
    %c0_19 = arith.constant 0 : index
    %c128 = arith.constant 128 : index
    %19 = vector.load %arg10[%c0_18, %c0_19, %c128] : memref<16x16x1152xbf16, #tpu.memory_space<vmem>>, vector<1x16x128xbf16>
    tpu.vector_store %arg10[%c0_18, %c0_19, %c128], %12 {strides = array<i32>} : memref<16x16x1152xbf16, #tpu.memory_space<vmem>>, vector<1x16x128xbf16>,
    %20 = vector.extract_strided_slice %14 {offsets = [0, 0, 0], sizes = [15, 16, 128], strides = [1, 1, 1]} : vector<16x16x128xbf16> to vector<15x16x128xbf16>
    %c1_20 = arith.constant 1 : index
    %c0_21 = arith.constant 0 : index
    %c128_22 = arith.constant 128 : index
    %21 = vector.load %arg10[%c1_20, %c0_21, %c128_22] : memref<16x16x1152xbf16, #tpu.memory_space<vmem>>, vector<15x16x128xbf16>
    tpu.vector_store %arg10[%c1_20, %c0_21, %c128_22], %20 {strides = array<i32>} : memref<16x16x1152xbf16, #tpu.memory_space<vmem>>, vector<15x16x128xbf16>,
    %c0_23 = arith.constant 0 : index
    %c0_24 = arith.constant 0 : index
    %c256 = arith.constant 256 : index
    %22 = vector.load %arg10[%c0_23, %c0_24, %c256] : memref<16x16x1152xbf16, #tpu.memory_space<vmem>>, vector<1x16x128xbf16>
    tpu.vector_store %arg10[%c0_23, %c0_24, %c256], %12 {strides = array<i32>} : memref<16x16x1152xbf16, #tpu.memory_space<vmem>>, vector<1x16x128xbf16>,
    %c0_25 = arith.constant 0 : index
    %c15 = arith.constant 15 : index
    %c256_26 = arith.constant 256 : index
    %23 = vector.load %arg10[%c0_25, %c15, %c256_26] : memref<16x16x1152xbf16, #tpu.memory_space<vmem>>, vector<16x1x128xbf16>
    tpu.vector_store %arg10[%c0_25, %c15, %c256_26], %13 {strides = array<i32>} : memref<16x16x1152xbf16, #tpu.memory_space<vmem>>, vector<16x1x128xbf16>,
    %24 = vector.extract_strided_slice %14 {offsets = [0, 1, 0], sizes = [15, 15, 128], strides = [1, 1, 1]} : vector<16x16x128xbf16> to vector<15x15x128xbf16>
    %c1_27 = arith.constant 1 : index
    %c0_28 = arith.constant 0 : index
    %c256_29 = arith.constant 256 : index
    %25 = vector.load %arg10[%c1_27, %c0_28, %c256_29] : memref<16x16x1152xbf16, #tpu.memory_space<vmem>>, vector<15x15x128xbf16>
    tpu.vector_store %arg10[%c1_27, %c0_28, %c256_29], %24 {strides = array<i32>} : memref<16x16x1152xbf16, #tpu.memory_space<vmem>>, vector<15x15x128xbf16>,
    %c0_30 = arith.constant 0 : index
    %c0_31 = arith.constant 0 : index
    %c384 = arith.constant 384 : index
    %26 = vector.load %arg10[%c0_30, %c0_31, %c384] : memref<16x16x1152xbf16, #tpu.memory_space<vmem>>, vector<16x1x128xbf16>
    tpu.vector_store %arg10[%c0_30, %c0_31, %c384], %13 {strides = array<i32>} : memref<16x16x1152xbf16, #tpu.memory_space<vmem>>, vector<16x1x128xbf16>,
    %27 = vector.extract_strided_slice %14 {offsets = [0, 0, 0], sizes = [16, 15, 128], strides = [1, 1, 1]} : vector<16x16x128xbf16> to vector<16x15x128xbf16>
    %c0_32 = arith.constant 0 : index
    %c1_33 = arith.constant 1 : index
    %c384_34 = arith.constant 384 : index
    %28 = vector.load %arg10[%c0_32, %c1_33, %c384_34] : memref<16x16x1152xbf16, #tpu.memory_space<vmem>>, vector<16x15x128xbf16>
    tpu.vector_store %arg10[%c0_32, %c1_33, %c384_34], %27 {strides = array<i32>} : memref<16x16x1152xbf16, #tpu.memory_space<vmem>>, vector<16x15x128xbf16>,
    %c0_35 = arith.constant 0 : index
    %c0_36 = arith.constant 0 : index
    %c512 = arith.constant 512 : index
    %29 = vector.load %arg10[%c0_35, %c0_36, %c512] : memref<16x16x1152xbf16, #tpu.memory_space<vmem>>, vector<16x16x128xbf16>
    tpu.vector_store %arg10[%c0_35, %c0_36, %c512], %14 {strides = array<i32>} : memref<16x16x1152xbf16, #tpu.memory_space<vmem>>, vector<16x16x128xbf16>,
    %c0_37 = arith.constant 0 : index
    %c15_38 = arith.constant 15 : index
    %c640 = arith.constant 640 : index
    %30 = vector.load %arg10[%c0_37, %c15_38, %c640] : memref<16x16x1152xbf16, #tpu.memory_space<vmem>>, vector<16x1x128xbf16>
    tpu.vector_store %arg10[%c0_37, %c15_38, %c640], %13 {strides = array<i32>} : memref<16x16x1152xbf16, #tpu.memory_space<vmem>>, vector<16x1x128xbf16>,
    %31 = vector.extract_strided_slice %14 {offsets = [0, 1, 0], sizes = [16, 15, 128], strides = [1, 1, 1]} : vector<16x16x128xbf16> to vector<16x15x128xbf16>
    %c0_39 = arith.constant 0 : index
    %c0_40 = arith.constant 0 : index
    %c640_41 = arith.constant 640 : index
    %32 = vector.load %arg10[%c0_39, %c0_40, %c640_41] : memref<16x16x1152xbf16, #tpu.memory_space<vmem>>, vector<16x15x128xbf16>
    tpu.vector_store %arg10[%c0_39, %c0_40, %c640_41], %31 {strides = array<i32>} : memref<16x16x1152xbf16, #tpu.memory_space<vmem>>, vector<16x15x128xbf16>,
    %c15_42 = arith.constant 15 : index
    %c0_43 = arith.constant 0 : index
    %c768 = arith.constant 768 : index
    %33 = vector.load %arg10[%c15_42, %c0_43, %c768] : memref<16x16x1152xbf16, #tpu.memory_space<vmem>>, vector<1x16x128xbf16>
    tpu.vector_store %arg10[%c15_42, %c0_43, %c768], %12 {strides = array<i32>} : memref<16x16x1152xbf16, #tpu.memory_space<vmem>>, vector<1x16x128xbf16>,
    %c0_44 = arith.constant 0 : index
    %c0_45 = arith.constant 0 : index
    %c768_46 = arith.constant 768 : index
    %34 = vector.load %arg10[%c0_44, %c0_45, %c768_46] : memref<16x16x1152xbf16, #tpu.memory_space<vmem>>, vector<16x1x128xbf16>
    tpu.vector_store %arg10[%c0_44, %c0_45, %c768_46], %13 {strides = array<i32>} : memref<16x16x1152xbf16, #tpu.memory_space<vmem>>, vector<16x1x128xbf16>,
    %35 = vector.extract_strided_slice %14 {offsets = [1, 0, 0], sizes = [15, 15, 128], strides = [1, 1, 1]} : vector<16x16x128xbf16> to vector<15x15x128xbf16>
    %c0_47 = arith.constant 0 : index
    %c1_48 = arith.constant 1 : index
    %c768_49 = arith.constant 768 : index
    %36 = vector.load %arg10[%c0_47, %c1_48, %c768_49] : memref<16x16x1152xbf16, #tpu.memory_space<vmem>>, vector<15x15x128xbf16>
    tpu.vector_store %arg10[%c0_47, %c1_48, %c768_49], %35 {strides = array<i32>} : memref<16x16x1152xbf16, #tpu.memory_space<vmem>>, vector<15x15x128xbf16>,
    %c15_50 = arith.constant 15 : index
    %c0_51 = arith.constant 0 : index
    %c896 = arith.constant 896 : index
    %37 = vector.load %arg10[%c15_50, %c0_51, %c896] : memref<16x16x1152xbf16, #tpu.memory_space<vmem>>, vector<1x16x128xbf16>
    tpu.vector_store %arg10[%c15_50, %c0_51, %c896], %12 {strides = array<i32>} : memref<16x16x1152xbf16, #tpu.memory_space<vmem>>, vector<1x16x128xbf16>,
    %38 = vector.extract_strided_slice %14 {offsets = [1, 0, 0], sizes = [15, 16, 128], strides = [1, 1, 1]} : vector<16x16x128xbf16> to vector<15x16x128xbf16>
    %c0_52 = arith.constant 0 : index
    %c0_53 = arith.constant 0 : index
    %c896_54 = arith.constant 896 : index
    %39 = vector.load %arg10[%c0_52, %c0_53, %c896_54] : memref<16x16x1152xbf16, #tpu.memory_space<vmem>>, vector<15x16x128xbf16>
    tpu.vector_store %arg10[%c0_52, %c0_53, %c896_54], %38 {strides = array<i32>} : memref<16x16x1152xbf16, #tpu.memory_space<vmem>>, vector<15x16x128xbf16>,
    %c15_55 = arith.constant 15 : index
    %c0_56 = arith.constant 0 : index
    %c1024 = arith.constant 1024 : index
    %40 = vector.load %arg10[%c15_55, %c0_56, %c1024] : memref<16x16x1152xbf16, #tpu.memory_space<vmem>>, vector<1x16x128xbf16>
    tpu.vector_store %arg10[%c15_55, %c0_56, %c1024], %12 {strides = array<i32>} : memref<16x16x1152xbf16, #tpu.memory_space<vmem>>, vector<1x16x128xbf16>,
    %c0_57 = arith.constant 0 : index
    %c15_58 = arith.constant 15 : index
    %c1024_59 = arith.constant 1024 : index
    %41 = vector.load %arg10[%c0_57, %c15_58, %c1024_59] : memref<16x16x1152xbf16, #tpu.memory_space<vmem>>, vector<16x1x128xbf16>
    tpu.vector_store %arg10[%c0_57, %c15_58, %c1024_59], %13 {strides = array<i32>} : memref<16x16x1152xbf16, #tpu.memory_space<vmem>>, vector<16x1x128xbf16>,
    %42 = vector.extract_strided_slice %14 {offsets = [1, 1, 0], sizes = [15, 15, 128], strides = [1, 1, 1]} : vector<16x16x128xbf16> to vector<15x15x128xbf16>
    %c0_60 = arith.constant 0 : index
    %c0_61 = arith.constant 0 : index
    %c1024_62 = arith.constant 1024 : index
    %43 = vector.load %arg10[%c0_60, %c0_61, %c1024_62] : memref<16x16x1152xbf16, #tpu.memory_space<vmem>>, vector<15x15x128xbf16>
    tpu.vector_store %arg10[%c0_60, %c0_61, %c1024_62], %42 {strides = array<i32>} : memref<16x16x1152xbf16, #tpu.memory_space<vmem>>, vector<15x15x128xbf16>,
    %c0_63 = arith.constant 0 : index
    %c0_64 = arith.constant 0 : index
    %c0_65 = arith.constant 0 : index
    %44 = vector.load %arg10[%c0_63, %c0_64, %c0_65] : memref<16x16x1152xbf16, #tpu.memory_space<vmem>>, vector<16x16x1152xbf16>
    %45 = vector.shape_cast %44 : vector<16x16x1152xbf16> to vector<256x1152xbf16>
    %c0_66 = arith.constant 0 : index
    %c0_67 = arith.constant 0 : index
    %46 = vector.load %arg6[%c0_66, %c0_67] : memref<1152x128xbf16, #tpu.memory_space<vmem>>, vector<1152x128xbf16>
    %cst_68 = arith.constant dense<0.000000e+00> : vector<256x128xf32>
    %47 = tpu.matmul %45, %46, %cst_68 {dimension_numbers = #tpu.dot_dimension_numbers<[1], [0], [0], [1], [0, 0, 1, 1], [], []>} : vector<256x1152xbf16>, vector<1152x128xbf16>, vector<256x128xf32> -> vector<256x128xf32>
    %c0_69 = arith.constant 0 : index
    %c0_70 = arith.constant 0 : index
    %48 = vector.load %arg7[%c0_69, %c0_70] : memref<1x128xf32, #tpu.memory_space<vmem>>, vector<1x128xf32>
    %49 = vector.broadcast %48 : vector<1x128xf32> to vector<256x128xf32>
    %50 = arith.mulf %47, %49 : vector<256x128xf32>
    %c0_71 = arith.constant 0 : index
    %c0_72 = arith.constant 0 : index
    %51 = vector.load %arg8[%c0_71, %c0_72] : memref<1x128xf32, #tpu.memory_space<vmem>>, vector<1x128xf32>
    %52 = vector.broadcast %51 : vector<1x128xf32> to vector<256x128xf32>
    %53 = arith.addf %50, %52 : vector<256x128xf32>
    %c0_73 = arith.constant 0 : index
    %c0_74 = arith.constant 0 : index
    %54 = vector.load %arg2[%c0_73, %c0_74] : memref<256x128xf32, #tpu.memory_space<vmem>>, vector<256x128xf32>
    %55 = arith.addf %53, %54 : vector<256x128xf32>
    %cst_75 = arith.constant 0.000000e+00 : f32
    %56 = vector.broadcast %cst_75 : f32 to vector<256x128xf32>
    %57 = arith.maximumf %55, %56 : vector<256x128xf32>
    %c0_76 = arith.constant 0 : index
    %c0_77 = arith.constant 0 : index
    %58 = vector.load %arg9[%c0_76, %c0_77] : memref<256x128xf32, #tpu.memory_space<vmem>>, vector<256x128xf32>
    tpu.vector_store %arg9[%c0_76, %c0_77], %57 {strides = array<i32>} : memref<256x128xf32, #tpu.memory_space<vmem>>, vector<256x128xf32>,
    return
  }
  func.func @transform_0(%arg0: i32) -> (i32, i32) {
    %c0_i32 = arith.constant 0 : i32
    %c0_i32_0 = arith.constant 0 : i32
    return %arg0, %c0_i32 : i32, i32
  }
  func.func @transform_1(%arg0: i32) -> (i32, i32) {
    %c0_i32 = arith.constant 0 : i32
    %c0_i32_0 = arith.constant 0 : i32
    return %arg0, %c0_i32 : i32, i32
  }
  func.func @transform_2(%arg0: i32) -> (i32, i32) {
    %c0_i32 = arith.constant 0 : i32
    %c0_i32_0 = arith.constant 0 : i32
    %c0_i32_1 = arith.constant 0 : i32
    return %c0_i32, %c0_i32_0 : i32, i32
  }
  func.func @transform_3(%arg0: i32) -> (i32, i32) {
    %c0_i32 = arith.constant 0 : i32
    %c0_i32_0 = arith.constant 0 : i32
    %c0_i32_1 = arith.constant 0 : i32
    return %c0_i32, %c0_i32_0 : i32, i32
  }
  func.func @transform_4(%arg0: i32) -> (i32, i32) {
    %c0_i32 = arith.constant 0 : i32
    %c0_i32_0 = arith.constant 0 : i32
    %c0_i32_1 = arith.constant 0 : i32
    return %c0_i32, %c0_i32_0 : i32, i32
  }
  func.func @transform_5(%arg0: i32) -> (i32, i32) {
    %c0_i32 = arith.constant 0 : i32
    %c0_i32_0 = arith.constant 0 : i32
    %c0_i32_1 = arith.constant 0 : i32
    return %c0_i32, %c0_i32_0 : i32, i32
  }
  func.func @transform_6(%arg0: i32) -> (i32, i32) {
    %c0_i32 = arith.constant 0 : i32
    %c0_i32_0 = arith.constant 0 : i32
    %c0_i32_1 = arith.constant 0 : i32
    return %c0_i32, %c0_i32_0 : i32, i32
  }
  func.func @transform_7(%arg0: i32) -> (i32, i32) {
    %c0_i32 = arith.constant 0 : i32
    %c0_i32_0 = arith.constant 0 : i32
    %c0_i32_1 = arith.constant 0 : i32
    return %c0_i32, %c0_i32_0 : i32, i32
  }
  func.func @transform_8(%arg0: i32) -> (i32, i32) {
    %c0_i32 = arith.constant 0 : i32
    %c0_i32_0 = arith.constant 0 : i32
    return %arg0, %c0_i32 : i32, i32
  }
}

</mosaic_0001>

<bundles_post_ra>
// kernel: tpu_custom_call.1
= control target key start
LH: loop header
LB: loop body
LE: loop exit
PB: predicated region body
PF: predicated region fallthrough
CT: control target
= control target key end

     0   :  { %13 = vsyncpa [#allocation4], 0  ;;  %s7859_s0 = inlined_call_operand.vmem [shape: bf16[512,144], index: 0, kind: input, shape index: {}]   ;;  %s7860_s1 = inlined_call_operand.hbm [shape: f32[512,128], index: 1, kind: input, shape index: {}]   ;;  %s7861_s2 = inlined_call_operand.vmem [shape: bf16[144,128], index: 2, kind: input, shape index: {}]   ;;  %s7862_s3 = inlined_call_operand.vmem [shape: f32[1,128], index: 3, kind: input, shape index: {}]   ;;  %s7863_s4 = inlined_call_operand.vmem [shape: f32[1,128], index: 4, kind: input, shape index: {}]   ;;  %s7864_s5 = inlined_call_operand.vmem [shape: bf16[1152,128], index: 5, kind: input, shape index: {}]   ;;  %s7865_s6 = inlined_call_operand.vmem [shape: f32[1,128], index: 6, kind: input, shape index: {}]   ;;  %s7866_s7 = inlined_call_operand.vmem [shape: f32[1,128], index: 7, kind: input, shape index: {}]   ;;  %s7867_s8 = inlined_call_operand.hbm [shape: f32[512,128], index: 8, kind: output, shape index: {}]  }
   0x1   :  { %15 = vsyncpa [#allocation4 + $0x1], 0 }
   0x2   :  { %16 = vsyncpa [#allocation5], 0 }
   0x3   :  { %18 = vsyncpa [#allocation5 + $0x1], 0  ;;  %s6290_s27 = smov 0   ;;  %s6292_s28 = smov 0  }
   0x4   :  { %s6294_s29 = smov 0   ;;  %s6296_s30 = smov 0  }
   0x5 LB: > { %s6311_s9 = sadd.s32 4294967295, %s6236_s30   ;;  %s4871_s10 = sadd.s32 4294967294, %s6236_s30   ;;  %s6236_s30 = sphi %s6296_s30, %s7928_s30   ;;  %s6232_s29 = sphi %s6294_s29, %s7927_s29   ;;  %s6228_s28 = sphi %s6292_s28, %s7926_s28   ;;  %s6224_s27 = sphi %s6290_s27, %s7925_s27  }
   0x6   : > { %s6315_s11 = sadd.s32 1, %s6236_s30   ;;  %s57_s12 = sadd.s32 1, %s6232_s29 }
   0x7   : > { %s54_s13 = ssub.s32 %s6236_s30, %s6315_s11  ;;  %p64_p0 = scmp.ne.s32.totalorder %s6232_s29, %s6228_s28 }
   0x8   : > { %p55_p1 = scmp.eq.s32.totalorder %s54_s13, 0  ;;  %p65_p2 = scmp.eq.s32.totalorder %s6236_s30, 0 }
   0x9   : > { %p70_p3 = scmp.ne.s32.totalorder %s6228_s28, %s6224_s27  ;;  %p71_p4 = scmp.eq.s32.totalorder %s6311_s9, 0 }
   0xa   : > { %s6327_s14 = scalar_select %p55_p1, %s6232_s29, %s57_s12  }
   0xb   : > { %p6329_p5 = por %p65_p2, %p64_p0  ;;  %p6333_p6 = por %p71_p4, %p70_p3 }
   0xc   : > { %7870 = sst [smem:[#allocation9_spill]] %s6327_s14  ;;  %p220_p7 = scmp.eq.s32.totalorder %s6311_s9, 1 }
   0xd   : > { %s7872_s16 = scalar_select %p6333_p6, 1, 0 }
   0xe   : > { %p226_p8 = scmp.eq.s32.totalorder %s4871_s10, 1  ;;  %p5764_p10 = scmp.lt.s32.totalorder %s6236_s30, 2 }
   0xf   : > { %p6340_p11 = por %p220_p7, %p64_p0  ;;  %s274_s19 = sand.u32 1, %s6232_s29  }
  0x10   : > { %p6344_p12 = por %p226_p8, %p70_p3  ;;  %s5197_s20 = sshll.u32 %s6236_s30, 12 }
  0x11   : > { %s7873_s17 = scalar_select %p6340_p11, 1, 0 }
  0x12   : > { %s7874_s18 = scalar_select %p6344_p12, 1, 0 }
  0x13   : > { %s4874_s21 = sshll.u32 %s274_s19, 8  ;;  %s6353_s24 = scalar_lea.hbm %s7860_s1, %s5197_s20 }
  0x14   : > { %s278_s25 = scalar_lea.vmem [#allocation3], %s4874_s21  ;;  %p6357_p13 = pnand %p5764_p10, %p6329_p5 }
  0x15   : > { %s285_s26 = sshll.u32 %s278_s25, 4  ;;  %s6363_s12 = scalar_lea.sflag [#allocation4], %s274_s19  ;;  %s6361_s26 = int_to_ptr.vmem [resolvable:$true] %s285_s26 }
  0x16   : > { %s6144_s13 = scalar_lea.hbm %s6353_s24, 4096  ;;  %p6146_p1 = pneg %p6357_p13 }
  0x17   : > { %p6145_p0 = scmp.ne.s32.totalorder %s6353_s24, %s6144_s13  ;;  %s6149_s21 = scalar_lea.hbm %s7860_s1, 8192 }
  0x18   : > { %p6150_p4 = scmp.lt.s32.totalorder %s6353_s24, %s7860_s1  ;;  %p6151_p5 = scmp.lt.s32.totalorder %s6149_s21, %s6144_s13 }
  0x19   : > { %p6147_p2 = pnand %p6146_p1, %p6145_p0 }
  0x1a   : > { %p6152_p7 = por %p6151_p5, %p6150_p4 }
  0x1b   : > { %p6148_p3 = pneg %p6147_p2 }
  0x1d   : > { %p6153_p8 = pnand %p6152_p7, %p6148_p3 }
  0x1f   : > { %6156 = shalt.err (!%p6153_p8)
}
  0x20   : > { %s6157_s19 = scalar_lea.vmem %s6361_s26, 4096  ;;  %s6238_s25 = smov [#allocation3]  }
  0x21   : > { %p6158_p10 = scmp.ne.s32.totalorder %s6361_s26, %s6157_s19  ;;  %s6162_s14 = sshll.u32 %s6238_s25, 4  ;;  %s6163_s14 = int_to_ptr.vmem [resolvable:$false] %s6162_s14 }
  0x22   : > { %s6164_s20 = scalar_lea.vmem %s6163_s14, 8192  ;;  %p6165_p2 = scmp.lt.s32.totalorder %s6361_s26, %s6163_s14 }
  0x23   : > { %p6160_p9 = pnand %p6158_p10, %p6146_p1  ;;  %p6166_p12 = scmp.lt.s32.totalorder %s6164_s20, %s6157_s19 }
  0x25   : > { %p6161_p0 = pneg %p6160_p9  ;;  %p6167_p11 = por %p6166_p12, %p6165_p2 }
  0x27   : > { %p6168_p6 = pnand %p6167_p11, %p6161_p0 }
  0x29   : > { %6171 = shalt.err (!%p6168_p6)
}
  0x2a   : > { %s6239_s13 = smov 128   ;;  %s6240_s22 = smov 8  }
  0x2b   : > { %5759 = dma.hbm_to_vmem [thread:$0]  (!%p6357_p13), %s6353_s24, 4096, %s6361_s26, %s6363_s12, %s6239_s13, %s6239_s13, %s6240_s22  }
  0x2c   : > { %p4877_p9 = scmp.ge.s32.totalorder %s6236_s30, 1  ;;  %p293_p1 = scmp.lt.s32.totalorder %s6236_s30, 3 }
  0x2e   : > { %p294_p3 = pnand %p4877_p9, %p293_p1 }
  0x30   : > { %297 = sbr.rel (%p294_p3) target bundleno = 969 (0x3c9), region = 52 }
  0x35   : > { %s6387_s14 = sand.u32 1, %s6228_s28   ;;  %p7876_p6 = scmp.ne.s32.totalorder %s7872_s16, 0 }
  0x36   : > { %s4878_s21 = sshll.u32 %s6387_s14, 8  ;;  %s300_s15 = scalar_lea.sflag [#allocation4], %s6387_s14 }
  0x37   : > { %s6393_s23 = scalar_lea.vmem [#allocation3], %s4878_s21 }
  0x38   : > { %6215 = dma.done.wait (%p7876_p6), %s300_s15, 4096  }
  0x39   : > { %6217 = vsyncadd (%p7876_p6), %s300_s15, 4294963200  ;;  %s4880_s24 = sshll.u32 %s6311_s9, 5  ;;  %v6241_v0 = vmov 0   ;;  %v5803_v1 = vld [vmem:[%s7861_s2 + $0x38] sm:$0xff]   ;;  %v5804_v2 = vld [vmem:[%s7861_s2 + $0x30] sm:$0xff]   ;;  %vm600_vm0 = vcmask 130048  }
  0x3a   : > { %649 = vmatprep.subr.bf16.mxu0 %v6241_v0  ;;  %936 = vst [vmem:[#allocation2] sm:$0xf] %v6241_v0  ;;  %937 = vst [vmem:[#allocation2 + $0x24] sm:$0xf] %v6241_v0  ;;  %p343_p11 = scmp.lt.s32.totalorder %s4880_s24, 63  ;;  %v5805_v3 = vld [vmem:[%s7861_s2 + $0x28] sm:$0xff]  }
  0x3b   : > { %1400 = vst [vmem:[#allocation2 + $0x4] sm:$0xf] %v6241_v0  ;;  %1401 = vst [vmem:[#allocation2 + $0x28] sm:$0xf] %v6241_v0  ;;  %650 = vmatpush1.bf16.msra.mxu0 %v5803_v1  ;;  %v5806_v4 = vld [vmem:[%s7861_s2 + $0x20] sm:$0xff]   ;;  %v5807_v6 = vld [vmem:[%s7861_s2 + $0x18] sm:$0xff]  }
  0x3c   : > { %1462 = vst [vmem:[#allocation2 + $0x8] sm:$0xf] %v6241_v0  ;;  %1463 = vst [vmem:[#allocation2 + $0x2c] sm:$0xf] %v6241_v0  ;;  %s7930_s24 = smov (!%p343_p11, %s4880_s24), 63  ;;  %651 = vmatprep.subr.bf16.mxu0 %v6241_v0  ;;  %v5808_v7 = vld [vmem:[%s7861_s2 + $0x10] sm:$0xff]  }
  0x3d   : > { %2037 = vst [vmem:[#allocation2 + $0x450] sm:$0xf] %v6241_v0  ;;  %2038 = vst [vmem:[#allocation2 + $0x474] sm:$0xf] %v6241_v0  ;;  %s5198_s19 = sshll.u32 %s7930_s24, 3  ;;  %v5809_v8 = vld [vmem:[%s7861_s2 + $0x8] sm:$0xff]  }
  0x3e   : > { %2147 = vst [vmem:[#allocation2 + $0x454] sm:$0xf] %v6241_v0  ;;  %2148 = vst [vmem:[#allocation2 + $0x478] sm:$0xf] %v6241_v0  ;;  %s6412_s15 = scalar_lea.vmem %s7859_s0, %s5198_s19  ;;  %v5810_v9 = vld [vmem:[%s7861_s2] sm:$0xff]   ;;  %v5860_v12 = vld [vmem:[%s7864_s5 + $0x78] sm:$0xff]  }
  0x3f   : > { %2179 = vst [vmem:[#allocation2 + $0x458] sm:$0xf] %v6241_v0  ;;  %2180 = vst [vmem:[#allocation2 + $0x47c] sm:$0xf] %v6241_v0  ;;  %652 = vmatpush1.bf16.msra.mxu0 %v5804_v2  ;;  %v5814_v5 = vld [vmem:[%s6412_s15 + $0x4] ss:$8 sps:$4 sm:$0xff]   ;;  %5232 = vmatprep.subr.bf16.mxu1 %v5860_v12 }
  0x40   : > { %653 = vmatprep.subr.bf16.mxu0 %v6241_v0  ;;  %4924 = vmatprep.mubr.msk.bf16.mxu0 %vm600_vm0, %v5814_v5  ;;  %v5811_v10 = vld [vmem:[%s7861_s2 + $0x40] sm:$0xff]   ;;  %v5815_v13 = vld [vmem:[%s6412_s15 + $0x14] ss:$8 sps:$4 sm:$0xff]   ;;  %v5864_v17 = vld [vmem:[%s7864_s5 + $0x68] sm:$0xff]   ;;  %vm938_vm1 = vcmask 1040384   ;;  %vm1464_vm4 = vcmask 1043459  }
  0x41   : > { %v5812_v11 = vld [vmem:[%s6412_s15] ss:$8 sps:$4 sm:$0xff]   ;;  %v5861_v14 = vld [vmem:[%s7864_s5 + $0x38] sm:$0xff]   ;;  %v5862_v15 = vld [vmem:[%s7864_s5 + $0x70] sm:$0xff]   ;;  %vm939_vm2 = vsmask.f32 256 }
  0x42   : > { %5233 = vmatpush3.bf16.msra.mxu1 %v5861_v14  ;;  %v5863_v16 = vld [vmem:[%s7864_s5 + $0x30] sm:$0xff]   ;;  %v5865_v18 = vld [vmem:[%s7864_s5 + $0x28] sm:$0xff]   ;;  %v5866_v19 = vld [vmem:[%s7864_s5 + $0x60] sm:$0xff]   ;;  %vm1465_vm5 = vsmask.f32 7950  ;;  %vm1337_vm7 = vcmask 1043456  }
  0x43   : > { %654 = vmatpush1.bf16.msra.mxu0 %v5805_v3  ;;  %5234 = vmatprep.subr.bf16.mxu1 %v5862_v15  ;;  %v5817_v20 = vld [vmem:[%s6412_s15 + $0x10] ss:$8 sps:$4 sm:$0xff]   ;;  %v5818_v21 = vld [vmem:[%s6412_s15 + $0x24] ss:$8 sps:$4 sm:$0xff]   ;;  %v5820_v23 = vld [vmem:[%s6412_s15 + $0x20] ss:$8 sps:$4 sm:$0xff]  }
  0x44   : > { %655 = vmatprep.subr.bf16.mxu0 %v6241_v0  ;;  %v5867_v22 = vld [vmem:[%s7864_s5 + $0x20] sm:$0xff]   ;;  %v5821_v24 = vld [vmem:[%s6412_s15 + $0x34] ss:$8 sps:$4 sm:$0xff]   ;;  %v5823_v25 = vld [vmem:[%s6412_s15 + $0x30] ss:$8 sps:$4 sm:$0xff]   ;;  %s7656_s10 = scalar_lea.vmem [#allocation6], %s4878_s21 }
  0x45   : > { %v5824_v26 = vld [vmem:[%s6412_s15 + $0x44] ss:$8 sps:$4 sm:$0xff]   ;;  %v5826_v27 = vld [vmem:[%s6412_s15 + $0x40] ss:$8 sps:$4 sm:$0xff]   ;;  %v5827_v28 = vld [vmem:[%s6412_s15 + $0x54] ss:$8 sps:$4 sm:$0xff]  }
  0x46   : > { %5235 = vmatpush3.bf16.msra.mxu1 %v5863_v16  ;;  %v5829_v29 = vld [vmem:[%s6412_s15 + $0x50] ss:$8 sps:$4 sm:$0xff]   ;;  %v5830_v30 = vld [vmem:[%s6412_s15 + $0x64] ss:$8 sps:$4 sm:$0xff]   ;;  %v5832_v31 = vld [vmem:[%s6412_s15 + $0x60] ss:$8 sps:$4 sm:$0xff]  }
  0x47   : > { %656 = vmatpush1.bf16.msra.mxu0 %v5806_v4  ;;  %5236 = vmatprep.subr.bf16.mxu1 %v5864_v17  ;;  %v5833_v32 = vld [vmem:[%s6412_s15 + $0x74] ss:$8 sps:$4 sm:$0xff]   ;;  %v5835_v33 = vld [vmem:[%s6412_s15 + $0x70] ss:$8 sps:$4 sm:$0xff]   ;;  %v5836_v34 = vld [vmem:[%s6412_s15 + $0x84] ss:$8 sps:$4 sm:$0xff]  }
  0x48   : > { %657 = vmatprep.subr.bf16.mxu0 %v6241_v0  ;;  %v5838_v35 = vld [vmem:[%s6412_s15 + $0x80] ss:$8 sps:$4 sm:$0xff]   ;;  %v5839_v36 = vld [vmem:[%s6412_s15 + $0x94] ss:$8 sps:$4 sm:$0xff]   ;;  %v5841_v41 = vld [vmem:[%s6412_s15 + $0x90] ss:$8 sps:$4 sm:$0xff]  }
  0x49   : > { %v5868_v37 = vld [vmem:[%s7864_s5 + $0x58] sm:$0xff]   ;;  %v5872_v42 = vld [vmem:[%s7864_s5 + $0x50] sm:$0xff]   ;;  %vm6505_vm3 = vmand %vm938_vm1, %vm939_vm2  ;;  %vm1338_vm8 = vsmask.f32 7938  ;;  %vm1515_vm10 = vsmask.f32 3328 }
  0x4a   : > { %5237 = vmatpush3.bf16.msra.mxu1 %v5865_v18  ;;  %v5869_v38 = vld [vmem:[%s7864_s5 + $0x178] sm:$0xff]   ;;  %v5873_v43 = vld [vmem:[%s7864_s5 + $0x170] sm:$0xff]   ;;  %v5842_v47 = vld [vmem:[%s6412_s15 + $0xa4] ss:$8 sps:$4 sm:$0xff]   ;;  %vm1516_vm11 = vsmask.f32 7440 }
  0x4b   : > { %658 = vmatpush1.bf16.msra.mxu0 %v5807_v6  ;;  %5238 = vmatprep.subr.bf16.mxu1 %v5866_v19  ;;  %v5870_v39 = vld [vmem:[%s7864_s5 + $0x18] sm:$0xff]   ;;  %v5874_v45 = vld [vmem:[%s7864_s5 + $0x10] sm:$0xff]   ;;  %v944_v48 = vld [vmem:[#allocation2 + $0x48] sm:$0x1]  ;;  %vm1064_vm12 = vsmask.f32 4368 }
  0x4c   : > { %659 = vmatprep.subr.bf16.mxu0 %v6241_v0  ;;  %v5871_v40 = vld [vmem:[%s7864_s5 + $0x138] sm:$0xff]   ;;  %v5875_v46 = vld [vmem:[%s7864_s5 + $0x130] sm:$0xff]   ;;  %v1744_v49 = vld [vmem:[#allocation2 + $0xc] sm:$0x1]  ;;  %v945_v50 = vsel %vm6505_vm3, 0, %v944_v48  ;;  %s5231_s21 = sshll.u32 %s6311_s9, 12 }
  0x4d   : > { %v1745_v51 = vsel %vm6505_vm3, 0, %v1744_v49  ;;  %v941_v52 = vld [vmem:[#allocation2] sm:$0x1]  ;;  %946 = vst [vmem:[#allocation2 + $0x48] sm:$0x1] %v945_v50  ;;  %v5876_v54 = vld [vmem:[%s7864_s5 + $0x48] sm:$0xff]   ;;  %vm6536_vm6 = vmand %vm1464_vm4, %vm1465_vm5  ;;  %s7813_s20 = scalar_lea.hbm %s7867_s8, %s5231_s21 }
  0x4e   : > { %5239 = vmatpush3.bf16.msra.mxu1 %v5867_v22  ;;  %1746 = vst [vmem:[#allocation2 + $0xc] sm:$0x1] %v1745_v51  ;;  %v942_v53 = vsel %vm6505_vm3, 0, %v941_v52  ;;  %v5877_v55 = vld [vmem:[%s7864_s5 + $0x168] sm:$0xff]   ;;  %v1470_v60 = vld [vmem:[#allocation2 + $0x74] sm:$0x8]  ;;  %vm6825_vm9 = vmand %vm1337_vm7, %vm1338_vm8 }
  0x4f   : > { %660 = vmatpush1.bf16.msra.mxu0 %v5808_v7  ;;  %5240 = vmatprep.subr.bf16.mxu1 %v5868_v37  ;;  %943 = vst [vmem:[#allocation2] sm:$0x1] %v942_v53  ;;  %v5878_v56 = vld [vmem:[%s7864_s5 + $0x8] sm:$0xff]   ;;  %v1913_v61 = vld [vmem:[#allocation2 + $0x38] sm:$0x8]  ;;  %v1471_v63 = vsel %vm6536_vm6, 0, %v1470_v60  ;;  %vm6838_vm13 = vmor %vm1515_vm10, %vm1516_vm11 }
  0x50   : > { %661 = vmatprep.subr.bf16.mxu0 %v6241_v0  ;;  %v5879_v57 = vld [vmem:[%s7864_s5 + $0x128] sm:$0xff]   ;;  %v5845_v62 = vld [vmem:[%s6412_s15 + $0xb4] ss:$8 sps:$4 sm:$0xff]   ;;  %v5880_v1 = vld [vmem:[%s7864_s5 + $0x40] sm:$0xff]   ;;  %1472 = vst [vmem:[#allocation2 + $0x74] sm:$0x8] %v1471_v63 }
  0x51   : > { %v5844_v58 = vld [vmem:[%s6412_s15 + $0xa0] ss:$8 sps:$4 sm:$0xff]   ;;  %v947_v2 = vld [vmem:[#allocation2 + $0x90] sm:$0x1]  ;;  %v1747_v3 = vld [vmem:[#allocation2 + $0x54] sm:$0x1] }
  0x52   : > { %5241 = vmatpush3.bf16.msra.mxu1 %v5870_v39  ;;  %v2039_v4 = vld [vmem:[#allocation2 + $0x18] sm:$0x1]  ;;  %v948_v5 = vsel %vm6505_vm3, 0, %v947_v2  ;;  %v1748_v6 = vsel %vm6505_vm3, 0, %v1747_v3  ;;  %v5886_v12 = vld [vmem:[#allocation2 + $0x4] ss:$36 sps:$4 sm:$0xff]   ;;  %vm6850_vm14 = vmor %vm939_vm2, %vm1064_vm12 }
  0x53   : > { %662 = vmatpush1.bf16.msra.mxu0 %v5809_v8  ;;  %5242 = vmatprep.subr.bf16.mxu1 %v5872_v42  ;;  %v2040_v7 = vsel %vm6505_vm3, 0, %v2039_v4  ;;  %v5881_v8 = vld [vmem:[%s7864_s5 + $0x160] sm:$0xff]   ;;  %949 = vst [vmem:[#allocation2 + $0x90] sm:$0x1] %v948_v5  ;;  %1749 = vst [vmem:[#allocation2 + $0x54] sm:$0x1] %v1748_v6 }
  0x54   : > { %663 = vmatprep.subr.bf16.mxu0 %v6241_v0  ;;  %2041 = vst [vmem:[#allocation2 + $0x18] sm:$0x1] %v2040_v7  ;;  %v5847_v14 = vld [vmem:[%s6412_s15 + $0xb0] ss:$8 sps:$4 sm:$0xff]   ;;  %v5848_v15 = vld [vmem:[%s6412_s15 + $0xc4] ss:$8 sps:$4 sm:$0xff]   ;;  %3793 = vmatprep.mubr.bf16.mxu1 %v5886_v12  ;;  %vm6862_vm15 = vmand %vm1337_vm7, %vm1515_vm10 }
  0x55   : > { %v1473_v16 = vld [vmem:[#allocation2 + $0xbc] sm:$0x8]  ;;  %v1916_v19 = vld [vmem:[#allocation2 + $0x80] sm:$0x8]  ;;  %v2184_v37 = vld [vmem:[#allocation2 + $0x8c] sm:$0x8] }
  0x56   : > { %5243 = vmatpush3.bf16.msra.mxu1 %v5874_v45  ;;  %v5888_v17 = vld [vmem:[%s7864_s5 + $0x118] sm:$0xff]   ;;  %v1474_v18 = vsel %vm6536_vm6, 0, %v1473_v16  ;;  %v1917_v22 = vsel %vm6536_vm6, 0, %v1916_v19  ;;  %v953_v42 = vld [vmem:[#allocation2 + $0x120] sm:$0x1]  ;;  %s4786_s12 = sshll.u32 %s7656_s10, 4  ;;  %s7815_s12 = int_to_ptr.vmem [resolvable:$true] %s4786_s12 }
  0x57   : > { %664 = vmatpush1.bf16.msra.mxu0 %v5810_v9  ;;  %5244 = vmatprep.subr.bf16.mxu1 %v5876_v54  ;;  %v5882_v9 = vld [vmem:[%s7864_s5] sm:$0xff]   ;;  %1475 = vst [vmem:[#allocation2 + $0xbc] sm:$0x8] %v1474_v18  ;;  %1918 = vst [vmem:[#allocation2 + $0x80] sm:$0x8] %v1917_v22  ;;  %v5890_v54 = vld [vmem:[%s7864_s5 + $0xf8] sm:$0xff]  }
  0x58   : > { %679 = vmatprep.subr.bf16.mxu0 %v6241_v0  ;;  %v1914_v0 = vsel %vm6536_vm6, 0, %v1913_v61  ;;  %v1467_v45 = vld [vmem:[#allocation2 + $0x2c] sm:$0x8]  ;;  %v2045_v50 = vld [vmem:[#allocation2 + $0xa8] sm:$0x1]  ;;  %s6172_s13 = scalar_lea.vmem %s7815_s12, 4096 }
  0x59   : > { %1915 = vst [vmem:[#allocation2 + $0x38] sm:$0x8] %v1914_v0  ;;  %v1468_v48 = vsel %vm6536_vm6, 0, %v1467_v45  ;;  %v5853_v51 = vld [vmem:[%s6412_s15 + $0xd0] ss:$8 sps:$4 sm:$0xff]   ;;  %v2046_v52 = vsel %vm6505_vm3, 0, %v2045_v50  ;;  %p6173_p12 = scmp.ne.s32.totalorder %s7815_s12, %s6172_s13 }
  0x5a   : > { %5245 = vmatpush3.bf16.msra.mxu1 %v5878_v56  ;;  %1469 = vst [vmem:[#allocation2 + $0x2c] sm:$0x8] %v1468_v48  ;;  %v5854_v53 = vld [vmem:[%s6412_s15 + $0xe4] ss:$8 sps:$4 sm:$0xff]   ;;  %2047 = vst [vmem:[#allocation2 + $0xa8] sm:$0x1] %v2046_v52 }
  0x5b   : > { %680 = vmatpush2.bf16.msra.mxu0 %v5811_v10  ;;  %5246 = vmatprep.subr.bf16.mxu1 %v5880_v1  ;;  %v5883_v10 = vld [vmem:[%s7864_s5 + $0x120] sm:$0xff]   ;;  %v1479_v56 = vld [vmem:[#allocation2 + $0x14c] sm:$0x8]  ;;  %v2187_v60 = vld [vmem:[#allocation2 + $0xd4] sm:$0x8]  ;;  %p7921_p13 = scmp.ne.s32.totalorder %s7873_s17, 0 }
  0x5c   : > { %5456 = vmatprep.subr.bf16.mxu0 %v5869_v38  ;;  %v956_v63 = vld [vmem:[#allocation2 + $0x168] sm:$0x1]  ;;  %v1756_v1 = vld [vmem:[#allocation2 + $0x12c] sm:$0x1]  ;;  %v2048_v4 = vld [vmem:[#allocation2 + $0xf0] sm:$0x1] }
  0x5d   : > { %v957_v0 = vsel %vm6505_vm3, 0, %v956_v63  ;;  %v5856_v2 = vld [vmem:[%s6412_s15 + $0xe0] ss:$8 sps:$4 sm:$0xff]   ;;  %v1757_v3 = vsel %vm6505_vm3, 0, %v1756_v1  ;;  %v5857_v5 = vld [vmem:[%s6412_s15 + $0xf4] ss:$8 sps:$4 sm:$0xff]   ;;  %p6174_p4 = pnand %p6173_p12, %p7921_p13 }
  0x5e   : > { %682 = vmatmul.mubr.bf16.vlgmr.msra.gmra.mxu0 %v5812_v11  ;;  %5247 = vmatpush3.bf16.msra.mxu1 %v5882_v9  ;;  %v5884_v11 = vld [vmem:[#allocation2] ss:$36 sps:$4 sm:$0xff]   ;;  %958 = vst [vmem:[#allocation2 + $0x168] sm:$0x1] %v957_v0  ;;  %1758 = vst [vmem:[#allocation2 + $0x12c] sm:$0x1] %v1757_v3 }
  0x5f   : > { %4925 = vmatprep.mubr.msk.bf16.mxu0 %vm600_vm0, %v5815_v13  ;;  %5457 = vmatpush3.bf16.msra.mxu0 %v5871_v40  ;;  %v5887_v13 = vld [vmem:[%s7864_s5 + $0x158] sm:$0xff]   ;;  %v2185_v40 = vsel %vm6536_vm6, 0, %v2184_v37  ;;  %v2049_v6 = vsel %vm6505_vm3, 0, %v2048_v4  ;;  %v1482_v7 = vld [vmem:[#allocation2 + $0x194] sm:$0x8]  ;;  %v5921_v48 = vld [vmem:[%s7864_s5 + $0xa8] sm:$0xff]   ;;  %p6175_p5 = pneg %p6174_p4 }
  0x60   : > { %5458 = vmatprep.subr.bf16.mxu0 %v5873_v43  ;;  %2186 = vst [vmem:[#allocation2 + $0x8c] sm:$0x8] %v2185_v40  ;;  %v5898_v43 = vld [vmem:[%s7864_s5 + $0x100] sm:$0xff]   ;;  %5344 = vmatprep.subr.bf16.mxu1 %v5890_v54  ;;  %2050 = vst [vmem:[#allocation2 + $0xf0] sm:$0x1] %v2049_v6  ;;  %s6242_s9 = smov [#allocation6]  }
  0x61   : > { %3794 = vmatmul.mubr.bf16.vlgmr.msra.gmra.mxu1 %v5884_v11  ;;  %v2190_v9 = vld [vmem:[#allocation2 + $0x11c] sm:$0x8]  ;;  %v5859_v16 = vld [vmem:[%s6412_s15 + $0xf0] ss:$8 sps:$4 sm:$0xff]   ;;  %v2193_v22 = vld [vmem:[#allocation2 + $0x164] sm:$0x8] }
  0x62   : > { %v2191_v12 = vsel %vm6536_vm6, 0, %v2190_v9  ;;  %v2051_v18 = vld [vmem:[#allocation2 + $0x138] sm:$0x1]  ;;  %v965_v40 = vld [vmem:[#allocation2 + $0x240] sm:$0x1]  ;;  %s6176_s22 = sshll.u32 %s6242_s9, 4  ;;  %s6177_s22 = int_to_ptr.vmem [resolvable:$false] %s6176_s22 }
  0x63   : > { %5459 = vmatpush3.bf16.msra.mxu0 %v5875_v46  ;;  %v954_v46 = vsel %vm6505_vm3, 0, %v953_v42  ;;  %2192 = vst [vmem:[#allocation2 + $0x11c] sm:$0x8] %v2191_v12  ;;  %v2052_v19 = vsel %vm6505_vm3, 0, %v2051_v18  ;;  %v1765_v42 = vld [vmem:[#allocation2 + $0x204] sm:$0x1]  ;;  %p6179_p7 = scmp.lt.s32.totalorder %s7815_s12, %s6177_s22 }
  0x64   : > { %5460 = vmatprep.subr.bf16.mxu0 %v5877_v55  ;;  %955 = vst [vmem:[#allocation2 + $0x120] sm:$0x1] %v954_v46  ;;  %v5892_v55 = vld [vmem:[%s7864_s5 + $0xb8] sm:$0xff]   ;;  %2053 = vst [vmem:[#allocation2 + $0x138] sm:$0x1] %v2052_v19  ;;  %s6178_s26 = scalar_lea.vmem %s6177_s22, 8192 }
  0x65   : > { %5345 = vmatpush3.bf16.msra.mxu1 %v5892_v55  ;;  %v2057_v45 = vld [vmem:[#allocation2 + $0x1c8] sm:$0x1]  ;;  %v1937_v63 = vld [vmem:[#allocation2 + $0x278] sm:$0x8]  ;;  %v2202_v0 = vld [vmem:[#allocation2 + $0x23c] sm:$0x8]  ;;  %p6180_p8 = scmp.lt.s32.totalorder %s6178_s26, %s6172_s13 }
  0x66   : > { %690 = vmatmul.mubr.bf16.gmra.mxu0 %v5817_v20  ;;  %v2181_v20 = vld [vmem:[#allocation2 + $0x44] sm:$0x8]  ;;  %v2058_v46 = vsel %vm6505_vm3, 0, %v2057_v45  ;;  %v968_v55 = vld [vmem:[#allocation2 + $0x288] sm:$0x1]  ;;  %v2203_v3 = vsel %vm6536_vm6, 0, %v2202_v0 }
  0x67   : > { %4926 = vmatprep.mubr.msk.bf16.mxu0 %vm600_vm0, %v5818_v21  ;;  %5461 = vmatpush3.bf16.msra.mxu0 %v5879_v57  ;;  %v5889_v21 = vld [vmem:[%s7864_s5 + $0x150] sm:$0xff]   ;;  %v1480_v57 = vsel %vm6536_vm6, 0, %v1479_v56  ;;  %2059 = vst [vmem:[#allocation2 + $0x1c8] sm:$0x1] %v2058_v46  ;;  %v969_v56 = vsel %vm6505_vm3, 0, %v968_v55  ;;  %p6181_p10 = por %p6180_p8, %p6179_p7 }
  0x68   : > { %5462 = vmatprep.subr.bf16.mxu0 %v5881_v8  ;;  %1481 = vst [vmem:[#allocation2 + $0x14c] sm:$0x8] %v1480_v57  ;;  %v1925_v8 = vld [vmem:[#allocation2 + $0x158] sm:$0x8]  ;;  %v1768_v57 = vld [vmem:[#allocation2 + $0x24c] sm:$0x1] }
  0x69   : > { %v1926_v11 = vsel %vm6536_vm6, 0, %v1925_v8  ;;  %970 = vst [vmem:[#allocation2 + $0x288] sm:$0x1] %v969_v56  ;;  %2204 = vst [vmem:[#allocation2 + $0x23c] sm:$0x8] %v2203_v3  ;;  %p6182_p0 = pnand %p6181_p10, %p6175_p5 }
  0x6a   : > { %1927 = vst [vmem:[#allocation2 + $0x158] sm:$0x8] %v1926_v11  ;;  %v971_v4 = vld [vmem:[#allocation2 + $0x2d0] sm:$0x1]  ;;  %v2063_v8 = vld [vmem:[#allocation2 + $0x258] sm:$0x1] }
  0x6b   : > { %5463 = vmatpush3.bf16.msra.mxu0 %v5883_v10  ;;  %v1483_v10 = vsel %vm6536_vm6, 0, %v1482_v7  ;;  %v972_v6 = vsel %vm6505_vm3, 0, %v971_v4  ;;  %v2064_v9 = vsel %vm6505_vm3, 0, %v2063_v8  ;;  %v5935_v11 = vld [vmem:[%s7864_s5 + $0xa0] sm:$0xff]   ;;  %v1497_v12 = vld [vmem:[#allocation2 + $0x2fc] sm:$0x8] }
  0x6c   : > { %5464 = vmatprep.subr.bf16.mxu0 %v5887_v13  ;;  %1484 = vst [vmem:[#allocation2 + $0x194] sm:$0x8] %v1483_v10  ;;  %v959_v13 = vld [vmem:[#allocation2 + $0x1b0] sm:$0x1]  ;;  %973 = vst [vmem:[#allocation2 + $0x2d0] sm:$0x1] %v972_v6 }
  0x6d   : > { %2065 = vst [vmem:[#allocation2 + $0x258] sm:$0x1] %v2064_v9  ;;  %v5933_v10 = vld [vmem:[%s7864_s5 + $0xe0] sm:$0xff]   ;;  %v974_v18 = vld [vmem:[#allocation2 + $0x318] sm:$0x1] }
  0x6e   : > { %698 = vmatmul.mubr.bf16.gmra.mxu0 %v5820_v23  ;;  %v2182_v23 = vsel %vm6536_vm6, 0, %v2181_v20  ;;  %v1485_v20 = vld [vmem:[#allocation2 + $0x1dc] sm:$0x8]  ;;  %v975_v19 = vsel %vm6505_vm3, 0, %v974_v18  ;;  %v980_v45 = vld [vmem:[#allocation2 + $0x3a8] sm:$0x1] }
  0x6f   : > { %4927 = vmatprep.mubr.msk.bf16.mxu0 %vm600_vm0, %v5821_v24  ;;  %v950_v24 = vld [vmem:[#allocation2 + $0xd8] sm:$0x1]  ;;  %2183 = vst [vmem:[#allocation2 + $0x44] sm:$0x8] %v2182_v23  ;;  %5465 = vmatpush3.bf16.msra.mxu0 %v5888_v17  ;;  %v5905_v23 = vld [vmem:[%s7864_s5 + $0xf0] sm:$0xff]   ;;  %v981_v46 = vsel %vm6505_vm3, 0, %v980_v45 }
  0x70   : > { %5466 = vmatprep.subr.bf16.mxu0 %v5889_v21  ;;  %v1928_v21 = vld [vmem:[#allocation2 + $0x1a0] sm:$0x8]  ;;  %5346 = vmatprep.subr.bf16.mxu1 %v5905_v23  ;;  %976 = vst [vmem:[#allocation2 + $0x318] sm:$0x1] %v975_v19  ;;  %982 = vst [vmem:[#allocation2 + $0x3a8] sm:$0x1] %v981_v46 }
  0x71   : > { %v6780_v0 = vld [vmem:[%s7862_s3] ss:$0 sm:$0xff]  ;;  %v1509_v3 = vld [vmem:[#allocation2 + $0x41c] sm:$0x8]  ;;  %v1952_v8 = vld [vmem:[#allocation2 + $0x3e0] sm:$0x8] }
  0x72   : > { %v1510_v6 = vsel %vm6536_vm6, 0, %v1509_v3  ;;  %v2217_v9 = vld [vmem:[#allocation2 + $0x3a4] sm:$0x8]  ;;  %v2078_v19 = vld [vmem:[#allocation2 + $0x3c0] sm:$0x1]  ;;  %v6821_v46 = vld [vmem:[%s7864_s5 + $0x238] sm:$0xff]  }
  0x73   : > { %1511 = vst [vmem:[#allocation2 + $0x41c] sm:$0x8] %v1510_v6  ;;  %v6002_v3 = vld [vmem:[#allocation2 + $0x8] ss:$36 sps:$4 sm:$0xff]  }
  0x76   : > { %706 = vmatmul.mubr.bf16.gmra.mxu0 %v5823_v25  ;;  %v1750_v25 = vld [vmem:[#allocation2 + $0x9c] sm:$0x1] }
  0x77   : > { %4928 = vmatprep.mubr.msk.bf16.mxu0 %vm600_vm0, %v5824_v26  ;;  %v951_v26 = vsel %vm6505_vm3, 0, %v950_v24  ;;  %v5907_v24 = vld [vmem:[%s7864_s5 + $0xb0] sm:$0xff]  }
  0x78   : > { %952 = vst [vmem:[#allocation2 + $0xd8] sm:$0x1] %v951_v26  ;;  %v1929_v26 = vsel %vm6536_vm6, 0, %v1928_v21  ;;  %5347 = vmatpush3.bf16.msra.mxu1 %v5907_v24  ;;  %v2066_v21 = vld [vmem:[#allocation2 + $0x2a0] sm:$0x1] }
  0x79   : > { %1930 = vst [vmem:[#allocation2 + $0x1a0] sm:$0x8] %v1929_v26  ;;  %v2067_v23 = vsel %vm6505_vm3, 0, %v2066_v21  ;;  %v1500_v24 = vld [vmem:[#allocation2 + $0x344] sm:$0x8] }
  0x7a   : > { %2068 = vst [vmem:[#allocation2 + $0x2a0] sm:$0x1] %v2067_v23  ;;  %v2208_v26 = vld [vmem:[#allocation2 + $0x2cc] sm:$0x8] }
  0x7e   : > { %714 = vmatmul.mubr.bf16.gmra.mxu0 %v5826_v27  ;;  %v1751_v27 = vsel %vm6505_vm3, 0, %v1750_v25  ;;  %v1486_v25 = vsel %vm6536_vm6, 0, %v1485_v20  ;;  %v1774_v20 = vld [vmem:[#allocation2 + $0x2dc] sm:$0x1] }
  0x7f   : > { %4929 = vmatprep.mubr.msk.bf16.mxu0 %vm600_vm0, %v5827_v28  ;;  %v2042_v28 = vld [vmem:[#allocation2 + $0x60] sm:$0x1]  ;;  %1752 = vst [vmem:[#allocation2 + $0x9c] sm:$0x1] %v1751_v27  ;;  %1487 = vst [vmem:[#allocation2 + $0x1dc] sm:$0x8] %v1486_v25 }
  0x80   : > { %v2194_v27 = vsel %vm6536_vm6, 0, %v2193_v22  ;;  %v1775_v22 = vsel %vm6505_vm3, 0, %v1774_v20  ;;  %v1943_v25 = vld [vmem:[#allocation2 + $0x308] sm:$0x8] }
  0x81   : > { %2195 = vst [vmem:[#allocation2 + $0x164] sm:$0x8] %v2194_v27  ;;  %1776 = vst [vmem:[#allocation2 + $0x2dc] sm:$0x1] %v1775_v22  ;;  %v1501_v27 = vsel %vm6536_vm6, 0, %v1500_v24  ;;  %v2079_v22 = vsel %vm6505_vm3, 0, %v2078_v19 }
  0x82   : > { %1502 = vst [vmem:[#allocation2 + $0x344] sm:$0x8] %v1501_v27  ;;  %2080 = vst [vmem:[#allocation2 + $0x3c0] sm:$0x1] %v2079_v22  ;;  %v1955_v27 = vld [vmem:[#allocation2 + $0x428] sm:$0x8] }
  0x83   : > { %v1958_v19 = vld [vmem:[#allocation2 + $0x470] sm:$0x8]  ;;  %v1685_v22 = vld [vmem:[#allocation2 + $0x74] sm:$0xf] }
  0x86   : > { %722 = vmatmul.mubr.bf16.gmra.mxu0 %v5829_v29  ;;  %v5891_v29 = vld [vmem:[%s7864_s5 + $0x110] sm:$0xff]  }
  0x87   : > { %4930 = vmatprep.mubr.msk.bf16.mxu0 %vm600_vm0, %v5830_v30  ;;  %v2043_v30 = vsel %vm6505_vm3, 0, %v2042_v28  ;;  %5467 = vmatpush3.bf16.msra.mxu0 %v5891_v29  ;;  %v962_v28 = vld [vmem:[#allocation2 + $0x1f8] sm:$0x1] }
  0x88   : > { %2044 = vst [vmem:[#allocation2 + $0x60] sm:$0x1] %v2043_v30  ;;  %v963_v29 = vsel %vm6505_vm3, 0, %v962_v28  ;;  %v1762_v30 = vld [vmem:[#allocation2 + $0x1bc] sm:$0x1]  ;;  %v1944_v28 = vsel %vm6536_vm6, 0, %v1943_v25 }
  0x89   : > { %964 = vst [vmem:[#allocation2 + $0x1f8] sm:$0x1] %v963_v29  ;;  %v2209_v29 = vsel %vm6536_vm6, 0, %v2208_v26  ;;  %1945 = vst [vmem:[#allocation2 + $0x308] sm:$0x8] %v1944_v28 }
  0x8a   : > { %2210 = vst [vmem:[#allocation2 + $0x2cc] sm:$0x8] %v2209_v29  ;;  %v1512_v26 = vld [vmem:[#allocation2 + $0x464] sm:$0x8]  ;;  %v2220_v28 = vld [vmem:[#allocation2 + $0x3ec] sm:$0x8] }
  0x8e   : > { %730 = vmatmul.mubr.bf16.gmra.mxu0 %v5832_v31  ;;  %v5893_v31 = vld [vmem:[%s7864_s5 + $0x148] sm:$0xff]  }
  0x8f   : > { %4931 = vmatprep.mubr.msk.bf16.mxu0 %vm600_vm0, %v5833_v32  ;;  %v5850_v32 = vld [vmem:[%s6412_s15 + $0xc0] ss:$8 sps:$4 sm:$0xff]   ;;  %5468 = vmatprep.subr.bf16.mxu0 %v5893_v31  ;;  %v1763_v31 = vsel %vm6505_vm3, 0, %v1762_v30 }
  0x90   : > { %1764 = vst [vmem:[#allocation2 + $0x1bc] sm:$0x1] %v1763_v31  ;;  %v977_v30 = vld [vmem:[#allocation2 + $0x360] sm:$0x1] }
  0x91   : > { %v978_v31 = vsel %vm6505_vm3, 0, %v977_v30  ;;  %v1513_v30 = vsel %vm6536_vm6, 0, %v1512_v26 }
  0x92   : > { %979 = vst [vmem:[#allocation2 + $0x360] sm:$0x1] %v978_v31  ;;  %v1956_v31 = vsel %vm6536_vm6, 0, %v1955_v27  ;;  %1514 = vst [vmem:[#allocation2 + $0x464] sm:$0x8] %v1513_v30 }
  0x93   : > { %1957 = vst [vmem:[#allocation2 + $0x428] sm:$0x8] %v1956_v31 }
  0x96   : > { %738 = vmatmul.mubr.bf16.gmra.mxu0 %v5835_v33  ;;  %v5851_v33 = vld [vmem:[%s6412_s15 + $0xd4] ss:$8 sps:$4 sm:$0xff]  }
  0x97   : > { %4932 = vmatprep.mubr.msk.bf16.mxu0 %vm600_vm0, %v5836_v34  ;;  %v5894_v34 = vld [vmem:[%s7864_s5 + $0x108] sm:$0xff]  }
  0x98   : > { %5469 = vmatpush3.bf16.msra.mxu0 %v5894_v34  ;;  %v1488_v34 = vld [vmem:[#allocation2 + $0x224] sm:$0x8] }
  0x99   : > { %v1489_v37 = vsel %vm6536_vm6, 0, %v1488_v34  ;;  %v2069_v34 = vld [vmem:[#allocation2 + $0x2e8] sm:$0x1] }
  0x9a   : > { %1490 = vst [vmem:[#allocation2 + $0x224] sm:$0x8] %v1489_v37  ;;  %v5949_v37 = vld [vmem:[%s7864_s5 + $0x98] sm:$0xff]  }
  0x9e   : > { %746 = vmatmul.mubr.bf16.gmra.mxu0 %v5838_v35  ;;  %v1476_v35 = vld [vmem:[#allocation2 + $0x104] sm:$0x8] }
  0x9f   : > { %4933 = vmatprep.mubr.msk.bf16.mxu0 %vm600_vm0, %v5839_v36  ;;  %v1919_v36 = vld [vmem:[#allocation2 + $0xc8] sm:$0x8]  ;;  %v1477_v38 = vsel %vm6536_vm6, 0, %v1476_v35 }
  0xa0   : > { %v1920_v39 = vsel %vm6536_vm6, 0, %v1919_v36  ;;  %1478 = vst [vmem:[#allocation2 + $0x104] sm:$0x8] %v1477_v38  ;;  %v1931_v35 = vld [vmem:[#allocation2 + $0x1e8] sm:$0x8] }
  0xa1   : > { %1921 = vst [vmem:[#allocation2 + $0xc8] sm:$0x8] %v1920_v39  ;;  %v2196_v36 = vld [vmem:[#allocation2 + $0x1ac] sm:$0x8]  ;;  %v1932_v38 = vsel %vm6536_vm6, 0, %v1931_v35  ;;  %v2070_v35 = vsel %vm6505_vm3, 0, %v2069_v34 }
  0xa2   : > { %v2197_v39 = vsel %vm6536_vm6, 0, %v2196_v36  ;;  %1933 = vst [vmem:[#allocation2 + $0x1e8] sm:$0x8] %v1932_v38  ;;  %2071 = vst [vmem:[#allocation2 + $0x2e8] sm:$0x1] %v2070_v35  ;;  %v5947_v36 = vld [vmem:[%s7864_s5 + $0xd8] sm:$0xff]  }
  0xa3   : > { %2198 = vst [vmem:[#allocation2 + $0x1ac] sm:$0x8] %v2197_v39  ;;  %v1503_v38 = vld [vmem:[#allocation2 + $0x38c] sm:$0x8]  ;;  %v1946_v39 = vld [vmem:[#allocation2 + $0x350] sm:$0x8] }
  0xa6   : > { %754 = vmatmul.mubr.bf16.gmra.mxu0 %v5841_v41  ;;  %v5895_v41 = vld [vmem:[%s7864_s5 + $0x140] sm:$0xff]  }
  0xa7   : > { %4934 = vmatprep.mubr.msk.bf16.mxu0 %vm600_vm0, %v5842_v47  ;;  %v1753_v47 = vld [vmem:[#allocation2 + $0xe4] sm:$0x1]  ;;  %5470 = vmatprep.subr.bf16.mxu0 %v5895_v41  ;;  %v966_v41 = vsel %vm6505_vm3, 0, %v965_v40  ;;  %v1504_v40 = vsel %vm6536_vm6, 0, %v1503_v38 }
  0xa8   : > { %v1754_v49 = vsel %vm6505_vm3, 0, %v1753_v47  ;;  %5471 = vmatpush3.bf16.msra.mxu0 %v5898_v43  ;;  %967 = vst [vmem:[#allocation2 + $0x240] sm:$0x1] %v966_v41  ;;  %v1766_v43 = vsel %vm6505_vm3, 0, %v1765_v42  ;;  %v5919_v47 = vld [vmem:[%s7864_s5 + $0xe8] sm:$0xff]   ;;  %v1947_v41 = vsel %vm6536_vm6, 0, %v1946_v39 }
  0xa9   : > { %1755 = vst [vmem:[#allocation2 + $0xe4] sm:$0x1] %v1754_v49  ;;  %1767 = vst [vmem:[#allocation2 + $0x204] sm:$0x1] %v1766_v43  ;;  %v1491_v49 = vld [vmem:[#allocation2 + $0x26c] sm:$0x8]  ;;  %5348 = vmatprep.subr.bf16.mxu1 %v5919_v47  ;;  %5704 = vmatprep.subr.bf16.mxu0 %v6821_v46 }
  0xaa   : > { %v1492_v50 = vsel %vm6536_vm6, 0, %v1491_v49  ;;  %5349 = vmatpush3.bf16.msra.mxu1 %v5921_v48  ;;  %v2211_v42 = vld [vmem:[#allocation2 + $0x314] sm:$0x8]  ;;  %1505 = vst [vmem:[#allocation2 + $0x38c] sm:$0x8] %v1504_v40 }
  0xab   : > { %1493 = vst [vmem:[#allocation2 + $0x26c] sm:$0x8] %v1492_v50  ;;  %5350 = vmatprep.subr.bf16.mxu1 %v5933_v10  ;;  %1948 = vst [vmem:[#allocation2 + $0x350] sm:$0x8] %v1947_v41  ;;  %v2212_v43 = vsel %vm6536_vm6, 0, %v2211_v42 }
  0xac   : > { %2213 = vst [vmem:[#allocation2 + $0x314] sm:$0x8] %v2212_v43  ;;  %v1780_v47 = vld [vmem:[#allocation2 + $0x36c] sm:$0x1]  ;;  %v2072_v48 = vld [vmem:[#allocation2 + $0x330] sm:$0x1] }
  0xad   : > { %v1781_v49 = vsel %vm6505_vm3, 0, %v1780_v47  ;;  %v2073_v50 = vsel %vm6505_vm3, 0, %v2072_v48  ;;  %v1340_v41 = vld [vmem:[#allocation2 + $0x48] sm:$0xf]  ;;  %v1815_v48 = vld [vmem:[#allocation2 + $0xc] sm:$0xf] }
  0xae   : > { %762 = vmatmul.mubr.bf16.gmra.mxu0 %v5844_v58  ;;  %v1922_v58 = vld [vmem:[#allocation2 + $0x110] sm:$0x8]  ;;  %5351 = vmatpush3.bf16.msra.mxu1 %v5935_v11  ;;  %1782 = vst [vmem:[#allocation2 + $0x36c] sm:$0x1] %v1781_v49  ;;  %2074 = vst [vmem:[#allocation2 + $0x330] sm:$0x1] %v2073_v50 }
  0xaf   : > { %4935 = vmatprep.mubr.msk.bf16.mxu0 %vm600_vm0, %v5845_v62  ;;  %v1923_v61 = vsel %vm6536_vm6, 0, %v1922_v58  ;;  %v2188_v62 = vsel %vm6536_vm6, 0, %v2187_v60  ;;  %v2060_v58 = vld [vmem:[#allocation2 + $0x210] sm:$0x1]  ;;  %v1769_v60 = vsel %vm6505_vm3, 0, %v1768_v57  ;;  %5352 = vmatprep.subr.bf16.mxu1 %v5947_v36  ;;  %v1953_v11 = vsel %vm6536_vm6, 0, %v1952_v8 }
  0xb0   : > { %1924 = vst [vmem:[#allocation2 + $0x110] sm:$0x8] %v1923_v61  ;;  %2189 = vst [vmem:[#allocation2 + $0xd4] sm:$0x8] %v2188_v62  ;;  %v2061_v61 = vsel %vm6505_vm3, 0, %v2060_v58 }
  0xb1   : > { %1770 = vst [vmem:[#allocation2 + $0x24c] sm:$0x1] %v1769_v60  ;;  %2062 = vst [vmem:[#allocation2 + $0x210] sm:$0x1] %v2061_v61  ;;  %v1494_v62 = vld [vmem:[#allocation2 + $0x2b4] sm:$0x8] }
  0xb2   : > { %v1495_v1 = vsel %vm6536_vm6, 0, %v1494_v62  ;;  %5353 = vmatpush3.bf16.msra.mxu1 %v5949_v37  ;;  %v983_v57 = vld [vmem:[#allocation2 + $0x3f0] sm:$0x1]  ;;  %v1783_v60 = vld [vmem:[#allocation2 + $0x3b4] sm:$0x1] }
  0xb3   : > { %1496 = vst [vmem:[#allocation2 + $0x2b4] sm:$0x8] %v1495_v1  ;;  %v984_v58 = vsel %vm6505_vm3, 0, %v983_v57  ;;  %v1784_v61 = vsel %vm6505_vm3, 0, %v1783_v60  ;;  %v2075_v62 = vld [vmem:[#allocation2 + $0x378] sm:$0x1] }
  0xb4   : > { %985 = vst [vmem:[#allocation2 + $0x3f0] sm:$0x1] %v984_v58  ;;  %1785 = vst [vmem:[#allocation2 + $0x3b4] sm:$0x1] %v1784_v61  ;;  %v5961_v1 = vld [vmem:[%s7864_s5 + $0xd0] sm:$0xff]  }
  0xb5   : > { %5354 = vmatprep.subr.bf16.mxu1 %v5961_v1  ;;  %1954 = vst [vmem:[#allocation2 + $0x3e0] sm:$0x8] %v1953_v11  ;;  %v1789_v37 = vld [vmem:[#allocation2 + $0x444] sm:$0x1]  ;;  %v5975_v1 = vld [vmem:[%s7864_s5 + $0xc8] sm:$0xff]  }
  0xb6   : > { %770 = vmatmul.mubr.bf16.gmra.mxu0 %v5847_v14  ;;  %v960_v14 = vsel %vm6505_vm3, 0, %v959_v13  ;;  %v1940_v13 = vld [vmem:[#allocation2 + $0x2c0] sm:$0x8]  ;;  %v1790_v39 = vsel %vm6505_vm3, 0, %v1789_v37 }
  0xb7   : > { %4936 = vmatprep.mubr.msk.bf16.mxu0 %vm600_vm0, %v5848_v15  ;;  %v1759_v15 = vld [vmem:[#allocation2 + $0x174] sm:$0x1]  ;;  %961 = vst [vmem:[#allocation2 + $0x1b0] sm:$0x1] %v960_v14  ;;  %v2205_v14 = vld [vmem:[#allocation2 + $0x284] sm:$0x8] }
  0xb8   : > { %v1760_v17 = vsel %vm6505_vm3, 0, %v1759_v15  ;;  %v1498_v15 = vsel %vm6536_vm6, 0, %v1497_v12  ;;  %v2218_v12 = vsel %vm6536_vm6, 0, %v2217_v9  ;;  %1791 = vst [vmem:[#allocation2 + $0x444] sm:$0x1] %v1790_v39 }
  0xb9   : > { %1761 = vst [vmem:[#allocation2 + $0x174] sm:$0x1] %v1760_v17  ;;  %1499 = vst [vmem:[#allocation2 + $0x2fc] sm:$0x8] %v1498_v15  ;;  %v2206_v17 = vsel %vm6536_vm6, 0, %v2205_v14 }
  0xba   : > { %2207 = vst [vmem:[#allocation2 + $0x284] sm:$0x8] %v2206_v17  ;;  %2219 = vst [vmem:[#allocation2 + $0x3a4] sm:$0x8] %v2218_v12 }
  0xbe   : > { %778 = vmatmul.mubr.bf16.gmra.mxu0 %v5850_v32  ;;  %v2054_v32 = vld [vmem:[#allocation2 + $0x180] sm:$0x1] }
  0xbf   : > { %4937 = vmatprep.mubr.msk.bf16.mxu0 %vm600_vm0, %v5851_v33  ;;  %v2055_v33 = vsel %vm6505_vm3, 0, %v2054_v32  ;;  %v1777_v32 = vld [vmem:[#allocation2 + $0x324] sm:$0x1] }
  0xc0   : > { %2056 = vst [vmem:[#allocation2 + $0x180] sm:$0x1] %v2055_v33  ;;  %v1778_v33 = vsel %vm6505_vm3, 0, %v1777_v32  ;;  %v2221_v32 = vsel %vm6536_vm6, 0, %v2220_v28 }
  0xc1   : > { %1779 = vst [vmem:[#allocation2 + $0x324] sm:$0x1] %v1778_v33  ;;  %2222 = vst [vmem:[#allocation2 + $0x3ec] sm:$0x8] %v2221_v32 }
  0xc6   : > { %786 = vmatmul.mubr.bf16.gmra.mxu0 %v5853_v51  ;;  %v1934_v51 = vld [vmem:[#allocation2 + $0x230] sm:$0x8] }
  0xc7   : > { %4938 = vmatprep.mubr.msk.bf16.mxu0 %vm600_vm0, %v5854_v53  ;;  %v1935_v52 = vsel %vm6536_vm6, 0, %v1934_v51  ;;  %v2199_v53 = vld [vmem:[#allocation2 + $0x1f4] sm:$0x8] }
  0xc8   : > { %1936 = vst [vmem:[#allocation2 + $0x230] sm:$0x8] %v1935_v52  ;;  %v2200_v54 = vsel %vm6536_vm6, 0, %v2199_v53  ;;  %v1506_v51 = vld [vmem:[#allocation2 + $0x3d4] sm:$0x8] }
  0xc9   : > { %2201 = vst [vmem:[#allocation2 + $0x1f4] sm:$0x8] %v2200_v54  ;;  %v1949_v52 = vld [vmem:[#allocation2 + $0x398] sm:$0x8]  ;;  %v2214_v53 = vld [vmem:[#allocation2 + $0x35c] sm:$0x8] }
  0xca   : > { %v1507_v54 = vsel %vm6536_vm6, 0, %v1506_v51  ;;  %v1950_v55 = vsel %vm6536_vm6, 0, %v1949_v52  ;;  %v2215_v56 = vsel %vm6536_vm6, 0, %v2214_v53 }
  0xcb   : > { %1508 = vst [vmem:[#allocation2 + $0x3d4] sm:$0x8] %v1507_v54  ;;  %1951 = vst [vmem:[#allocation2 + $0x398] sm:$0x8] %v1950_v55 }
  0xcc   : > { %2216 = vst [vmem:[#allocation2 + $0x35c] sm:$0x8] %v2215_v56 }
  0xce   : > { %794 = vmatmul.mubr.bf16.gmra.mxu0 %v5856_v2  ;;  %v1938_v2 = vsel %vm6536_vm6, 0, %v1937_v63  ;;  %v2076_v63 = vsel %vm6505_vm3, 0, %v2075_v62 }
  0xcf   : > { %4939 = vmatprep.mubr.msk.bf16.mxu0 %vm600_vm0, %v5857_v5  ;;  %1939 = vst [vmem:[#allocation2 + $0x278] sm:$0x8] %v1938_v2  ;;  %v1771_v5 = vld [vmem:[#allocation2 + $0x294] sm:$0x1]  ;;  %2077 = vst [vmem:[#allocation2 + $0x378] sm:$0x1] %v2076_v63 }
  0xd0   : > { %v1772_v7 = vsel %vm6505_vm3, 0, %v1771_v5  ;;  %v5963_v2 = vld [vmem:[%s7864_s5 + $0x90] sm:$0xff]   ;;  %v6791_v5 = vld [vmem:[%s7863_s4] ss:$0 sm:$0xff] }
  0xd1   : > { %1773 = vst [vmem:[#allocation2 + $0x294] sm:$0x1] %v1772_v7  ;;  %5355 = vmatpush3.bf16.msra.mxu1 %v5963_v2  ;;  %v5977_v2 = vld [vmem:[%s7864_s5 + $0x88] sm:$0xff]  }
  0xd2   : > { %5356 = vmatprep.subr.bf16.mxu1 %v5975_v1 }
  0xd5   : > { %5357 = vmatpush3.bf16.msra.mxu1 %v5977_v2  ;;  %v1689_v2 = vld [vmem:[#allocation2 + $0xbc] sm:$0xf] }
  0xd6   : > { %802 = vmatmul.mubr.bf16.gmra.mxu0 %v5859_v16  ;;  %v1941_v16 = vsel %vm6536_vm6, 0, %v1940_v13  ;;  %v986_v13 = vld [vmem:[#allocation2 + $0x438] sm:$0x1] }
  0xd7   : > { %1942 = vst [vmem:[#allocation2 + $0x2c0] sm:$0x8] %v1941_v16  ;;  %v987_v15 = vsel %vm6505_vm3, 0, %v986_v13  ;;  %v1786_v16 = vld [vmem:[#allocation2 + $0x3fc] sm:$0x1] }
  0xd8   : > { %988 = vst [vmem:[#allocation2 + $0x438] sm:$0x1] %v987_v15  ;;  %v1787_v18 = vsel %vm6505_vm3, 0, %v1786_v16  ;;  %v2081_v13 = vld [vmem:[#allocation2 + $0x408] sm:$0x1] }
  0xd9   : > { %1788 = vst [vmem:[#allocation2 + $0x3fc] sm:$0x1] %v1787_v18  ;;  %v2082_v26 = vsel %vm6505_vm3, 0, %v2081_v13 }
  0xda   : > { %2083 = vst [vmem:[#allocation2 + $0x408] sm:$0x1] %v2082_v26 }
 0x11e   : > { %v683_v4 = vpop.f32.mrf.mxu0 }
 0x11f   : > { %v817_v7 = vmul.f32 %v6780_v0, %v683_v4 }
 0x120   : > { %v685_v10 = vpop.f32.mrf.mxu0 }
 0x121   : > { %v856_v14 = vadd.f32 %v6791_v5, %v817_v7 }
 0x122   : > { %v686_v17 = vpop.f32.mrf.mxu0 }
 0x123   : > { %v888_v20 = vmax.f32 %v856_v14, 0.0  ;;  %v818_v21 = vmul.f32 %v6780_v0, %v686_v17 }
 0x124   : > { %v688_v23 = vpop.f32.mrf.mxu0 }
 0x125   : > { %v5199_v24 = vpack.c.bf16 %v888_v20, %v888_v20  ;;  %v857_v25 = vadd.f32 %v6791_v5, %v818_v21  ;;  %v1973_v23 = vld [vmem:[#allocation2 + $0x38] sm:$0xf]  ;;  %v6025_v21 = vld [vmem:[%s7864_s5 + $0x1f0] sm:$0xff]  }
 0x126   : > { %v691_v29 = vpop.f32.mrf.mxu0 }
 0x127   : > { %v1067_v33 = vshrl.u32 %v5199_v24, 16  ;;  %v1070_v34 = vshll.u32 %v5199_v24, 16  ;;  %1432 = vst [vmem:[#allocation2 + $0x4c] sm:$0xf] %v5199_v24  ;;  %1881 = vst [vmem:[#allocation2 + $0x10] sm:$0xf] %v5199_v24  ;;  %v819_v36 = vmul.f32 %v6780_v0, %v691_v29 }
 0x128   : > { %v889_v35 = vmax.f32 %v857_v25, 0.0  ;;  %v693_v38 = vpop.f32.mrf.mxu0  ;;  %v1344_v29 = vld [vmem:[#allocation2 + $0x90] sm:$0xf] }
 0x129   : > { %v1069_v40 = vrot.slane %v1067_v33, 7  ;;  %v1518_v42 = vrot.slane %v1067_v33, 4  ;;  %v1519_v43 = vrot.slane %v1070_v34, 5  ;;  %v858_v49 = vadd.f32 %v6791_v5, %v819_v36  ;;  %v1819_v33 = vld [vmem:[#allocation2 + $0x54] sm:$0xf] }
 0x12a   : > { %v5200_v45 = vpack.c.bf16 %v889_v35, %v889_v35  ;;  %v694_v50 = vpop.f32.mrf.mxu0  ;;  %v1959_v38 = vsel %vm6536_vm6, 0, %v1958_v19  ;;  %v1348_v19 = vld [vmem:[#allocation2 + $0xd8] sm:$0xf] }
 0x12b   : > { %v1072_v51 = vor.u32 %v1070_v34, %v1069_v40  ;;  %v1520_v52 = vor.u32 %v1519_v43, %v1518_v42  ;;  %v890_v55 = vmax.f32 %v858_v49, 0.0  ;;  %v820_v56 = vmul.f32 %v6780_v0, %v694_v50  ;;  %v2087_v34 = vld [vmem:[#allocation2 + $0x18] sm:$0xf]  ;;  %1960 = vst [vmem:[#allocation2 + $0x470] sm:$0x8] %v1959_v38 }
 0x12c   : > { %v1075_v53 = vshrl.u32 %v5200_v45, 16  ;;  %1433 = vst [vmem:[#allocation2 + $0x70] sm:$0xf] %v5200_v45  ;;  %1882 = vst [vmem:[#allocation2 + $0x34] sm:$0xf] %v5200_v45  ;;  %v1078_v54 = vshll.u32 %v5200_v45, 16  ;;  %v696_v57 = vpop.f32.mrf.mxu0 }
 0x12d   : > { %v1341_v58 = vsel %vm6825_vm9, %v1072_v51, %v1340_v41  ;;  %v1521_v60 = vrot.slane %v1520_v52, 4  ;;  %v1816_v61 = vsel %vm6825_vm9, %v1072_v51, %v1815_v48  ;;  %v5201_v7 = vpack.c.bf16 %v890_v55, %v890_v55  ;;  %v5991_v57 = vld [vmem:[%s7864_s5 + $0xc0] sm:$0xff]  }
 0x12e   : > { %v1077_v62 = vrot.slane %v1075_v53, 7  ;;  %1342 = vst [vmem:[#allocation2 + $0x48] sm:$0xf] %v1341_v58  ;;  %1817 = vst [vmem:[#allocation2 + $0xc] sm:$0xf] %v1816_v61  ;;  %v1522_v4 = vrot.slane %v1078_v54, 5  ;;  %v859_v8 = vadd.f32 %v6791_v5, %v820_v56  ;;  %v699_v9 = vpop.f32.mrf.mxu0  ;;  %5358 = vmatprep.subr.bf16.mxu1 %v5991_v57 }
 0x12f   : > { %v1524_v6 = vrot.slane %v1075_v53, 4  ;;  %v1073_v10 = vrot.slane %v1069_v40, 4  ;;  %v821_v12 = vmul.f32 %v6780_v0, %v699_v9  ;;  %v1083_v16 = vshrl.u32 %v5201_v7, 16  ;;  %1434 = vst [vmem:[#allocation2 + $0x94] sm:$0xf] %v5201_v7  ;;  %v5993_v58 = vld [vmem:[%s7864_s5 + $0x80] sm:$0xff]  }
 0x130   : > { %v1080_v11 = vor.u32 %v1078_v54, %v1077_v62  ;;  %v1523_v14 = vsel %vm6838_vm13, %v1521_v60, %v1522_v4  ;;  %v1086_v17 = vshll.u32 %v5201_v7, 16  ;;  %1883 = vst [vmem:[#allocation2 + $0x58] sm:$0xf] %v5201_v7  ;;  %2149 = vst [vmem:[#allocation2 + $0x1c] sm:$0xf] %v5201_v7  ;;  %v701_v18 = vpop.f32.mrf.mxu0  ;;  %v891_v24 = vmax.f32 %v859_v8, 0.0  ;;  %5359 = vmatpush3.bf16.msra.mxu1 %v5993_v58 }
 0x131   : > { %v1525_v15 = vor.u32 %v1524_v6, %v1522_v4  ;;  %1683 = vst [vmem:[#allocation2 + $0x50] sm:$0xf] %v1523_v14  ;;  %1972 = vst [vmem:[#allocation2 + $0x14] sm:$0xf] %v1523_v14  ;;  %v860_v25 = vadd.f32 %v6791_v5, %v821_v12  ;;  %v6869_v28 = vrot.slane %v1083_v16, 7  ;;  %v1527_v30 = vrot.slane %v1083_v16, 4 }
 0x132   : > { %v1081_v20 = vsel %vm6850_vm14, %v1073_v10, %v1080_v11  ;;  %v1528_v31 = vrot.slane %v1086_v17, 5  ;;  %v702_v32 = vpop.f32.mrf.mxu0  ;;  %v5202_v35 = vpack.c.bf16 %v891_v24, %v891_v24  ;;  %v2223_v56 = vld [vmem:[#allocation2 + $0x434] sm:$0x8]  ;;  %v1977_v4 = vld [vmem:[#allocation2 + $0x80] sm:$0xf] }
 0x133   : > { %1343 = vst [vmem:[#allocation2 + $0x6c] sm:$0xf] %v1081_v20  ;;  %v1526_v27 = vrot.slane %v1525_v15, 4  ;;  %1818 = vst [vmem:[#allocation2 + $0x30] sm:$0xf] %v1081_v20  ;;  %v892_v36 = vmax.f32 %v860_v25, 0.0  ;;  %v822_v37 = vmul.f32 %v6780_v0, %v702_v32  ;;  %v1088_v41 = vor.u32 %v1086_v17, %v6869_v28 }
 0x134   : > { %v1089_v42 = vrot.slane %v6869_v28, 4  ;;  %v704_v43 = vpop.f32.mrf.mxu0  ;;  %v1529_v45 = vor.u32 %v1528_v31, %v1527_v30  ;;  %v1091_v48 = vshrl.u32 %v5202_v35, 16  ;;  %v1094_v49 = vshll.u32 %v5202_v35, 16  ;;  %1435 = vst [vmem:[#allocation2 + $0xb8] sm:$0xf] %v5202_v35 }
 0x135   : > { %v1686_v39 = vsel %vm6862_vm15, %v1526_v27, %v1685_v22  ;;  %v1974_v40 = vsel %vm6862_vm15, %v1526_v27, %v1973_v23  ;;  %1884 = vst [vmem:[#allocation2 + $0x7c] sm:$0xf] %v5202_v35  ;;  %2150 = vst [vmem:[#allocation2 + $0x40] sm:$0xf] %v5202_v35  ;;  %v5203_v50 = vpack.c.bf16 %v892_v36, %v892_v36  ;;  %v2230_v6 = vld [vmem:[#allocation2 + $0x44] sm:$0xf] }
 0x136   : > { %1687 = vst [vmem:[#allocation2 + $0x74] sm:$0xf] %v1686_v39  ;;  %1975 = vst [vmem:[#allocation2 + $0x38] sm:$0xf] %v1974_v40  ;;  %v1345_v51 = vsel %vm6825_vm9, %v1088_v41, %v1344_v29  ;;  %v1820_v52 = vsel %vm6825_vm9, %v1088_v41, %v1819_v33  ;;  %v2088_v53 = vsel %vm6825_vm9, %v1088_v41, %v2087_v34  ;;  %v707_v55 = vpop.f32.mrf.mxu0  ;;  %v1530_v60 = vrot.slane %v1529_v45, 4  ;;  %v6914_v41 = vld [vmem:[%s7864_s5 + $0x230] sm:$0xff]  }
 0x137   : > { %v861_v54 = vadd.f32 %v6791_v5, %v822_v37  ;;  %1346 = vst [vmem:[#allocation2 + $0x90] sm:$0xf] %v1345_v51  ;;  %1821 = vst [vmem:[#allocation2 + $0x54] sm:$0xf] %v1820_v52  ;;  %v1093_v61 = vrot.slane %v1091_v48, 7  ;;  %v1531_v62 = vrot.slane %v1094_v49, 5  ;;  %v823_v10 = vmul.f32 %v6780_v0, %v707_v55 }
 0x138   : > { %2089 = vst [vmem:[#allocation2 + $0x18] sm:$0xf] %v2088_v53  ;;  %v1533_v1 = vrot.slane %v1091_v48, 4  ;;  %1436 = vst [vmem:[#allocation2 + $0xdc] sm:$0xf] %v5203_v50  ;;  %v1099_v7 = vshrl.u32 %v5203_v50, 16  ;;  %v709_v11 = vpop.f32.mrf.mxu0 }
 0x139   : > { %1885 = vst [vmem:[#allocation2 + $0xa0] sm:$0xf] %v5203_v50  ;;  %2151 = vst [vmem:[#allocation2 + $0x64] sm:$0xf] %v5203_v50  ;;  %v1102_v8 = vshll.u32 %v5203_v50, 16  ;;  %v893_v9 = vmax.f32 %v861_v54, 0.0  ;;  %v1096_v12 = vor.u32 %v1094_v49, %v1093_v61  ;;  %v1532_v13 = vsel %vm6838_vm13, %v1530_v60, %v1531_v62 }
 0x13a   : > { %v1534_v14 = vor.u32 %v1533_v1, %v1531_v62  ;;  %v5896_v15 = vld [vmem:[#allocation2 + $0x4c] ss:$36 sps:$4 sm:$0xff]   ;;  %v2224_v17 = vsel %vm6536_vm6, 0, %v2223_v56  ;;  %1688 = vst [vmem:[#allocation2 + $0x98] sm:$0xf] %v1532_v13  ;;  %v6898_v18 = vrot.slane %v1099_v7, 7  ;;  %v710_v24 = vpop.f32.mrf.mxu0  ;;  %v862_v29 = vadd.f32 %v6791_v5, %v823_v10 }
 0x13b   : > { %v5899_v16 = vld [vmem:[#allocation2 + $0x48] ss:$36 sps:$4 sm:$0xff]   ;;  %1976 = vst [vmem:[#allocation2 + $0x5c] sm:$0xf] %v1532_v13  ;;  %2229 = vst [vmem:[#allocation2 + $0x20] sm:$0xf] %v1532_v13  ;;  %v5204_v23 = vpack.c.bf16 %v893_v9, %v893_v9  ;;  %v1097_v25 = vsel %vm6850_vm14, %v1089_v42, %v1096_v12  ;;  %3801 = vmatprep.mubr.bf16.mxu1 %v5896_v15  ;;  %v824_v33 = vmul.f32 %v6780_v0, %v710_v24 }
 0x13c   : > { %v1536_v20 = vrot.slane %v1099_v7, 4  ;;  %v1537_v22 = vrot.slane %v1102_v8, 5  ;;  %2225 = vst [vmem:[#allocation2 + $0x434] sm:$0x8] %v2224_v17  ;;  %v1535_v26 = vrot.slane %v1534_v14, 4  ;;  %v1104_v30 = vor.u32 %v1102_v8, %v6898_v18  ;;  %v712_v34 = vpop.f32.mrf.mxu0  ;;  %3802 = vmatmul.mubr.bf16.gmra.mxu1 %v5899_v16  ;;  %v6010_v42 = vld [vmem:[%s7864_s5 + $0x1f8] sm:$0xff]  }
 0x13d   : > { %v1823_v27 = vld [vmem:[#allocation2 + $0x9c] sm:$0xf]  ;;  %v2091_v28 = vld [vmem:[#allocation2 + $0x60] sm:$0xf]  ;;  %1347 = vst [vmem:[#allocation2 + $0xb4] sm:$0xf] %v1097_v25  ;;  %5568 = vmatprep.subr.bf16.mxu1 %v6010_v42  ;;  %v863_v56 = vadd.f32 %v6791_v5, %v824_v33 }
 0x13e   : > { %1822 = vst [vmem:[#allocation2 + $0x78] sm:$0xf] %v1097_v25  ;;  %2090 = vst [vmem:[#allocation2 + $0x3c] sm:$0xf] %v1097_v25  ;;  %v1538_v31 = vor.u32 %v1537_v22, %v1536_v20  ;;  %v1107_v32 = vshrl.u32 %v5204_v23, 16  ;;  %v1690_v36 = vsel %vm6862_vm15, %v1535_v26, %v1689_v2  ;;  %v1978_v37 = vsel %vm6862_vm15, %v1535_v26, %v1977_v4  ;;  %v715_v50 = vpop.f32.mrf.mxu0  ;;  %v5997_v10 = vld [vmem:[%s7864_s5 + $0x228] sm:$0xff]  }
 0x13f   : > { %1437 = vst [vmem:[#allocation2 + $0x100] sm:$0xf] %v5204_v23  ;;  %1886 = vst [vmem:[#allocation2 + $0xc4] sm:$0xf] %v5204_v23  ;;  %v5900_v35 = vld [vmem:[#allocation2 + $0x10] ss:$36 sps:$4 sm:$0xff]   ;;  %v2231_v38 = vsel %vm6862_vm15, %v1535_v26, %v2230_v6  ;;  %v1349_v43 = vsel %vm6825_vm9, %v1104_v30, %v1348_v19  ;;  %v1824_v48 = vsel %vm6825_vm9, %v1104_v30, %v1823_v27 }
 0x140   : > { %2152 = vst [vmem:[#allocation2 + $0x88] sm:$0xf] %v5204_v23  ;;  %v1110_v39 = vshll.u32 %v5204_v23, 16  ;;  %v5902_v40 = vld [vmem:[#allocation2 + $0x14] ss:$36 sps:$4 sm:$0xff]   ;;  %v1539_v45 = vrot.slane %v1538_v31, 4  ;;  %v2092_v49 = vsel %vm6825_vm9, %v1104_v30, %v2091_v28  ;;  %v825_v57 = vmul.f32 %v6780_v0, %v715_v50  ;;  %v717_v58 = vpop.f32.mrf.mxu0 }
 0x141   : > { %1691 = vst [vmem:[#allocation2 + $0xbc] sm:$0xf] %v1690_v36  ;;  %1979 = vst [vmem:[#allocation2 + $0x80] sm:$0xf] %v1978_v37  ;;  %v1109_v51 = vrot.slane %v1107_v32, 7  ;;  %v1542_v53 = vrot.slane %v1107_v32, 4  ;;  %4115 = vmatprep.mubr.bf16.mxu0 %v5902_v40 }
 0x142   : > { %2232 = vst [vmem:[#allocation2 + $0x44] sm:$0xf] %v2231_v38  ;;  %1350 = vst [vmem:[#allocation2 + $0xd8] sm:$0xf] %v1349_v43  ;;  %v1540_v52 = vrot.slane %v1110_v39, 5  ;;  %v894_v54 = vmax.f32 %v862_v29, 0.0  ;;  %4116 = vmatmul.mubr.bf16.vlgmr.msra.gmra.mxu0 %v5900_v35  ;;  %v864_v8 = vadd.f32 %v6791_v5, %v825_v57  ;;  %v718_v9 = vpop.f32.mrf.mxu0 }
 0x143   : > { %1825 = vst [vmem:[#allocation2 + $0x9c] sm:$0xf] %v1824_v48  ;;  %2093 = vst [vmem:[#allocation2 + $0x60] sm:$0xf] %v2092_v49  ;;  %v1105_v55 = vrot.slane %v6898_v18, 4  ;;  %v1112_v60 = vor.u32 %v1110_v39, %v1109_v51  ;;  %5705 = vmatpush3.bf16.msra.mxu0 %v6821_v46  ;;  %v895_v7 = vmax.f32 %v863_v56, 0.0  ;;  %v826_v20 = vmul.f32 %v6780_v0, %v718_v9 }
 0x144   : > { %v1541_v61 = vsel %vm6838_vm13, %v1539_v45, %v1540_v52  ;;  %v1543_v62 = vor.u32 %v1542_v53, %v1540_v52  ;;  %v1693_v1 = vld [vmem:[#allocation2 + $0x104] sm:$0xf]  ;;  %v1981_v2 = vld [vmem:[#allocation2 + $0xc8] sm:$0xf]  ;;  %v5205_v4 = vpack.c.bf16 %v894_v54, %v894_v54  ;;  %v2234_v6 = vld [vmem:[#allocation2 + $0x8c] sm:$0xf]  ;;  %5706 = vmatprep.subr.bf16.mxu0 %v6914_v41  ;;  %v720_v22 = vpop.f32.mrf.mxu0 }
 0x145   : > { %1692 = vst [vmem:[#allocation2 + $0xe0] sm:$0xf] %v1541_v61  ;;  %1980 = vst [vmem:[#allocation2 + $0xa4] sm:$0xf] %v1541_v61  ;;  %v1113_v11 = vsel %vm6850_vm14, %v1105_v55, %v1112_v60  ;;  %v5903_v14 = vld [vmem:[#allocation2 + $0x94] ss:$36 sps:$4 sm:$0xff]   ;;  %v5206_v18 = vpack.c.bf16 %v895_v7, %v895_v7  ;;  %v865_v39 = vadd.f32 %v6791_v5, %v826_v20 }
 0x146   : > { %2233 = vst [vmem:[#allocation2 + $0x68] sm:$0xf] %v1541_v61  ;;  %v1544_v12 = vrot.slane %v1543_v62, 4  ;;  %v1115_v13 = vshrl.u32 %v5205_v4, 16  ;;  %v1118_v46 = vshll.u32 %v5205_v4, 16  ;;  %v896_v19 = vmax.f32 %v864_v8, 0.0  ;;  %3809 = vmatprep.mubr.bf16.mxu1 %v5903_v14  ;;  %v723_v34 = vpop.f32.mrf.mxu0 }
 0x147   : > { %1438 = vst [vmem:[#allocation2 + $0x124] sm:$0xf] %v5205_v4  ;;  %1887 = vst [vmem:[#allocation2 + $0xe8] sm:$0xf] %v5205_v4  ;;  %v1352_v15 = vld [vmem:[#allocation2 + $0x120] sm:$0xf]  ;;  %5707 = vmatpush3.bf16.msra.mxu0 %v6914_v41  ;;  %v827_v8 = vmul.f32 %v6780_v0, %v723_v34 }
 0x148   : > { %2153 = vst [vmem:[#allocation2 + $0xac] sm:$0xf] %v5205_v4  ;;  %1351 = vst [vmem:[#allocation2 + $0xfc] sm:$0xf] %v1113_v11  ;;  %v1827_v16 = vld [vmem:[#allocation2 + $0xe4] sm:$0xf]  ;;  %v1694_v24 = vsel %vm6862_vm15, %v1544_v12, %v1693_v1  ;;  %v1982_v25 = vsel %vm6862_vm15, %v1544_v12, %v1981_v2  ;;  %v2235_v26 = vsel %vm6862_vm15, %v1544_v12, %v2234_v6  ;;  %5708 = vmatprep.subr.bf16.mxu0 %v5997_v10  ;;  %v725_v45 = vpop.f32.mrf.mxu0 }
 0x149   : > { %1826 = vst [vmem:[#allocation2 + $0xc0] sm:$0xf] %v1113_v11  ;;  %2094 = vst [vmem:[#allocation2 + $0x84] sm:$0xf] %v1113_v11  ;;  %v2095_v17 = vld [vmem:[#allocation2 + $0xa8] sm:$0xf]  ;;  %v5207_v38 = vpack.c.bf16 %v896_v19, %v896_v19 }
 0x14a   : > { %v5906_v23 = vld [vmem:[#allocation2 + $0x90] ss:$36 sps:$4 sm:$0xff]   ;;  %v1117_v27 = vrot.slane %v1115_v13, 7  ;;  %v5908_v28 = vld [vmem:[#allocation2 + $0x5c] ss:$36 sps:$4 sm:$0xff]   ;;  %v1545_v30 = vrot.slane %v1115_v13, 4  ;;  %v726_v1 = vpop.f32.mrf.mxu0 }
 0x14b   : > { %v5910_v29 = vld [vmem:[#allocation2 + $0x58] ss:$36 sps:$4 sm:$0xff]   ;;  %1695 = vst [vmem:[#allocation2 + $0x104] sm:$0xf] %v1694_v24  ;;  %1983 = vst [vmem:[#allocation2 + $0xc8] sm:$0xf] %v1982_v25  ;;  %3810 = vmatmul.mubr.bf16.gmra.mxu1 %v5906_v23  ;;  %4123 = vmatprep.mubr.bf16.mxu0 %v5908_v28  ;;  %v828_v34 = vmul.f32 %v6780_v0, %v726_v1 }
 0x14c   : > { %2236 = vst [vmem:[#allocation2 + $0x8c] sm:$0xf] %v2235_v26  ;;  %v1546_v31 = vrot.slane %v1118_v46, 5  ;;  %v1123_v32 = vshrl.u32 %v5206_v18, 16  ;;  %v1126_v33 = vshll.u32 %v5206_v18, 16  ;;  %v5998_v35 = vld [vmem:[%s7864_s5 + $0x220] sm:$0xff]   ;;  %v1120_v36 = vor.u32 %v1118_v46, %v1117_v27  ;;  %4124 = vmatmul.mubr.bf16.gmra.mxu0 %v5910_v29  ;;  %v728_v46 = vpop.f32.mrf.mxu0 }
 0x14d   : > { %1439 = vst [vmem:[#allocation2 + $0x148] sm:$0xf] %v5206_v18  ;;  %1888 = vst [vmem:[#allocation2 + $0x10c] sm:$0xf] %v5206_v18  ;;  %v1121_v37 = vrot.slane %v1117_v27, 4  ;;  %v1131_v54 = vshrl.u32 %v5207_v38, 16  ;;  %5709 = vmatpush3.bf16.msra.mxu0 %v5997_v10 }
 0x14e   : > { %2154 = vst [vmem:[#allocation2 + $0xd0] sm:$0xf] %v5206_v18  ;;  %v1547_v40 = vor.u32 %v1546_v31, %v1545_v30  ;;  %v1125_v41 = vrot.slane %v1123_v32, 7  ;;  %v1549_v42 = vrot.slane %v1126_v33, 5  ;;  %v1551_v43 = vrot.slane %v1123_v32, 4  ;;  %5710 = vmatprep.subr.bf16.mxu0 %v5998_v35  ;;  %v6008_v2 = vld [vmem:[%s7864_s5 + $0x218] sm:$0xff]   ;;  %v731_v25 = vpop.f32.mrf.mxu0 }
 0x14f   : > { %v1353_v48 = vsel %vm6825_vm9, %v1120_v36, %v1352_v15  ;;  %v1828_v49 = vsel %vm6825_vm9, %v1120_v36, %v1827_v16  ;;  %v2096_v50 = vsel %vm6825_vm9, %v1120_v36, %v2095_v17  ;;  %v1697_v51 = vld [vmem:[#allocation2 + $0x14c] sm:$0xf]  ;;  %v1985_v52 = vld [vmem:[#allocation2 + $0x110] sm:$0xf]  ;;  %v2238_v53 = vld [vmem:[#allocation2 + $0xd4] sm:$0xf]  ;;  %v866_v17 = vadd.f32 %v6791_v5, %v827_v8 }
 0x150   : > { %1440 = vst [vmem:[#allocation2 + $0x16c] sm:$0xf] %v5207_v38  ;;  %1889 = vst [vmem:[#allocation2 + $0x130] sm:$0xf] %v5207_v38  ;;  %v1548_v55 = vrot.slane %v1547_v40, 4  ;;  %v1128_v56 = vor.u32 %v1126_v33, %v1125_v41  ;;  %v1552_v57 = vor.u32 %v1551_v43, %v1549_v42  ;;  %v1134_v58 = vshll.u32 %v5207_v38, 16 }
 0x151   : > { %2155 = vst [vmem:[#allocation2 + $0xf4] sm:$0xf] %v5207_v38  ;;  %1354 = vst [vmem:[#allocation2 + $0x120] sm:$0xf] %v1353_v48  ;;  %v1356_v60 = vld [vmem:[#allocation2 + $0x168] sm:$0xf]  ;;  %5711 = vmatpush3.bf16.msra.mxu0 %v5998_v35  ;;  %v733_v35 = vpop.f32.mrf.mxu0  ;;  %v829_v38 = vmul.f32 %v6780_v0, %v731_v25  ;;  %v867_v41 = vadd.f32 %v6791_v5, %v828_v34 }
 0x152   : > { %1829 = vst [vmem:[#allocation2 + $0xe4] sm:$0xf] %v1828_v49  ;;  %2097 = vst [vmem:[#allocation2 + $0xa8] sm:$0xf] %v2096_v50  ;;  %v1831_v61 = vld [vmem:[#allocation2 + $0x12c] sm:$0xf]  ;;  %v1129_v10 = vsel %vm6850_vm14, %v1121_v37, %v1128_v56  ;;  %v1550_v11 = vsel %vm6838_vm13, %v1548_v55, %v1549_v42  ;;  %5712 = vmatprep.subr.bf16.mxu0 %v6008_v2 }
 0x153   : > { %v2099_v62 = vld [vmem:[#allocation2 + $0xf0] sm:$0xf]  ;;  %v6959_v4 = vrot.slane %v1131_v54, 7  ;;  %v1554_v6 = vrot.slane %v1131_v54, 4  ;;  %v897_v7 = vmax.f32 %v865_v39, 0.0  ;;  %v1553_v12 = vrot.slane %v1552_v57, 4  ;;  %v734_v42 = vpop.f32.mrf.mxu0 }
 0x154   : > { %v5911_v9 = vld [vmem:[#allocation2 + $0xdc] ss:$36 sps:$4 sm:$0xff]   ;;  %v1555_v13 = vrot.slane %v1134_v58, 5  ;;  %1355 = vst [vmem:[#allocation2 + $0x144] sm:$0xf] %v1129_v10  ;;  %v6009_v26 = vld [vmem:[%s7864_s5 + $0x210] sm:$0xff]  }
 0x155   : > { %v5913_v14 = vld [vmem:[#allocation2 + $0xd8] ss:$36 sps:$4 sm:$0xff]   ;;  %1696 = vst [vmem:[#allocation2 + $0x128] sm:$0xf] %v1550_v11  ;;  %1830 = vst [vmem:[#allocation2 + $0x108] sm:$0xf] %v1129_v10  ;;  %v1136_v15 = vor.u32 %v1134_v58, %v6959_v4  ;;  %v5208_v16 = vpack.c.bf16 %v897_v7, %v897_v7  ;;  %3817 = vmatprep.mubr.bf16.mxu1 %v5911_v9  ;;  %v1698_v20 = vsel %vm6862_vm15, %v1553_v12, %v1697_v51  ;;  %v736_v58 = vpop.f32.mrf.mxu0 }
 0x156   : > { %1984 = vst [vmem:[#allocation2 + $0xec] sm:$0xf] %v1550_v11  ;;  %2098 = vst [vmem:[#allocation2 + $0xcc] sm:$0xf] %v1129_v10  ;;  %v5914_v18 = vld [vmem:[#allocation2 + $0xa4] ss:$36 sps:$4 sm:$0xff]   ;;  %v1986_v22 = vsel %vm6862_vm15, %v1553_v12, %v1985_v52  ;;  %v2239_v23 = vsel %vm6862_vm15, %v1553_v12, %v2238_v53  ;;  %v1556_v24 = vor.u32 %v1555_v13, %v1554_v6  ;;  %3818 = vmatmul.mubr.bf16.gmra.mxu1 %v5913_v14 }
 0x157   : > { %2237 = vst [vmem:[#allocation2 + $0xb0] sm:$0xf] %v1550_v11  ;;  %v5916_v19 = vld [vmem:[#allocation2 + $0xa0] ss:$36 sps:$4 sm:$0xff]   ;;  %1699 = vst [vmem:[#allocation2 + $0x14c] sm:$0xf] %v1698_v20  ;;  %v1357_v27 = vsel %vm6825_vm9, %v1136_v15, %v1356_v60  ;;  %v1832_v28 = vsel %vm6825_vm9, %v1136_v15, %v1831_v61  ;;  %v2100_v29 = vsel %vm6825_vm9, %v1136_v15, %v2099_v62  ;;  %4131 = vmatprep.mubr.bf16.mxu0 %v5914_v18  ;;  %v739_v46 = vpop.f32.mrf.mxu0 }
 0x158   : > { %1987 = vst [vmem:[#allocation2 + $0x110] sm:$0xf] %v1986_v22  ;;  %2240 = vst [vmem:[#allocation2 + $0xd4] sm:$0xf] %v2239_v23  ;;  %v1139_v30 = vshrl.u32 %v5208_v16, 16  ;;  %v1557_v31 = vrot.slane %v1556_v24, 4  ;;  %4132 = vmatmul.mubr.bf16.gmra.mxu0 %v5916_v19  ;;  %v868_v52 = vadd.f32 %v6791_v5, %v829_v38  ;;  %v830_v53 = vmul.f32 %v6780_v0, %v734_v42 }
 0x159   : > { %1441 = vst [vmem:[#allocation2 + $0x190] sm:$0xf] %v5208_v16  ;;  %1890 = vst [vmem:[#allocation2 + $0x154] sm:$0xf] %v5208_v16  ;;  %v1142_v32 = vshll.u32 %v5208_v16, 16  ;;  %v898_v33 = vmax.f32 %v866_v17, 0.0  ;;  %5713 = vmatpush3.bf16.msra.mxu0 %v6008_v2  ;;  %v741_v24 = vpop.f32.mrf.mxu0 }
 0x15a   : > { %2156 = vst [vmem:[#allocation2 + $0x118] sm:$0xf] %v5208_v16  ;;  %1358 = vst [vmem:[#allocation2 + $0x168] sm:$0xf] %v1357_v27  ;;  %v1141_v36 = vrot.slane %v1139_v30, 7  ;;  %v1560_v37 = vrot.slane %v1139_v30, 4  ;;  %5714 = vmatprep.subr.bf16.mxu0 %v6009_v26  ;;  %v7004_v8 = vadd.f32 %v6791_v5, %v830_v53  ;;  %v831_v16 = vmul.f32 %v6780_v0, %v739_v46 }
 0x15b   : > { %1833 = vst [vmem:[#allocation2 + $0x12c] sm:$0xf] %v1832_v28  ;;  %2101 = vst [vmem:[#allocation2 + $0xf0] sm:$0xf] %v2100_v29  ;;  %v1558_v39 = vrot.slane %v1142_v32, 5  ;;  %v5209_v40 = vpack.c.bf16 %v898_v33, %v898_v33  ;;  %v6989_v43 = vld [vmem:[%s7864_s5 + $0x208] sm:$0xff]  }
 0x15c   : > { %v1137_v45 = vrot.slane %v6959_v4, 4  ;;  %v1144_v48 = vor.u32 %v1142_v32, %v1141_v36  ;;  %v1701_v49 = vld [vmem:[#allocation2 + $0x194] sm:$0xf]  ;;  %v1989_v50 = vld [vmem:[#allocation2 + $0x158] sm:$0xf]  ;;  %v6999_v61 = vld [vmem:[%s7864_s5 + $0x200] sm:$0xff]   ;;  %v7032_v32 = vpop.f32.mrf.mxu0 }
 0x15d   : > { %v2242_v51 = vld [vmem:[#allocation2 + $0x11c] sm:$0xf]  ;;  %v1559_v54 = vsel %vm6838_vm13, %v1557_v31, %v1558_v39  ;;  %v1561_v55 = vor.u32 %v1560_v37, %v1558_v39  ;;  %v1147_v56 = vshrl.u32 %v5209_v40, 16  ;;  %v1150_v57 = vshll.u32 %v5209_v40, 16  ;;  %1442 = vst [vmem:[#allocation2 + $0x1b4] sm:$0xf] %v5209_v40  ;;  %5715 = vmatpush3.bf16.msra.mxu0 %v6009_v26 }
 0x15e   : > { %1891 = vst [vmem:[#allocation2 + $0x178] sm:$0xf] %v5209_v40  ;;  %2157 = vst [vmem:[#allocation2 + $0x13c] sm:$0xf] %v5209_v40  ;;  %v5917_v60 = vld [vmem:[#allocation2 + $0x124] ss:$36 sps:$4 sm:$0xff]   ;;  %v1145_v62 = vsel %vm6850_vm14, %v1137_v45, %v1144_v48  ;;  %5716 = vmatprep.subr.bf16.mxu0 %v6989_v43 }
 0x15f   : > { %1700 = vst [vmem:[#allocation2 + $0x170] sm:$0xf] %v1559_v54  ;;  %1988 = vst [vmem:[#allocation2 + $0x134] sm:$0xf] %v1559_v54  ;;  %v1360_v1 = vld [vmem:[#allocation2 + $0x1b0] sm:$0xf]  ;;  %3825 = vmatprep.mubr.bf16.mxu1 %v5917_v60 }
 0x160   : > { %2241 = vst [vmem:[#allocation2 + $0xf8] sm:$0xf] %v1559_v54  ;;  %v1835_v2 = vld [vmem:[#allocation2 + $0x174] sm:$0xf]  ;;  %v2103_v4 = vld [vmem:[#allocation2 + $0x138] sm:$0xf] }
 0x161   : > { %v899_v6 = vmax.f32 %v867_v41, 0.0  ;;  %v900_v7 = vmax.f32 %v868_v52, 0.0  ;;  %v5920_v9 = vld [vmem:[#allocation2 + $0x120] ss:$36 sps:$4 sm:$0xff]   ;;  %1359 = vst [vmem:[#allocation2 + $0x18c] sm:$0xf] %v1145_v62  ;;  %5717 = vmatpush3.bf16.msra.mxu0 %v6989_v43 }
 0x162   : > { %v1562_v10 = vrot.slane %v1561_v55, 4  ;;  %1834 = vst [vmem:[#allocation2 + $0x150] sm:$0xf] %v1145_v62  ;;  %2102 = vst [vmem:[#allocation2 + $0x114] sm:$0xf] %v1145_v62  ;;  %v7006_v11 = vrot.slane %v1147_v56, 7  ;;  %3826 = vmatmul.mubr.bf16.gmra.mxu1 %v5920_v9  ;;  %5718 = vmatprep.subr.bf16.mxu0 %v6999_v61 }
 0x163   : > { %v1563_v12 = vrot.slane %v1147_v56, 4  ;;  %v1564_v13 = vrot.slane %v1150_v57, 5  ;;  %v5210_v14 = vpack.c.bf16 %v899_v6, %v899_v6  ;;  %v7009_v15 = vpack.c.bf16 %v900_v7, %v900_v7  ;;  %v5922_v17 = vld [vmem:[#allocation2 + $0xec] ss:$36 sps:$4 sm:$0xff]   ;;  %v1364_v37 = vld [vmem:[#allocation2 + $0x1f8] sm:$0xf] }
 0x164   : > { %v901_v5 = vmax.f32 %v7004_v8, 0.0  ;;  %v5924_v18 = vld [vmem:[#allocation2 + $0xe8] ss:$36 sps:$4 sm:$0xff]   ;;  %v1702_v19 = vsel %vm6862_vm15, %v1562_v10, %v1701_v49  ;;  %v1990_v20 = vsel %vm6862_vm15, %v1562_v10, %v1989_v50  ;;  %v2243_v22 = vsel %vm6862_vm15, %v1562_v10, %v2242_v51  ;;  %4139 = vmatprep.mubr.bf16.mxu0 %v5922_v17  ;;  %v1839_v38 = vld [vmem:[#allocation2 + $0x1bc] sm:$0xf]  ;;  %v744_v49 = vpop.f32.mrf.mxu0 }
 0x165   : > { %v1152_v23 = vor.u32 %v1150_v57, %v7006_v11  ;;  %1703 = vst [vmem:[#allocation2 + $0x194] sm:$0xf] %v1702_v19  ;;  %1991 = vst [vmem:[#allocation2 + $0x158] sm:$0xf] %v1990_v20  ;;  %v1153_v25 = vrot.slane %v7006_v11, 4  ;;  %v1565_v0 = vor.u32 %v1564_v13, %v1563_v12  ;;  %v1155_v26 = vshrl.u32 %v5210_v14, 16  ;;  %4140 = vmatmul.mubr.bf16.gmra.mxu0 %v5924_v18 }
 0x166   : > { %2244 = vst [vmem:[#allocation2 + $0x11c] sm:$0xf] %v2243_v22  ;;  %v1158_v27 = vshll.u32 %v5210_v14, 16  ;;  %1443 = vst [vmem:[#allocation2 + $0x1d8] sm:$0xf] %v5210_v14  ;;  %v1163_v31 = vshrl.u32 %v7009_v15, 16  ;;  %v5212_v48 = vpack.c.bf16 %v901_v5, %v901_v5  ;;  %5719 = vmatpush3.bf16.msra.mxu0 %v6999_v61 }
 0x167   : > { %1892 = vst [vmem:[#allocation2 + $0x19c] sm:$0xf] %v5210_v14  ;;  %2158 = vst [vmem:[#allocation2 + $0x160] sm:$0xf] %v5210_v14  ;;  %v1361_v28 = vsel %vm6825_vm9, %v1152_v23, %v1360_v1  ;;  %v1836_v29 = vsel %vm6825_vm9, %v1152_v23, %v1835_v2  ;;  %v2104_v30 = vsel %vm6825_vm9, %v1152_v23, %v2103_v4  ;;  %v1566_v33 = vrot.slane %v1565_v0, 4  ;;  %v747_v2 = vpop.f32.mrf.mxu0 }
 0x168   : > { %1444 = vst [vmem:[#allocation2 + $0x1fc] sm:$0xf] %v7009_v15  ;;  %1893 = vst [vmem:[#allocation2 + $0x1c0] sm:$0xf] %v7009_v15  ;;  %v1157_v34 = vrot.slane %v1155_v26, 7  ;;  %v1567_v35 = vrot.slane %v1158_v27, 5 }
 0x169   : > { %2159 = vst [vmem:[#allocation2 + $0x184] sm:$0xf] %v7009_v15  ;;  %1362 = vst [vmem:[#allocation2 + $0x1b0] sm:$0xf] %v1361_v28  ;;  %v1569_v36 = vrot.slane %v1155_v26, 4  ;;  %v7035_v42 = vrot.slane %v1163_v31, 7  ;;  %v749_v46 = vpop.f32.mrf.mxu0 }
 0x16a   : > { %1837 = vst [vmem:[#allocation2 + $0x174] sm:$0xf] %v1836_v29  ;;  %2105 = vst [vmem:[#allocation2 + $0x138] sm:$0xf] %v2104_v30  ;;  %v2107_v39 = vld [vmem:[#allocation2 + $0x180] sm:$0xf]  ;;  %v1160_v50 = vor.u32 %v1158_v27, %v1157_v34  ;;  %v1568_v51 = vsel %vm6838_vm13, %v1566_v33, %v1567_v35 }
 0x16b   : > { %v1705_v40 = vld [vmem:[#allocation2 + $0x1dc] sm:$0xf]  ;;  %v1993_v41 = vld [vmem:[#allocation2 + $0x1a0] sm:$0xf]  ;;  %v1166_v43 = vshll.u32 %v7009_v15, 16  ;;  %v1572_v45 = vrot.slane %v1163_v31, 4  ;;  %v1570_v52 = vor.u32 %v1569_v36, %v1567_v35  ;;  %v750_v22 = vpop.f32.mrf.mxu0 }
 0x16c   : > { %v7043_v53 = vld [vmem:[%s7863_s4] ss:$0 sm:$0xff]  ;;  %v5925_v55 = vld [vmem:[#allocation2 + $0x16c] ss:$36 sps:$4 sm:$0xff]   ;;  %1704 = vst [vmem:[#allocation2 + $0x1b8] sm:$0xf] %v1568_v51  ;;  %v1161_v4 = vsel %vm6850_vm14, %v1153_v25, %v1160_v50 }
 0x16d   : > { %v870_v54 = vadd.f32 %v7043_v53, %v831_v16  ;;  %v5927_v56 = vld [vmem:[#allocation2 + $0x168] ss:$36 sps:$4 sm:$0xff]   ;;  %1992 = vst [vmem:[#allocation2 + $0x17c] sm:$0xf] %v1568_v51  ;;  %2245 = vst [vmem:[#allocation2 + $0x140] sm:$0xf] %v1568_v51  ;;  %v1168_v58 = vor.u32 %v1166_v43, %v7035_v42  ;;  %3833 = vmatprep.mubr.bf16.mxu1 %v5925_v55  ;;  %v752_v35 = vpop.f32.mrf.mxu0 }
 0x16e   : > { %v2246_v57 = vld [vmem:[#allocation2 + $0x164] sm:$0xf]  ;;  %v1169_v60 = vrot.slane %v7035_v42, 4  ;;  %v1573_v62 = vrot.slane %v1166_v43, 5  ;;  %v1171_v1 = vshrl.u32 %v5212_v48, 16  ;;  %v1571_v6 = vrot.slane %v1570_v52, 4  ;;  %3834 = vmatmul.mubr.bf16.gmra.mxu1 %v5927_v56 }
 0x16f   : > { %1445 = vst [vmem:[#allocation2 + $0x220] sm:$0xf] %v5212_v48  ;;  %1894 = vst [vmem:[#allocation2 + $0x1e4] sm:$0xf] %v5212_v48  ;;  %v1174_v7 = vshll.u32 %v5212_v48, 16  ;;  %v902_v61 = vmax.f32 %v870_v54, 0.0  ;;  %v1365_v8 = vsel %vm6825_vm9, %v1168_v58, %v1364_v37  ;;  %v1840_v10 = vsel %vm6825_vm9, %v1168_v58, %v1839_v38  ;;  %v755_v49 = vpop.f32.mrf.mxu0 }
 0x170   : > { %2160 = vst [vmem:[#allocation2 + $0x1a8] sm:$0xf] %v5212_v48  ;;  %1363 = vst [vmem:[#allocation2 + $0x1d4] sm:$0xf] %v1161_v4  ;;  %v1574_v9 = vor.u32 %v1573_v62, %v1572_v45  ;;  %v2108_v11 = vsel %vm6825_vm9, %v1168_v58, %v2107_v39  ;;  %v5928_v12 = vld [vmem:[#allocation2 + $0x134] ss:$36 sps:$4 sm:$0xff]   ;;  %v1706_v14 = vsel %vm6862_vm15, %v1571_v6, %v1705_v40 }
 0x171   : > { %1838 = vst [vmem:[#allocation2 + $0x198] sm:$0xf] %v1161_v4  ;;  %2106 = vst [vmem:[#allocation2 + $0x15c] sm:$0xf] %v1161_v4  ;;  %v5930_v13 = vld [vmem:[#allocation2 + $0x130] ss:$36 sps:$4 sm:$0xff]   ;;  %v1994_v15 = vsel %vm6862_vm15, %v1571_v6, %v1993_v41  ;;  %v2247_v5 = vsel %vm6862_vm15, %v1571_v6, %v2246_v57  ;;  %v5213_v20 = vpack.c.bf16 %v902_v61, %v902_v61  ;;  %4147 = vmatprep.mubr.bf16.mxu0 %v5928_v12 }
 0x172   : > { %1366 = vst [vmem:[#allocation2 + $0x1f8] sm:$0xf] %v1365_v8  ;;  %1841 = vst [vmem:[#allocation2 + $0x1bc] sm:$0xf] %v1840_v10  ;;  %v1173_v16 = vrot.slane %v1171_v1, 7  ;;  %v1575_v17 = vrot.slane %v1574_v9, 4  ;;  %4148 = vmatmul.mubr.bf16.gmra.mxu0 %v5930_v13 }
 0x173   : > { %2109 = vst [vmem:[#allocation2 + $0x180] sm:$0xf] %v2108_v11  ;;  %1707 = vst [vmem:[#allocation2 + $0x1dc] sm:$0xf] %v1706_v14  ;;  %v1576_v18 = vrot.slane %v1174_v7, 5  ;;  %v1578_v19 = vrot.slane %v1171_v1, 4  ;;  %v757_v1 = vpop.f32.mrf.mxu0 }
 0x174   : > { %1995 = vst [vmem:[#allocation2 + $0x1a0] sm:$0xf] %v1994_v15  ;;  %2248 = vst [vmem:[#allocation2 + $0x164] sm:$0xf] %v2247_v5  ;;  %v1176_v23 = vor.u32 %v1174_v7, %v1173_v16  ;;  %v1709_v24 = vld [vmem:[#allocation2 + $0x224] sm:$0xf] }
 0x175   : > { %v7066_v25 = vld [vmem:[%s7862_s3] ss:$0 sm:$0xff]  ;;  %v1577_v28 = vsel %vm6838_vm13, %v1575_v17, %v1576_v18  ;;  %v1579_v29 = vor.u32 %v1578_v19, %v1576_v18  ;;  %v1997_v30 = vld [vmem:[#allocation2 + $0x1e8] sm:$0xf]  ;;  %v2250_v31 = vld [vmem:[#allocation2 + $0x1ac] sm:$0xf]  ;;  %v7096_v13 = vpop.f32.mrf.mxu0 }
 0x176   : > { %v832_v0 = vmul.f32 %v7066_v25, %v7032_v32  ;;  %v833_v26 = vmul.f32 %v7066_v25, %v747_v2  ;;  %v834_v27 = vmul.f32 %v7066_v25, %v750_v22  ;;  %v1179_v33 = vshrl.u32 %v5213_v20, 16  ;;  %1446 = vst [vmem:[#allocation2 + $0x244] sm:$0xf] %v5213_v20  ;;  %1895 = vst [vmem:[#allocation2 + $0x208] sm:$0xf] %v5213_v20 }
 0x177   : > { %v1182_v34 = vshll.u32 %v5213_v20, 16  ;;  %2161 = vst [vmem:[#allocation2 + $0x1cc] sm:$0xf] %v5213_v20  ;;  %v1177_v32 = vsel %vm6850_vm14, %v1169_v60, %v1176_v23  ;;  %1708 = vst [vmem:[#allocation2 + $0x200] sm:$0xf] %v1577_v28  ;;  %v1580_v41 = vrot.slane %v1579_v29, 4  ;;  %v835_v55 = vmul.f32 %v7066_v25, %v755_v49  ;;  %v760_v23 = vpop.f32.mrf.mxu0 }
 0x178   : > { %1996 = vst [vmem:[#allocation2 + $0x1c4] sm:$0xf] %v1577_v28  ;;  %2249 = vst [vmem:[#allocation2 + $0x188] sm:$0xf] %v1577_v28  ;;  %v1368_v36 = vld [vmem:[#allocation2 + $0x240] sm:$0xf]  ;;  %v871_v38 = vadd.f32 %v7043_v53, %v832_v0  ;;  %v872_v39 = vadd.f32 %v7043_v53, %v833_v26  ;;  %v873_v40 = vadd.f32 %v7043_v53, %v834_v27 }
 0x179   : > { %v1843_v37 = vld [vmem:[#allocation2 + $0x204] sm:$0xf]  ;;  %1367 = vst [vmem:[#allocation2 + $0x21c] sm:$0xf] %v1177_v32  ;;  %1842 = vst [vmem:[#allocation2 + $0x1e0] sm:$0xf] %v1177_v32  ;;  %v1710_v56 = vsel %vm6862_vm15, %v1580_v41, %v1709_v24  ;;  %v1998_v57 = vsel %vm6862_vm15, %v1580_v41, %v1997_v30  ;;  %v2251_v58 = vsel %vm6862_vm15, %v1580_v41, %v2250_v31 }
 0x17a   : > { %2110 = vst [vmem:[#allocation2 + $0x1a4] sm:$0xf] %v1177_v32  ;;  %v7079_v42 = vrot.slane %v1179_v33, 7  ;;  %v1581_v43 = vrot.slane %v1179_v33, 4  ;;  %v1582_v45 = vrot.slane %v1182_v34, 5  ;;  %v903_v50 = vmax.f32 %v871_v38, 0.0 }
 0x17b   : > { %v2111_v48 = vld [vmem:[#allocation2 + $0x1c8] sm:$0xf]  ;;  %v904_v51 = vmax.f32 %v872_v39, 0.0  ;;  %v905_v52 = vmax.f32 %v873_v40, 0.0  ;;  %v5931_v54 = vld [vmem:[#allocation2 + $0x1b4] ss:$36 sps:$4 sm:$0xff]   ;;  %v7099_v22 = vadd.f32 %v7043_v53, %v835_v55 }
 0x17c   : > { %v1184_v60 = vor.u32 %v1182_v34, %v7079_v42  ;;  %v5934_v62 = vld [vmem:[#allocation2 + $0x1b0] ss:$36 sps:$4 sm:$0xff]   ;;  %1711 = vst [vmem:[#allocation2 + $0x224] sm:$0xf] %v1710_v56  ;;  %1999 = vst [vmem:[#allocation2 + $0x1e8] sm:$0xf] %v1998_v57  ;;  %v1583_v4 = vor.u32 %v1582_v45, %v1581_v43  ;;  %v5214_v6 = vpack.c.bf16 %v903_v50, %v903_v50  ;;  %3841 = vmatprep.mubr.bf16.mxu1 %v5931_v54 }
 0x17d   : > { %2252 = vst [vmem:[#allocation2 + $0x1ac] sm:$0xf] %v2251_v58  ;;  %v1185_v2 = vrot.slane %v7079_v42, 4  ;;  %v5215_v7 = vpack.c.bf16 %v904_v51, %v904_v51  ;;  %v5936_v61 = vld [vmem:[#allocation2 + $0x17c] ss:$36 sps:$4 sm:$0xff]   ;;  %v5216_v12 = vpack.c.bf16 %v905_v52, %v905_v52  ;;  %3842 = vmatmul.mubr.bf16.gmra.mxu1 %v5934_v62 }
 0x17e   : > { %v5938_v8 = vld [vmem:[#allocation2 + $0x178] ss:$36 sps:$4 sm:$0xff]   ;;  %v1369_v9 = vsel %vm6825_vm9, %v1184_v60, %v1368_v36  ;;  %v1844_v10 = vsel %vm6825_vm9, %v1184_v60, %v1843_v37  ;;  %v2112_v11 = vsel %vm6825_vm9, %v1184_v60, %v2111_v48  ;;  %v1584_v46 = vrot.slane %v1583_v4, 4  ;;  %1447 = vst [vmem:[#allocation2 + $0x268] sm:$0xf] %v5214_v6  ;;  %4155 = vmatprep.mubr.bf16.mxu0 %v5936_v61  ;;  %v763_v36 = vpop.f32.mrf.mxu0 }
 0x17f   : > { %1370 = vst [vmem:[#allocation2 + $0x240] sm:$0xf] %v1369_v9  ;;  %1845 = vst [vmem:[#allocation2 + $0x204] sm:$0xf] %v1844_v10  ;;  %v1187_v14 = vshrl.u32 %v5214_v6, 16  ;;  %v1190_v15 = vshll.u32 %v5214_v6, 16  ;;  %4156 = vmatmul.mubr.bf16.gmra.mxu0 %v5938_v8 }
 0x180   : > { %2113 = vst [vmem:[#allocation2 + $0x1c8] sm:$0xf] %v2112_v11  ;;  %1896 = vst [vmem:[#allocation2 + $0x22c] sm:$0xf] %v5214_v6  ;;  %v1195_v5 = vshrl.u32 %v5215_v7, 16  ;;  %v1198_v16 = vshll.u32 %v5215_v7, 16  ;;  %v765_v52 = vpop.f32.mrf.mxu0 }
 0x181   : > { %2162 = vst [vmem:[#allocation2 + $0x1f0] sm:$0xf] %v5214_v6  ;;  %1448 = vst [vmem:[#allocation2 + $0x28c] sm:$0xf] %v5215_v7  ;;  %v1372_v17 = vld [vmem:[#allocation2 + $0x288] sm:$0xf] }
 0x182   : > { %1897 = vst [vmem:[#allocation2 + $0x250] sm:$0xf] %v5215_v7  ;;  %2163 = vst [vmem:[#allocation2 + $0x214] sm:$0xf] %v5215_v7  ;;  %v1847_v18 = vld [vmem:[#allocation2 + $0x24c] sm:$0xf]  ;;  %v766_v6 = vpop.f32.mrf.mxu0 }
 0x183   : > { %v1203_v19 = vshrl.u32 %v5216_v12, 16  ;;  %v1206_v20 = vshll.u32 %v5216_v12, 16  ;;  %1449 = vst [vmem:[#allocation2 + $0x2b0] sm:$0xf] %v5216_v12  ;;  %1898 = vst [vmem:[#allocation2 + $0x274] sm:$0xf] %v5216_v12 }
 0x184   : > { %2164 = vst [vmem:[#allocation2 + $0x238] sm:$0xf] %v5216_v12  ;;  %v1189_v24 = vrot.slane %v1187_v14, 7  ;;  %v1585_v0 = vrot.slane %v1190_v15, 5  ;;  %v1587_v26 = vrot.slane %v1187_v14, 4  ;;  %v1197_v27 = vrot.slane %v1195_v5, 7 }
 0x185   : > { %v1713_v28 = vld [vmem:[#allocation2 + $0x26c] sm:$0xf]  ;;  %v2001_v29 = vld [vmem:[#allocation2 + $0x230] sm:$0xf]  ;;  %v2254_v30 = vld [vmem:[#allocation2 + $0x1f4] sm:$0xf]  ;;  %v837_v14 = vmul.f32 %v7066_v25, %v763_v36 }
 0x186   : > { %v1590_v31 = vrot.slane %v1195_v5, 4  ;;  %v1591_v33 = vrot.slane %v1198_v16, 5  ;;  %v1205_v34 = vrot.slane %v1203_v19, 7  ;;  %v1594_v35 = vrot.slane %v1206_v20, 5  ;;  %v5939_v32 = vld [vmem:[#allocation2 + $0x1fc] ss:$36 sps:$4 sm:$0xff]  }
 0x187   : > { %v1192_v37 = vor.u32 %v1190_v15, %v1189_v24  ;;  %v1586_v38 = vsel %vm6838_vm13, %v1584_v46, %v1585_v0  ;;  %v1588_v39 = vor.u32 %v1587_v26, %v1585_v0  ;;  %v1200_v40 = vor.u32 %v1198_v16, %v1197_v27  ;;  %v2115_v41 = vld [vmem:[#allocation2 + $0x210] sm:$0xf]  ;;  %v5941_v43 = vld [vmem:[#allocation2 + $0x1f8] ss:$36 sps:$4 sm:$0xff]   ;;  %3849 = vmatprep.mubr.bf16.mxu1 %v5939_v32  ;;  %v5942_v51 = vld [vmem:[#allocation2 + $0x1c4] ss:$36 sps:$4 sm:$0xff]   ;;  %v768_v15 = vpop.f32.mrf.mxu0 }
 0x188   : > { %1712 = vst [vmem:[#allocation2 + $0x248] sm:$0xf] %v1586_v38  ;;  %2000 = vst [vmem:[#allocation2 + $0x20c] sm:$0xf] %v1586_v38  ;;  %v1201_v45 = vrot.slane %v1197_v27, 4  ;;  %v1592_v48 = vor.u32 %v1591_v33, %v1590_v31  ;;  %v1208_v49 = vor.u32 %v1206_v20, %v1205_v34  ;;  %v1596_v50 = vrot.slane %v1203_v19, 4  ;;  %3850 = vmatmul.mubr.bf16.gmra.mxu1 %v5941_v43 }
 0x189   : > { %2253 = vst [vmem:[#allocation2 + $0x1d0] sm:$0xf] %v1586_v38  ;;  %v1193_v54 = vsel %vm6850_vm14, %v1185_v2, %v1192_v37  ;;  %v1589_v55 = vrot.slane %v1588_v39, 4  ;;  %v1373_v56 = vsel %vm6825_vm9, %v1200_v40, %v1372_v17  ;;  %v1848_v57 = vsel %vm6825_vm9, %v1200_v40, %v1847_v18  ;;  %v5944_v58 = vld [vmem:[#allocation2 + $0x1c0] ss:$36 sps:$4 sm:$0xff]   ;;  %4163 = vmatprep.mubr.bf16.mxu0 %v5942_v51  ;;  %v771_v20 = vpop.f32.mrf.mxu0 }
 0x18a   : > { %1371 = vst [vmem:[#allocation2 + $0x264] sm:$0xf] %v1193_v54  ;;  %1846 = vst [vmem:[#allocation2 + $0x228] sm:$0xf] %v1193_v54  ;;  %v1593_v60 = vrot.slane %v1592_v48, 4  ;;  %v2116_v42 = vsel %vm6825_vm9, %v1200_v40, %v2115_v41  ;;  %v1209_v62 = vsel %vm6850_vm14, %v1201_v45, %v1208_v49  ;;  %v1597_v1 = vor.u32 %v1596_v50, %v1594_v35 }
 0x18b   : > { %2114 = vst [vmem:[#allocation2 + $0x1ec] sm:$0xf] %v1193_v54  ;;  %1374 = vst [vmem:[#allocation2 + $0x288] sm:$0xf] %v1373_v56  ;;  %v1717_v2 = vld [vmem:[#allocation2 + $0x2b4] sm:$0xf]  ;;  %v1714_v7 = vsel %vm6862_vm15, %v1589_v55, %v1713_v28  ;;  %v2002_v61 = vsel %vm6862_vm15, %v1589_v55, %v2001_v29  ;;  %v2255_v8 = vsel %vm6862_vm15, %v1589_v55, %v2254_v30  ;;  %4164 = vmatmul.mubr.bf16.gmra.mxu0 %v5944_v58  ;;  %v773_v31 = vpop.f32.mrf.mxu0 }
 0x18c   : > { %1849 = vst [vmem:[#allocation2 + $0x24c] sm:$0xf] %v1848_v57  ;;  %v2005_v4 = vld [vmem:[#allocation2 + $0x278] sm:$0xf]  ;;  %2117 = vst [vmem:[#allocation2 + $0x210] sm:$0xf] %v2116_v42  ;;  %v1595_v11 = vsel %vm6838_vm13, %v1593_v60, %v1594_v35  ;;  %v836_v46 = vmul.f32 %v7066_v25, %v7096_v13  ;;  %v838_v16 = vmul.f32 %v7066_v25, %v766_v6 }
 0x18d   : > { %1375 = vst [vmem:[#allocation2 + $0x2ac] sm:$0xf] %v1209_v62  ;;  %1850 = vst [vmem:[#allocation2 + $0x270] sm:$0xf] %v1209_v62  ;;  %v2258_v9 = vld [vmem:[#allocation2 + $0x23c] sm:$0xf]  ;;  %v876_v24 = vadd.f32 %v7043_v53, %v837_v14  ;;  %v839_v30 = vmul.f32 %v7066_v25, %v771_v20  ;;  %v7141_v41 = vpop.f32.mrf.mxu0 }
 0x18e   : > { %2118 = vst [vmem:[#allocation2 + $0x234] sm:$0xf] %v1209_v62  ;;  %v906_v10 = vmax.f32 %v7099_v22, 0.0  ;;  %1715 = vst [vmem:[#allocation2 + $0x26c] sm:$0xf] %v1714_v7  ;;  %v1598_v12 = vrot.slane %v1597_v1, 4  ;;  %v875_v13 = vadd.f32 %v7043_v53, %v836_v46  ;;  %v877_v0 = vadd.f32 %v7043_v53, %v838_v16 }
 0x18f   : > { %2003 = vst [vmem:[#allocation2 + $0x230] sm:$0xf] %v2002_v61  ;;  %2256 = vst [vmem:[#allocation2 + $0x1f4] sm:$0xf] %v2255_v8  ;;  %v1376_v26 = vld [vmem:[#allocation2 + $0x2d0] sm:$0xf]  ;;  %v878_v40 = vadd.f32 %v7043_v53, %v839_v30  ;;  %v776_v57 = vpop.f32.mrf.mxu0 }
 0x190   : > { %1716 = vst [vmem:[#allocation2 + $0x290] sm:$0xf] %v1595_v11  ;;  %2004 = vst [vmem:[#allocation2 + $0x254] sm:$0xf] %v1595_v11  ;;  %v5217_v5 = vpack.c.bf16 %v906_v10, %v906_v10  ;;  %v1718_v17 = vsel %vm6862_vm15, %v1598_v12, %v1717_v2  ;;  %v2006_v18 = vsel %vm6862_vm15, %v1598_v12, %v2005_v4  ;;  %v1851_v27 = vld [vmem:[#allocation2 + $0x294] sm:$0xf] }
 0x191   : > { %2257 = vst [vmem:[#allocation2 + $0x218] sm:$0xf] %v1595_v11  ;;  %v2259_v19 = vsel %vm6862_vm15, %v1598_v12, %v2258_v9  ;;  %1719 = vst [vmem:[#allocation2 + $0x2b4] sm:$0xf] %v1718_v17  ;;  %v2119_v28 = vld [vmem:[#allocation2 + $0x258] sm:$0xf]  ;;  %v7162_v61 = vpop.f32.mrf.mxu0 }
 0x192   : > { %2007 = vst [vmem:[#allocation2 + $0x278] sm:$0xf] %v2006_v18  ;;  %2260 = vst [vmem:[#allocation2 + $0x23c] sm:$0xf] %v2259_v19  ;;  %v1211_v22 = vshrl.u32 %v5217_v5, 16  ;;  %v1214_v23 = vshll.u32 %v5217_v5, 16 }
 0x193   : > { %1450 = vst [vmem:[#allocation2 + $0x2d4] sm:$0xf] %v5217_v5  ;;  %1899 = vst [vmem:[#allocation2 + $0x298] sm:$0xf] %v5217_v5  ;;  %v907_v29 = vmax.f32 %v875_v13, 0.0  ;;  %v908_v32 = vmax.f32 %v876_v24, 0.0 }
 0x194   : > { %2165 = vst [vmem:[#allocation2 + $0x25c] sm:$0xf] %v5217_v5  ;;  %v7138_v33 = vrot.slane %v1211_v22, 7  ;;  %v1599_v34 = vrot.slane %v1211_v22, 4  ;;  %v1600_v35 = vrot.slane %v1214_v23, 5  ;;  %v909_v37 = vmax.f32 %v877_v0, 0.0 }
 0x195   : > { %v5218_v36 = vpack.c.bf16 %v907_v29, %v907_v29  ;;  %v5945_v38 = vld [vmem:[#allocation2 + $0x244] ss:$36 sps:$4 sm:$0xff]   ;;  %v7145_v49 = vpack.c.bf16 %v908_v32, %v908_v32  ;;  %v910_v56 = vmax.f32 %v878_v40, 0.0  ;;  %v5953_v58 = vld [vmem:[#allocation2 + $0x28c] ss:$36 sps:$4 sm:$0xff]  }
 0x196   : > { %v5948_v39 = vld [vmem:[#allocation2 + $0x240] ss:$36 sps:$4 sm:$0xff]   ;;  %v1216_v43 = vor.u32 %v1214_v23, %v7138_v33  ;;  %v1217_v45 = vrot.slane %v7138_v33, 4  ;;  %v1601_v48 = vor.u32 %v1600_v35, %v1599_v34  ;;  %v5950_v50 = vld [vmem:[#allocation2 + $0x20c] ss:$36 sps:$4 sm:$0xff]   ;;  %v7147_v55 = vpack.c.bf16 %v909_v37, %v909_v37  ;;  %3857 = vmatprep.mubr.bf16.mxu1 %v5945_v38  ;;  %v781_v23 = vpop.f32.mrf.mxu0 }
 0x197   : > { %v5952_v51 = vld [vmem:[#allocation2 + $0x208] ss:$36 sps:$4 sm:$0xff]   ;;  %v1219_v52 = vshrl.u32 %v5218_v36, 16  ;;  %v1222_v54 = vshll.u32 %v5218_v36, 16  ;;  %1451 = vst [vmem:[#allocation2 + $0x2f8] sm:$0xf] %v5218_v36  ;;  %3858 = vmatmul.mubr.bf16.gmra.mxu1 %v5948_v39  ;;  %4171 = vmatprep.mubr.bf16.mxu0 %v5950_v50  ;;  %v7167_v15 = vpack.c.bf16 %v910_v56, %v910_v56 }
 0x198   : > { %1900 = vst [vmem:[#allocation2 + $0x2bc] sm:$0xf] %v5218_v36  ;;  %2166 = vst [vmem:[#allocation2 + $0x280] sm:$0xf] %v5218_v36  ;;  %v1377_v60 = vsel %vm6825_vm9, %v1216_v43, %v1376_v26  ;;  %v1602_v42 = vrot.slane %v1601_v48, 4  ;;  %v1852_v62 = vsel %vm6825_vm9, %v1216_v43, %v1851_v27  ;;  %v2120_v1 = vsel %vm6825_vm9, %v1216_v43, %v2119_v28  ;;  %v782_v35 = vpop.f32.mrf.mxu0 }
 0x199   : > { %1452 = vst [vmem:[#allocation2 + $0x31c] sm:$0xf] %v7145_v49  ;;  %1901 = vst [vmem:[#allocation2 + $0x2e0] sm:$0xf] %v7145_v49  ;;  %v1221_v2 = vrot.slane %v1219_v52, 7  ;;  %v1603_v4 = vrot.slane %v1222_v54, 5  ;;  %4172 = vmatmul.mubr.bf16.gmra.mxu0 %v5952_v51  ;;  %3865 = vmatprep.mubr.bf16.mxu1 %v5953_v58 }
 0x19a   : > { %2167 = vst [vmem:[#allocation2 + $0x2a4] sm:$0xf] %v7145_v49  ;;  %1378 = vst [vmem:[#allocation2 + $0x2d0] sm:$0xf] %v1377_v60  ;;  %v1605_v6 = vrot.slane %v1219_v52, 4  ;;  %v1227_v7 = vshrl.u32 %v7145_v49, 16 }
 0x19b   : > { %1853 = vst [vmem:[#allocation2 + $0x294] sm:$0xf] %v1852_v62  ;;  %2121 = vst [vmem:[#allocation2 + $0x258] sm:$0xf] %v2120_v1  ;;  %v1721_v8 = vld [vmem:[#allocation2 + $0x2fc] sm:$0xf]  ;;  %v1224_v16 = vor.u32 %v1222_v54, %v1221_v2  ;;  %v1604_v17 = vsel %vm6838_vm13, %v1602_v42, %v1603_v4 }
 0x19c   : > { %1453 = vst [vmem:[#allocation2 + $0x340] sm:$0xf] %v7147_v55  ;;  %1902 = vst [vmem:[#allocation2 + $0x304] sm:$0xf] %v7147_v55  ;;  %v2009_v9 = vld [vmem:[#allocation2 + $0x2c0] sm:$0xf]  ;;  %v1606_v18 = vor.u32 %v1605_v6, %v1603_v4  ;;  %v840_v6 = vmul.f32 %v7066_v25, %v7141_v41 }
 0x19d   : > { %2168 = vst [vmem:[#allocation2 + $0x2c8] sm:$0xf] %v7147_v55  ;;  %v2262_v10 = vld [vmem:[#allocation2 + $0x284] sm:$0xf]  ;;  %v1230_v11 = vshll.u32 %v7145_v49, 16  ;;  %v1235_v46 = vshrl.u32 %v7147_v55, 16  ;;  %v1225_v28 = vsel %vm6850_vm14, %v1217_v45, %v1224_v16  ;;  %v784_v45 = vpop.f32.mrf.mxu0 }
 0x19e   : > { %v1380_v12 = vld [vmem:[#allocation2 + $0x318] sm:$0xf]  ;;  %v1238_v14 = vshll.u32 %v7147_v55, 16  ;;  %v1229_v19 = vrot.slane %v1227_v7, 7  ;;  %v1855_v13 = vld [vmem:[#allocation2 + $0x2dc] sm:$0xf] }
 0x19f   : > { %v5956_v5 = vld [vmem:[#allocation2 + $0x254] ss:$36 sps:$4 sm:$0xff]   ;;  %v2123_v20 = vld [vmem:[#allocation2 + $0x2a0] sm:$0xf]  ;;  %v5955_v22 = vld [vmem:[#allocation2 + $0x288] ss:$36 sps:$4 sm:$0xff]   ;;  %v787_v62 = vpop.f32.mrf.mxu0 }
 0x1a0   : > { %1720 = vst [vmem:[#allocation2 + $0x2d8] sm:$0xf] %v1604_v17  ;;  %2008 = vst [vmem:[#allocation2 + $0x29c] sm:$0xf] %v1604_v17  ;;  %v1608_v24 = vrot.slane %v1227_v7, 4  ;;  %v1609_v0 = vrot.slane %v1230_v11, 5  ;;  %4179 = vmatprep.mubr.bf16.mxu0 %v5956_v5  ;;  %v1232_v30 = vor.u32 %v1230_v11, %v1229_v19  ;;  %3866 = vmatmul.mubr.bf16.gmra.mxu1 %v5955_v22 }
 0x1a1   : > { %2261 = vst [vmem:[#allocation2 + $0x260] sm:$0xf] %v1604_v17  ;;  %v1237_v26 = vrot.slane %v1235_v46, 7  ;;  %v1612_v27 = vrot.slane %v1238_v14, 5  ;;  %1454 = vst [vmem:[#allocation2 + $0x364] sm:$0xf] %v7167_v15  ;;  %v841_v7 = vmul.f32 %v7066_v25, %v7162_v61  ;;  %v843_v5 = vmul.f32 %v7066_v25, %v787_v62 }
 0x1a2   : > { %1903 = vst [vmem:[#allocation2 + $0x328] sm:$0xf] %v7167_v15  ;;  %2169 = vst [vmem:[#allocation2 + $0x2ec] sm:$0xf] %v7167_v15  ;;  %v1607_v29 = vrot.slane %v1606_v18, 4  ;;  %v1233_v31 = vrot.slane %v1229_v19, 4  ;;  %v1610_v32 = vor.u32 %v1609_v0, %v1608_v24  ;;  %v1381_v43 = vsel %vm6825_vm9, %v1232_v30, %v1380_v12  ;;  %v789_v12 = vpop.f32.mrf.mxu0 }
 0x1a3   : > { %v5958_v34 = vld [vmem:[#allocation2 + $0x250] ss:$36 sps:$4 sm:$0xff]   ;;  %1379 = vst [vmem:[#allocation2 + $0x2f4] sm:$0xf] %v1225_v28  ;;  %1854 = vst [vmem:[#allocation2 + $0x2b8] sm:$0xf] %v1225_v28  ;;  %v1240_v36 = vor.u32 %v1238_v14, %v1237_v26  ;;  %v1856_v49 = vsel %vm6825_vm9, %v1232_v30, %v1855_v13  ;;  %v2124_v50 = vsel %vm6825_vm9, %v1232_v30, %v2123_v20 }
 0x1a4   : > { %2122 = vst [vmem:[#allocation2 + $0x27c] sm:$0xf] %v1225_v28  ;;  %v1614_v37 = vrot.slane %v1235_v46, 4  ;;  %v1243_v38 = vshrl.u32 %v7167_v15, 16  ;;  %v1722_v39 = vsel %vm6862_vm15, %v1607_v29, %v1721_v8  ;;  %v2010_v33 = vsel %vm6862_vm15, %v1607_v29, %v2009_v9  ;;  %1382 = vst [vmem:[#allocation2 + $0x318] sm:$0xf] %v1381_v43  ;;  %4180 = vmatmul.mubr.bf16.gmra.mxu0 %v5958_v34  ;;  %v5248_v46 = vpop.f32.mrf.mxu1  ;;  %v790_v20 = vpop.f32.mrf.mxu0 }
 0x1a5   : > { %v2263_v40 = vsel %vm6862_vm15, %v1607_v29, %v2262_v10  ;;  %1723 = vst [vmem:[#allocation2 + $0x2fc] sm:$0xf] %v1722_v39  ;;  %2011 = vst [vmem:[#allocation2 + $0x2c0] sm:$0xf] %v2010_v33  ;;  %v1611_v48 = vrot.slane %v1610_v32, 4  ;;  %v1241_v51 = vsel %vm6850_vm14, %v1233_v31, %v1240_v36  ;;  %v1246_v58 = vshll.u32 %v7167_v15, 16 }
 0x1a6   : > { %2264 = vst [vmem:[#allocation2 + $0x284] sm:$0xf] %v2263_v40  ;;  %v1725_v52 = vld [vmem:[#allocation2 + $0x344] sm:$0xf]  ;;  %v2013_v54 = vld [vmem:[#allocation2 + $0x308] sm:$0xf]  ;;  %v1615_v56 = vor.u32 %v1614_v37, %v1612_v27  ;;  %v842_v8 = vmul.f32 %v7066_v25, %v782_v35  ;;  %v879_v14 = vadd.f32 %v7043_v53, %v840_v6  ;;  %v880_v15 = vadd.f32 %v7043_v53, %v841_v7  ;;  %v792_v31 = vpop.f32.mrf.mxu0  ;;  %v5249_v34 = vpop.f32.mrf.mxu1 }
 0x1a7   : > { %v2266_v55 = vld [vmem:[#allocation2 + $0x2cc] sm:$0xf]  ;;  %1857 = vst [vmem:[#allocation2 + $0x2dc] sm:$0xf] %v1856_v49  ;;  %2125 = vst [vmem:[#allocation2 + $0x2a0] sm:$0xf] %v2124_v50  ;;  %v1613_v1 = vsel %vm6838_vm13, %v1611_v48, %v1612_v27  ;;  %v882_v28 = vadd.f32 %v7043_v53, %v843_v5  ;;  %v844_v30 = vmul.f32 %v7066_v25, %v790_v20 }
 0x1a8   : > { %1383 = vst [vmem:[#allocation2 + $0x33c] sm:$0xf] %v1241_v51  ;;  %1858 = vst [vmem:[#allocation2 + $0x300] sm:$0xf] %v1241_v51  ;;  %v7193_v57 = vrot.slane %v1243_v38, 7  ;;  %v1617_v42 = vrot.slane %v1243_v38, 4  ;;  %v881_v41 = vadd.f32 %v7043_v53, %v842_v8  ;;  %v7223_v38 = vadd.f32 %v5249_v34, %v5248_v46  ;;  %v795_v45 = vpop.f32.mrf.mxu0 }
 0x1a9   : > { %2126 = vst [vmem:[#allocation2 + $0x2c4] sm:$0xf] %v1241_v51  ;;  %v1384_v60 = vld [vmem:[#allocation2 + $0x360] sm:$0xf]  ;;  %v1859_v2 = vld [vmem:[#allocation2 + $0x324] sm:$0xf]  ;;  %v7226_v50 = vadd.f32 %v7043_v53, %v844_v30  ;;  %v7229_v51 = vmul.f32 %v7066_v25, %v795_v45 }
 0x1aa   : > { %v2127_v4 = vld [vmem:[#allocation2 + $0x2e8] sm:$0xf]  ;;  %v1616_v9 = vrot.slane %v1615_v56, 4  ;;  %1724 = vst [vmem:[#allocation2 + $0x320] sm:$0xf] %v1613_v1  ;;  %v1248_v10 = vor.u32 %v1246_v58, %v7193_v57  ;;  %v1618_v11 = vrot.slane %v1246_v58, 5  ;;  %v797_v58 = vpop.f32.mrf.mxu0 }
 0x1ab   : > { %2012 = vst [vmem:[#allocation2 + $0x2e4] sm:$0xf] %v1613_v1  ;;  %2265 = vst [vmem:[#allocation2 + $0x2a8] sm:$0xf] %v1613_v1  ;;  %v5959_v19 = vld [vmem:[#allocation2 + $0x2d4] ss:$36 sps:$4 sm:$0xff]  }
 0x1ac   : > { %v1726_v61 = vsel %vm6862_vm15, %v1616_v9, %v1725_v52  ;;  %v2014_v16 = vsel %vm6862_vm15, %v1616_v9, %v2013_v54  ;;  %v2267_v17 = vsel %vm6862_vm15, %v1616_v9, %v2266_v55  ;;  %v1385_v18 = vsel %vm6825_vm9, %v1248_v10, %v1384_v60  ;;  %v5962_v13 = vld [vmem:[#allocation2 + $0x2d0] ss:$36 sps:$4 sm:$0xff]   ;;  %3873 = vmatprep.mubr.bf16.mxu1 %v5959_v19  ;;  %v5964_v29 = vld [vmem:[#allocation2 + $0x29c] ss:$36 sps:$4 sm:$0xff]   ;;  %v1388_v53 = vld [vmem:[#allocation2 + $0x3a8] sm:$0xf]  ;;  %v7233_v46 = vpop.f32.mrf.mxu0 }
 0x1ad   : > { %1727 = vst [vmem:[#allocation2 + $0x344] sm:$0xf] %v1726_v61  ;;  %2015 = vst [vmem:[#allocation2 + $0x308] sm:$0xf] %v2014_v16  ;;  %v1619_v22 = vor.u32 %v1618_v11, %v1617_v42  ;;  %v1860_v23 = vsel %vm6825_vm9, %v1248_v10, %v1859_v2  ;;  %v2128_v24 = vsel %vm6825_vm9, %v1248_v10, %v2127_v4  ;;  %v911_v0 = vmax.f32 %v879_v14, 0.0 }
 0x1ae   : > { %2268 = vst [vmem:[#allocation2 + $0x2cc] sm:$0xf] %v2267_v17  ;;  %1386 = vst [vmem:[#allocation2 + $0x360] sm:$0xf] %v1385_v18  ;;  %v912_v26 = vmax.f32 %v880_v15, 0.0  ;;  %v913_v27 = vmax.f32 %v881_v41, 0.0  ;;  %3874 = vmatmul.mubr.bf16.gmra.mxu1 %v5962_v13  ;;  %4187 = vmatprep.mubr.bf16.mxu0 %v5964_v29  ;;  %v846_v58 = vmul.f32 %v7066_v25, %v7233_v46 }
 0x1af   : > { %1861 = vst [vmem:[#allocation2 + $0x324] sm:$0xf] %v1860_v23  ;;  %2129 = vst [vmem:[#allocation2 + $0x2e8] sm:$0xf] %v2128_v24  ;;  %v1249_v35 = vrot.slane %v7193_v57, 4  ;;  %v5222_v32 = vpack.c.bf16 %v911_v0, %v911_v0  ;;  %v1620_v39 = vrot.slane %v1619_v22, 4  ;;  %v800_v22 = vpop.f32.mrf.mxu0 }
 0x1b0   : > { %v5966_v36 = vld [vmem:[#allocation2 + $0x298] ss:$36 sps:$4 sm:$0xff]   ;;  %v5223_v33 = vpack.c.bf16 %v912_v26, %v912_v26  ;;  %v5224_v40 = vpack.c.bf16 %v913_v27, %v913_v27  ;;  %v914_v43 = vmax.f32 %v882_v28, 0.0  ;;  %v1863_v1 = vld [vmem:[#allocation2 + $0x36c] sm:$0xf] }
 0x1b1   : > { %v5967_v37 = vld [vmem:[#allocation2 + $0x31c] ss:$36 sps:$4 sm:$0xff]   ;;  %v1251_v48 = vshrl.u32 %v5222_v32, 16  ;;  %v1254_v49 = vshll.u32 %v5222_v32, 16  ;;  %1455 = vst [vmem:[#allocation2 + $0x388] sm:$0xf] %v5222_v32  ;;  %4188 = vmatmul.mubr.bf16.gmra.mxu0 %v5966_v36  ;;  %v803_v30 = vpop.f32.mrf.mxu0 }
 0x1b2   : > { %1904 = vst [vmem:[#allocation2 + $0x34c] sm:$0xf] %v5222_v32  ;;  %2170 = vst [vmem:[#allocation2 + $0x310] sm:$0xf] %v5222_v32  ;;  %3881 = vmatprep.mubr.bf16.mxu1 %v5967_v37  ;;  %v1259_v52 = vshrl.u32 %v5223_v33, 16  ;;  %v1262_v54 = vshll.u32 %v5223_v33, 16  ;;  %v7231_v4 = vpack.c.bf16 %v914_v43, %v914_v43 }
 0x1b3   : > { %1456 = vst [vmem:[#allocation2 + $0x3ac] sm:$0xf] %v5223_v33  ;;  %1905 = vst [vmem:[#allocation2 + $0x370] sm:$0xf] %v5223_v33  ;;  %v1267_v55 = vshrl.u32 %v5224_v40, 16  ;;  %v1270_v56 = vshll.u32 %v5224_v40, 16  ;;  %v805_v45 = vpop.f32.mrf.mxu0 }
 0x1b4   : > { %2171 = vst [vmem:[#allocation2 + $0x334] sm:$0xf] %v5223_v33  ;;  %1457 = vst [vmem:[#allocation2 + $0x3d0] sm:$0xf] %v5224_v40  ;;  %v1253_v60 = vrot.slane %v1251_v48, 7  ;;  %v1621_v42 = vrot.slane %v1254_v49, 5 }
 0x1b5   : > { %1906 = vst [vmem:[#allocation2 + $0x394] sm:$0xf] %v5224_v40  ;;  %2172 = vst [vmem:[#allocation2 + $0x358] sm:$0xf] %v5224_v40  ;;  %v1623_v62 = vrot.slane %v1251_v48, 4  ;;  %v1261_v9 = vrot.slane %v1259_v52, 7 }
 0x1b6   : > { %v2131_v2 = vld [vmem:[#allocation2 + $0x330] sm:$0xf]  ;;  %v5969_v6 = vld [vmem:[#allocation2 + $0x318] ss:$36 sps:$4 sm:$0xff]   ;;  %v1729_v7 = vld [vmem:[#allocation2 + $0x38c] sm:$0xf]  ;;  %v1256_v14 = vor.u32 %v1254_v49, %v1253_v60  ;;  %v1622_v15 = vsel %vm6838_vm13, %v1620_v39, %v1621_v42 }
 0x1b7   : > { %v2017_v8 = vld [vmem:[#allocation2 + $0x350] sm:$0xf]  ;;  %v1626_v10 = vrot.slane %v1259_v52, 4  ;;  %v1627_v11 = vrot.slane %v1262_v54, 5  ;;  %v1269_v12 = vrot.slane %v1267_v55, 7  ;;  %v1624_v41 = vor.u32 %v1623_v62, %v1621_v42  ;;  %3882 = vmatmul.mubr.bf16.gmra.mxu1 %v5969_v6 }
 0x1b8   : > { %v1630_v5 = vrot.slane %v1270_v56, 5  ;;  %1458 = vst [vmem:[#allocation2 + $0x3f4] sm:$0xf] %v7231_v4  ;;  %1907 = vst [vmem:[#allocation2 + $0x3b8] sm:$0xf] %v7231_v4  ;;  %v1264_v18 = vor.u32 %v1262_v54, %v1261_v9  ;;  %v1265_v19 = vrot.slane %v1261_v9, 4  ;;  %v1257_v23 = vsel %vm6850_vm14, %v1249_v35, %v1256_v14 }
 0x1b9   : > { %2173 = vst [vmem:[#allocation2 + $0x37c] sm:$0xf] %v7231_v4  ;;  %v5970_v61 = vld [vmem:[#allocation2 + $0x2e4] ss:$36 sps:$4 sm:$0xff]   ;;  %1728 = vst [vmem:[#allocation2 + $0x368] sm:$0xf] %v1622_v15  ;;  %v1628_v13 = vor.u32 %v1627_v11, %v1626_v10  ;;  %v1272_v20 = vor.u32 %v1270_v56, %v1269_v12 }
 0x1ba   : > { %v5972_v16 = vld [vmem:[#allocation2 + $0x2e0] ss:$36 sps:$4 sm:$0xff]   ;;  %2016 = vst [vmem:[#allocation2 + $0x32c] sm:$0xf] %v1622_v15  ;;  %2269 = vst [vmem:[#allocation2 + $0x2f0] sm:$0xf] %v1622_v15  ;;  %4195 = vmatprep.mubr.bf16.mxu0 %v5970_v61  ;;  %v1389_v27 = vsel %vm6825_vm9, %v1264_v18, %v1388_v53  ;;  %v1864_v29 = vsel %vm6825_vm9, %v1264_v18, %v1863_v1  ;;  %v2132_v57 = vsel %vm6825_vm9, %v1264_v18, %v2131_v2  ;;  %v806_v2 = vpop.f32.mrf.mxu0 }
 0x1bb   : > { %v2270_v17 = vld [vmem:[#allocation2 + $0x314] sm:$0xf]  ;;  %v1625_v24 = vrot.slane %v1624_v41, 4  ;;  %v1632_v0 = vrot.slane %v1267_v55, 4  ;;  %v1275_v26 = vshrl.u32 %v7231_v4, 16  ;;  %v1629_v28 = vrot.slane %v1628_v13, 4  ;;  %4196 = vmatmul.mubr.bf16.gmra.mxu0 %v5972_v16 }
 0x1bc   : > { %1387 = vst [vmem:[#allocation2 + $0x384] sm:$0xf] %v1257_v23  ;;  %1862 = vst [vmem:[#allocation2 + $0x348] sm:$0xf] %v1257_v23  ;;  %v1273_v32 = vsel %vm6850_vm14, %v1265_v19, %v1272_v20  ;;  %v1733_v39 = vld [vmem:[#allocation2 + $0x3d4] sm:$0xf]  ;;  %v808_v11 = vpop.f32.mrf.mxu0 }
 0x1bd   : > { %2130 = vst [vmem:[#allocation2 + $0x30c] sm:$0xf] %v1257_v23  ;;  %v1730_v31 = vsel %vm6862_vm15, %v1625_v24, %v1729_v7  ;;  %v2018_v34 = vsel %vm6862_vm15, %v1625_v24, %v2017_v8  ;;  %v2271_v35 = vsel %vm6862_vm15, %v1625_v24, %v2270_v17  ;;  %1390 = vst [vmem:[#allocation2 + $0x3a8] sm:$0xf] %v1389_v27  ;;  %v2021_v33 = vld [vmem:[#allocation2 + $0x398] sm:$0xf] }
 0x1be   : > { %1865 = vst [vmem:[#allocation2 + $0x36c] sm:$0xf] %v1864_v29  ;;  %2133 = vst [vmem:[#allocation2 + $0x330] sm:$0xf] %v2132_v57  ;;  %v1631_v36 = vsel %vm6838_vm13, %v1629_v28, %v1630_v5  ;;  %v1633_v37 = vor.u32 %v1632_v0, %v1630_v5  ;;  %v7261_v40 = vrot.slane %v1275_v26, 7  ;;  %v1278_v43 = vshll.u32 %v7231_v4, 16 }
 0x1bf   : > { %1731 = vst [vmem:[#allocation2 + $0x38c] sm:$0xf] %v1730_v31  ;;  %2019 = vst [vmem:[#allocation2 + $0x350] sm:$0xf] %v2018_v34  ;;  %v2274_v48 = vld [vmem:[#allocation2 + $0x35c] sm:$0xf] }
 0x1c0   : > { %2272 = vst [vmem:[#allocation2 + $0x314] sm:$0xf] %v2271_v35  ;;  %1391 = vst [vmem:[#allocation2 + $0x3cc] sm:$0xf] %v1273_v32  ;;  %v1392_v49 = vld [vmem:[#allocation2 + $0x3f0] sm:$0xf]  ;;  %v1280_v42 = vor.u32 %v1278_v43, %v7261_v40 }
 0x1c1   : > { %1866 = vst [vmem:[#allocation2 + $0x390] sm:$0xf] %v1273_v32  ;;  %2134 = vst [vmem:[#allocation2 + $0x354] sm:$0xf] %v1273_v32  ;;  %v1635_v52 = vrot.slane %v1275_v26, 4  ;;  %v915_v54 = vmax.f32 %v7226_v50, 0.0 }
 0x1c2   : > { %1732 = vst [vmem:[#allocation2 + $0x3b0] sm:$0xf] %v1631_v36  ;;  %2020 = vst [vmem:[#allocation2 + $0x374] sm:$0xf] %v1631_v36  ;;  %v6142_v55 = vld [vmem:[%s7863_s4] ss:$0 sm:$0xff]  ;;  %v1393_v10 = vsel %vm6825_vm9, %v1280_v42, %v1392_v49 }
 0x1c3   : > { %2273 = vst [vmem:[#allocation2 + $0x338] sm:$0xf] %v1631_v36  ;;  %v884_v56 = vadd.f32 %v6142_v55, %v7229_v51  ;;  %v1634_v60 = vrot.slane %v1633_v37, 4  ;;  %v1636_v62 = vrot.slane %v1278_v43, 5  ;;  %v1867_v53 = vld [vmem:[#allocation2 + $0x3b4] sm:$0xf]  ;;  %v5226_v4 = vpack.c.bf16 %v915_v54, %v915_v54 }
 0x1c4   : > { %v2135_v1 = vld [vmem:[#allocation2 + $0x378] sm:$0xf]  ;;  %v885_v7 = vadd.f32 %v6142_v55, %v846_v58  ;;  %v6143_v50 = vld [vmem:[%s7862_s3] ss:$0 sm:$0xff]  ;;  %1394 = vst [vmem:[#allocation2 + $0x3f0] sm:$0xf] %v1393_v10  ;;  %v1868_v46 = vsel %vm6825_vm9, %v1280_v42, %v1867_v53 }
 0x1c5   : > { %v916_v6 = vmax.f32 %v884_v56, 0.0  ;;  %v847_v8 = vmul.f32 %v6143_v50, %v803_v30  ;;  %v1734_v51 = vsel %vm6862_vm15, %v1634_v60, %v1733_v39  ;;  %v2022_v25 = vsel %vm6862_vm15, %v1634_v60, %v2021_v33  ;;  %1459 = vst [vmem:[#allocation2 + $0x418] sm:$0xf] %v5226_v4  ;;  %1908 = vst [vmem:[#allocation2 + $0x3dc] sm:$0xf] %v5226_v4 }
 0x1c6   : > { %v2275_v9 = vsel %vm6862_vm15, %v1634_v60, %v2274_v48  ;;  %1735 = vst [vmem:[#allocation2 + $0x3d4] sm:$0xf] %v1734_v51  ;;  %2023 = vst [vmem:[#allocation2 + $0x398] sm:$0xf] %v2022_v25  ;;  %v1637_v12 = vor.u32 %v1636_v62, %v1635_v52  ;;  %v2136_v14 = vsel %vm6825_vm9, %v1280_v42, %v2135_v1  ;;  %v1283_v15 = vshrl.u32 %v5226_v4, 16 }
 0x1c7   : > { %2276 = vst [vmem:[#allocation2 + $0x35c] sm:$0xf] %v2275_v9  ;;  %2174 = vst [vmem:[#allocation2 + $0x3a0] sm:$0xf] %v5226_v4  ;;  %v5973_v41 = vld [vmem:[#allocation2 + $0x364] ss:$36 sps:$4 sm:$0xff]   ;;  %v5227_v16 = vpack.c.bf16 %v916_v6, %v916_v6  ;;  %v886_v18 = vadd.f32 %v6142_v55, %v847_v8  ;;  %v848_v23 = vmul.f32 %v6143_v50, %v806_v2 }
 0x1c8   : > { %v5976_v5 = vld [vmem:[#allocation2 + $0x360] ss:$36 sps:$4 sm:$0xff]   ;;  %1869 = vst [vmem:[#allocation2 + $0x3b4] sm:$0xf] %v1868_v46  ;;  %2137 = vst [vmem:[#allocation2 + $0x378] sm:$0xf] %v2136_v14  ;;  %3889 = vmatprep.mubr.bf16.mxu1 %v5973_v41 }
 0x1c9   : > { %v1286_v61 = vshll.u32 %v5226_v4, 16  ;;  %v917_v17 = vmax.f32 %v885_v7, 0.0  ;;  %v1638_v19 = vrot.slane %v1637_v12, 4  ;;  %v1285_v13 = vrot.slane %v1283_v15, 7  ;;  %v5978_v22 = vld [vmem:[#allocation2 + $0x32c] ss:$36 sps:$4 sm:$0xff]   ;;  %3890 = vmatmul.mubr.bf16.gmra.mxu1 %v5976_v5 }
 0x1ca   : > { %v1641_v20 = vrot.slane %v1283_v15, 4  ;;  %v1291_v0 = vshrl.u32 %v5227_v16, 16  ;;  %v1294_v26 = vshll.u32 %v5227_v16, 16  ;;  %1460 = vst [vmem:[#allocation2 + $0x43c] sm:$0xf] %v5227_v16  ;;  %v1281_v29 = vrot.slane %v7261_v40, 4  ;;  %4203 = vmatprep.mubr.bf16.mxu0 %v5978_v22 }
 0x1cb   : > { %v1639_v24 = vrot.slane %v1286_v61, 5  ;;  %1909 = vst [vmem:[#allocation2 + $0x400] sm:$0xf] %v5227_v16  ;;  %2175 = vst [vmem:[#allocation2 + $0x3c4] sm:$0xf] %v5227_v16  ;;  %v5228_v27 = vpack.c.bf16 %v917_v17, %v917_v17  ;;  %v1288_v57 = vor.u32 %v1286_v61, %v1285_v13  ;;  %v918_v32 = vmax.f32 %v886_v18, 0.0 }
 0x1cc   : > { %v5980_v28 = vld [vmem:[#allocation2 + $0x328] ss:$36 sps:$4 sm:$0xff]   ;;  %v1737_v30 = vld [vmem:[#allocation2 + $0x41c] sm:$0xf]  ;;  %v2025_v31 = vld [vmem:[#allocation2 + $0x3e0] sm:$0xf]  ;;  %v7288_v36 = vadd.f32 %v6142_v55, %v848_v23 }
 0x1cd   : > { %v2278_v34 = vld [vmem:[#allocation2 + $0x3a4] sm:$0xf]  ;;  %v1396_v35 = vld [vmem:[#allocation2 + $0x438] sm:$0xf]  ;;  %v5981_v37 = vld [vmem:[#allocation2 + $0x3ac] ss:$36 sps:$4 sm:$0xff]   ;;  %v1640_v39 = vsel %vm6838_vm13, %v1638_v19, %v1639_v24  ;;  %v1642_v33 = vor.u32 %v1641_v20, %v1639_v24  ;;  %4204 = vmatmul.mubr.bf16.gmra.mxu0 %v5980_v28  ;;  %v1289_v40 = vsel %vm6850_vm14, %v1281_v29, %v1288_v57  ;;  %v5229_v42 = vpack.c.bf16 %v918_v32, %v918_v32 }
 0x1ce   : > { %v1293_v43 = vrot.slane %v1291_v0, 7  ;;  %v1644_v45 = vrot.slane %v1291_v0, 4  ;;  %v1871_v48 = vld [vmem:[#allocation2 + $0x3fc] sm:$0xf]  ;;  %v2139_v49 = vld [vmem:[#allocation2 + $0x3c0] sm:$0xf]  ;;  %3897 = vmatprep.mubr.bf16.mxu1 %v5981_v37 }
 0x1cf   : > { %1461 = vst [vmem:[#allocation2 + $0x460] sm:$0xf] %v5228_v27  ;;  %1910 = vst [vmem:[#allocation2 + $0x424] sm:$0xf] %v5228_v27  ;;  %v1645_v52 = vrot.slane %v1294_v26, 5  ;;  %v1299_v54 = vshrl.u32 %v5228_v27, 16 }
 0x1d0   : > { %2176 = vst [vmem:[#allocation2 + $0x3e8] sm:$0xf] %v5228_v27  ;;  %1736 = vst [vmem:[#allocation2 + $0x3f8] sm:$0xf] %v1640_v39  ;;  %v1302_v55 = vshll.u32 %v5228_v27, 16  ;;  %v1643_v56 = vrot.slane %v1642_v33, 4  ;;  %v1296_v58 = vor.u32 %v1294_v26, %v1293_v43 }
 0x1d1   : > { %2024 = vst [vmem:[#allocation2 + $0x3bc] sm:$0xf] %v1640_v39  ;;  %2277 = vst [vmem:[#allocation2 + $0x380] sm:$0xf] %v1640_v39  ;;  %v1297_v60 = vrot.slane %v1293_v43, 4  ;;  %v1646_v53 = vor.u32 %v1645_v52, %v1644_v45  ;;  %v1301_v1 = vrot.slane %v1299_v54, 7 }
 0x1d2   : > { %1395 = vst [vmem:[#allocation2 + $0x414] sm:$0xf] %v1289_v40  ;;  %1870 = vst [vmem:[#allocation2 + $0x3d8] sm:$0xf] %v1289_v40  ;;  %v5983_v62 = vld [vmem:[#allocation2 + $0x3a8] ss:$36 sps:$4 sm:$0xff]   ;;  %v1738_v7 = vsel %vm6862_vm15, %v1643_v56, %v1737_v30  ;;  %v2026_v50 = vsel %vm6862_vm15, %v1643_v56, %v2025_v31  ;;  %v2279_v8 = vsel %vm6862_vm15, %v1643_v56, %v2278_v34 }
 0x1d3   : > { %2138 = vst [vmem:[#allocation2 + $0x39c] sm:$0xf] %v1289_v40  ;;  %v1648_v2 = vrot.slane %v1302_v55, 5  ;;  %v1650_v4 = vrot.slane %v1299_v54, 4  ;;  %v5986_v6 = vld [vmem:[#allocation2 + $0x374] ss:$36 sps:$4 sm:$0xff]   ;;  %v1397_v51 = vsel %vm6825_vm9, %v1296_v58, %v1396_v35  ;;  %v1872_v10 = vsel %vm6825_vm9, %v1296_v58, %v1871_v48  ;;  %3898 = vmatmul.mubr.bf16.gmra.mxu1 %v5983_v62 }
 0x1d4   : > { %1911 = vst [vmem:[#allocation2 + $0x448] sm:$0xf] %v5229_v42  ;;  %2177 = vst [vmem:[#allocation2 + $0x40c] sm:$0xf] %v5229_v42  ;;  %v5984_v25 = vld [vmem:[#allocation2 + $0x370] ss:$36 sps:$4 sm:$0xff]   ;;  %v2140_v11 = vsel %vm6825_vm9, %v1296_v58, %v2139_v49  ;;  %v1304_v12 = vor.u32 %v1302_v55, %v1301_v1  ;;  %4211 = vmatprep.mubr.bf16.mxu0 %v5986_v6 }
 0x1d5   : > { %1739 = vst [vmem:[#allocation2 + $0x41c] sm:$0xf] %v1738_v7  ;;  %2027 = vst [vmem:[#allocation2 + $0x3e0] sm:$0xf] %v2026_v50  ;;  %v1647_v9 = vrot.slane %v1646_v53, 4  ;;  %v1651_v14 = vor.u32 %v1650_v4, %v1648_v2  ;;  %v1798_v15 = vshrl.u32 %v5229_v42, 16  ;;  %4212 = vmatmul.mubr.bf16.gmra.mxu0 %v5984_v25 }
 0x1d6   : > { %2280 = vst [vmem:[#allocation2 + $0x3a4] sm:$0xf] %v2279_v8  ;;  %1398 = vst [vmem:[#allocation2 + $0x438] sm:$0xf] %v1397_v51  ;;  %v1741_v46 = vld [vmem:[#allocation2 + $0x464] sm:$0xf]  ;;  %v1305_v61 = vsel %vm6850_vm14, %v1297_v60, %v1304_v12 }
 0x1d7   : > { %1873 = vst [vmem:[#allocation2 + $0x3fc] sm:$0xf] %v1872_v10  ;;  %2141 = vst [vmem:[#allocation2 + $0x3c0] sm:$0xf] %v2140_v11  ;;  %v1801_v41 = vshll.u32 %v5229_v42, 16  ;;  %v919_v5 = vmax.f32 %v7288_v36, 0.0  ;;  %v1649_v16 = vsel %vm6838_vm13, %v1647_v9, %v1648_v2 }
 0x1d8   : > { %v2029_v17 = vld [vmem:[#allocation2 + $0x428] sm:$0xf]  ;;  %v2282_v18 = vld [vmem:[#allocation2 + $0x3ec] sm:$0xf]  ;;  %v1875_v19 = vld [vmem:[#allocation2 + $0x444] sm:$0xf] }
 0x1d9   : > { %1399 = vst [vmem:[#allocation2 + $0x45c] sm:$0xf] %v1305_v61  ;;  %v1652_v13 = vrot.slane %v1651_v14, 4  ;;  %1740 = vst [vmem:[#allocation2 + $0x440] sm:$0xf] %v1649_v16  ;;  %v1800_v20 = vrot.slane %v1798_v15, 7  ;;  %v5230_v0 = vpack.c.bf16 %v919_v5, %v919_v5 }
 0x1da   : > { %1874 = vst [vmem:[#allocation2 + $0x420] sm:$0xf] %v1305_v61  ;;  %2028 = vst [vmem:[#allocation2 + $0x404] sm:$0xf] %v1649_v16  ;;  %v1961_v22 = vrot.slane %v1798_v15, 4  ;;  %v1962_v23 = vrot.slane %v1801_v41, 5 }
 0x1db   : > { %2142 = vst [vmem:[#allocation2 + $0x3e4] sm:$0xf] %v1305_v61  ;;  %2281 = vst [vmem:[#allocation2 + $0x3c8] sm:$0xf] %v1649_v16  ;;  %v2143_v24 = vld [vmem:[#allocation2 + $0x408] sm:$0xf]  ;;  %v1742_v27 = vsel %vm6862_vm15, %v1652_v13, %v1741_v46  ;;  %v2030_v28 = vsel %vm6862_vm15, %v1652_v13, %v2029_v17  ;;  %v2283_v29 = vsel %vm6862_vm15, %v1652_v13, %v2282_v18 }
 0x1dc   : > { %v5989_v26 = vld [vmem:[#allocation2 + $0x3f4] ss:$36 sps:$4 sm:$0xff]   ;;  %v1803_v57 = vor.u32 %v1801_v41, %v1800_v20  ;;  %1743 = vst [vmem:[#allocation2 + $0x464] sm:$0xf] %v1742_v27  ;;  %2031 = vst [vmem:[#allocation2 + $0x428] sm:$0xf] %v2030_v28  ;;  %v1963_v31 = vor.u32 %v1962_v23, %v1961_v22 }
 0x1dd   : > { %v5992_v30 = vld [vmem:[#allocation2 + $0x3f0] ss:$36 sps:$4 sm:$0xff]   ;;  %2284 = vst [vmem:[#allocation2 + $0x3ec] sm:$0xf] %v2283_v29  ;;  %v1806_v34 = vshrl.u32 %v5230_v0, 16  ;;  %v1809_v35 = vshll.u32 %v5230_v0, 16  ;;  %3905 = vmatprep.mubr.bf16.mxu1 %v5989_v26 }
 0x1de   : > { %1912 = vst [vmem:[#allocation2 + $0x46c] sm:$0xf] %v5230_v0  ;;  %2178 = vst [vmem:[#allocation2 + $0x430] sm:$0xf] %v5230_v0  ;;  %v1804_v32 = vrot.slane %v1800_v20, 4  ;;  %v1876_v36 = vsel %vm6825_vm9, %v1803_v57, %v1875_v19  ;;  %v2144_v37 = vsel %vm6825_vm9, %v1803_v57, %v2143_v24  ;;  %v1964_v43 = vrot.slane %v1963_v31, 4  ;;  %3906 = vmatmul.mubr.bf16.gmra.mxu1 %v5992_v30 }
 0x1df   : > { %v5994_v39 = vld [vmem:[#allocation2 + $0x3b8] ss:$36 sps:$4 sm:$0xff]   ;;  %1877 = vst [vmem:[#allocation2 + $0x444] sm:$0xf] %v1876_v36  ;;  %2145 = vst [vmem:[#allocation2 + $0x408] sm:$0xf] %v2144_v37 }
 0x1e0   : > { %v5996_v33 = vld [vmem:[#allocation2 + $0x3bc] ss:$36 sps:$4 sm:$0xff]   ;;  %v1808_v45 = vrot.slane %v1806_v34, 7  ;;  %v1965_v48 = vrot.slane %v1809_v35, 5  ;;  %v1967_v49 = vrot.slane %v1806_v34, 4  ;;  %v6027_v51 = vld [vmem:[%s7864_s5 + $0x1b0] sm:$0xff]  }
 0x1e1   : > { %v2033_v40 = vld [vmem:[#allocation2 + $0x470] sm:$0xf]  ;;  %4219 = vmatprep.mubr.bf16.mxu0 %v5996_v33  ;;  %v2286_v56 = vld [vmem:[#allocation2 + $0x434] sm:$0xf]  ;;  %v5999_v58 = vld [vmem:[#allocation2 + $0x43c] ss:$36 sps:$4 sm:$0xff]  }
 0x1e2   : > { %v1811_v52 = vor.u32 %v1809_v35, %v1808_v45  ;;  %v1966_v54 = vsel %vm6838_vm13, %v1964_v43, %v1965_v48  ;;  %v1968_v55 = vor.u32 %v1967_v49, %v1965_v48  ;;  %4220 = vmatmul.mubr.bf16.gmra.mxu0 %v5994_v39  ;;  %3913 = vmatprep.mubr.bf16.mxu1 %v5999_v58  ;;  %v6001_v42 = vld [vmem:[#allocation2 + $0x438] ss:$36 sps:$4 sm:$0xff]   ;;  %v6005_v1 = vld [vmem:[#allocation2 + $0x400] ss:$36 sps:$4 sm:$0xff]   ;;  %v6004_v2 = vld [vmem:[#allocation2 + $0xc] ss:$36 sps:$4 sm:$0xff]   ;;  %v7374_v48 = vpop.f32.mrf.mxu1 }
 0x1e3   : > { %2032 = vst [vmem:[#allocation2 + $0x44c] sm:$0xf] %v1966_v54  ;;  %2285 = vst [vmem:[#allocation2 + $0x410] sm:$0xf] %v1966_v54  ;;  %v6007_v62 = vld [vmem:[#allocation2 + $0x404] ss:$36 sps:$4 sm:$0xff]  }
 0x1e4   : > { %v1812_v47 = vsel %vm6850_vm14, %v1804_v32, %v1811_v52  ;;  %v1969_v60 = vrot.slane %v1968_v55, 4  ;;  %4227 = vmatprep.mubr.bf16.mxu0 %v6007_v62  ;;  %v6011_v4 = vld [vmem:[%s7864_s5 + $0x1b8] sm:$0xff]   ;;  %v6018_v8 = vld [vmem:[#allocation2 + $0x20] ss:$36 sps:$4 sm:$0xff]   ;;  %v6037_v25 = vld [vmem:[%s7864_s5 + $0x1e8] sm:$0xff]   ;;  %v7376_v54 = vpop.f32.mrf.mxu1 }
 0x1e5   : > { %1878 = vst [vmem:[#allocation2 + $0x468] sm:$0xf] %v1812_v47  ;;  %2146 = vst [vmem:[#allocation2 + $0x42c] sm:$0xf] %v1812_v47  ;;  %v6014_v7 = vld [vmem:[#allocation2 + $0x448] ss:$36 sps:$4 sm:$0xff]  }
 0x1e6   : > { %v2034_v53 = vsel %vm6862_vm15, %v1969_v60, %v2033_v40  ;;  %v2287_v63 = vsel %vm6862_vm15, %v1969_v60, %v2286_v56  ;;  %3914 = vmatmul.mubr.bf16.gmra.mxu1 %v6001_v42  ;;  %v6012_v50 = vld [vmem:[#allocation2 + $0x54] ss:$36 sps:$4 sm:$0xff]   ;;  %v6039_v9 = vld [vmem:[%s7864_s5 + $0x1a8] sm:$0xff]   ;;  %v6049_v11 = vld [vmem:[%s7864_s5 + $0x1e0] sm:$0xff]  }
 0x1e7   : > { %2035 = vst [vmem:[#allocation2 + $0x470] sm:$0xf] %v2034_v53  ;;  %2288 = vst [vmem:[#allocation2 + $0x434] sm:$0xf] %v2287_v63  ;;  %3954 = vmatprep.mubr.bf16.mxu1 %v6004_v2  ;;  %v6020_v10 = vld [vmem:[#allocation2 + $0x50] ss:$36 sps:$4 sm:$0xff]  }
 0x1e8   : > { %v6021_v12 = vld [vmem:[#allocation2 + $0x9c] ss:$36 sps:$4 sm:$0xff]   ;;  %v6023_v46 = vld [vmem:[#allocation2 + $0x68] ss:$36 sps:$4 sm:$0xff]   ;;  %v6024_v14 = vld [vmem:[#allocation2 + $0xb0] ss:$36 sps:$4 sm:$0xff]  }
 0x1e9   : > { %v6051_v15 = vld [vmem:[%s7864_s5 + $0x1a0] sm:$0xff]   ;;  %v6060_v41 = vld [vmem:[%s7864_s5 + $0x1d8] sm:$0xff]   ;;  %v6068_v16 = vld [vmem:[%s7864_s5 + $0x1d0] sm:$0xff]  }
 0x1ea   : > { %4228 = vmatmul.mubr.bf16.gmra.mxu0 %v6005_v1  ;;  %v6062_v5 = vld [vmem:[%s7864_s5 + $0x198] sm:$0xff]   ;;  %v6028_v17 = vld [vmem:[#allocation2 + $0xe4] ss:$36 sps:$4 sm:$0xff]   ;;  %v6070_v13 = vld [vmem:[%s7864_s5 + $0x190] sm:$0xff]  }
 0x1eb   : > { %v6026_v61 = vld [vmem:[#allocation2 + $0x98] ss:$36 sps:$4 sm:$0xff]   ;;  %v6031_v19 = vld [vmem:[#allocation2 + $0x140] ss:$36 sps:$4 sm:$0xff]   ;;  %v6077_v20 = vld [vmem:[%s7864_s5 + $0x1c8] sm:$0xff]  }
 0x1ec   : > { %v6030_v18 = vld [vmem:[#allocation2 + $0xf8] ss:$36 sps:$4 sm:$0xff]   ;;  %v6078_v22 = vld [vmem:[%s7864_s5 + $0x188] sm:$0xff]   ;;  %v6032_v23 = vld [vmem:[#allocation2 + $0xe0] ss:$36 sps:$4 sm:$0xff]  }
 0x1ed   : > { %v6085_v24 = vld [vmem:[%s7864_s5 + $0x1c0] sm:$0xff]   ;;  %v6033_v0 = vld [vmem:[#allocation2 + $0x12c] ss:$36 sps:$4 sm:$0xff]   ;;  %v6040_v57 = vld [vmem:[#allocation2 + $0x174] ss:$36 sps:$4 sm:$0xff]  }
 0x1ee   : > { %v6016_v6 = vld [vmem:[#allocation2 + $0x44c] ss:$36 sps:$4 sm:$0xff]   ;;  %3955 = vmatmul.mubr.bf16.vlgmr.msra.gmra.mxu1 %v6002_v3  ;;  %v6086_v28 = vld [vmem:[%s7864_s5 + $0x180] sm:$0xff]   ;;  %v6042_v30 = vld [vmem:[#allocation2 + $0x218] ss:$36 sps:$4 sm:$0xff]  }
 0x1ef   : > { %4235 = vmatprep.mubr.bf16.mxu0 %v6016_v6  ;;  %5569 = vmatpush3.bf16.msra.mxu1 %v6011_v4  ;;  %v6035_v26 = vld [vmem:[#allocation2 + $0x188] ss:$36 sps:$4 sm:$0xff]   ;;  %v6036_v27 = vld [vmem:[#allocation2 + $0x1d0] ss:$36 sps:$4 sm:$0xff]   ;;  %v6043_v31 = vld [vmem:[#allocation2 + $0x260] ss:$36 sps:$4 sm:$0xff]  }
 0x1f0   : > { %3962 = vmatprep.mubr.bf16.mxu1 %v6012_v50  ;;  %5570 = vmatprep.subr.bf16.mxu1 %v6025_v21  ;;  %v6038_v29 = vld [vmem:[#allocation2 + $0x128] ss:$36 sps:$4 sm:$0xff]   ;;  %v6044_v34 = vld [vmem:[#allocation2 + $0x170] ss:$36 sps:$4 sm:$0xff]   ;;  %v6045_v35 = vld [vmem:[#allocation2 + $0x1bc] ss:$36 sps:$4 sm:$0xff]  }
 0x1f1   : > { %v6047_v32 = vld [vmem:[#allocation2 + $0x2a8] ss:$36 sps:$4 sm:$0xff]   ;;  %v6048_v36 = vld [vmem:[#allocation2 + $0x2f0] ss:$36 sps:$4 sm:$0xff]   ;;  %v6050_v37 = vld [vmem:[#allocation2 + $0x1b8] ss:$36 sps:$4 sm:$0xff]  }
 0x1f2   : > { %4236 = vmatmul.mubr.bf16.gmra.mxu0 %v6014_v7  ;;  %v6052_v39 = vld [vmem:[#allocation2 + $0x204] ss:$36 sps:$4 sm:$0xff]   ;;  %v6054_v33 = vld [vmem:[#allocation2 + $0x338] ss:$36 sps:$4 sm:$0xff]   ;;  %v6057_v49 = vld [vmem:[#allocation2 + $0x24c] ss:$36 sps:$4 sm:$0xff]  }
 0x1f3   : > { %5720 = vmatprep.mubr.bf16.mxu0 %v6018_v8  ;;  %5571 = vmatpush3.bf16.msra.mxu1 %v6027_v51  ;;  %v6055_v43 = vld [vmem:[#allocation2 + $0x380] ss:$36 sps:$4 sm:$0xff]   ;;  %v6090_v40 = vld [vmem:[#allocation2 + $0x410] ss:$36 sps:$4 sm:$0xff]   ;;  %v6059_v52 = vld [vmem:[#allocation2 + $0x3c8] ss:$36 sps:$4 sm:$0xff]  }
 0x1f4   : > { %5572 = vmatprep.subr.bf16.mxu1 %v6037_v25  ;;  %v6056_v45 = vld [vmem:[#allocation2 + $0x200] ss:$36 sps:$4 sm:$0xff]   ;;  %v6061_v56 = vld [vmem:[#allocation2 + $0x248] ss:$36 sps:$4 sm:$0xff]   ;;  %v6063_v47 = vld [vmem:[#allocation2 + $0x294] ss:$36 sps:$4 sm:$0xff]  }
 0x1f5   : > { %v6065_v4 = vld [vmem:[#allocation2 + $0x290] ss:$36 sps:$4 sm:$0xff]   ;;  %v6066_v21 = vld [vmem:[#allocation2 + $0x2dc] ss:$36 sps:$4 sm:$0xff]  }
 0x1f6   : > { %3963 = vmatmul.mubr.bf16.gmra.mxu1 %v6020_v10 }
 0x1f7   : > { %3970 = vmatprep.mubr.bf16.mxu1 %v6021_v12  ;;  %5573 = vmatpush3.bf16.msra.mxu1 %v6039_v9 }
 0x1f8   : > { %5574 = vmatprep.subr.bf16.mxu1 %v6049_v11 }
 0x1fa   : > { %5721 = vmatmul.mubr.bf16.vlgmr.msra.gmra.mxu0 %v6023_v46 }
 0x1fb   : > { %5724 = vmatprep.mubr.bf16.mxu0 %v6024_v14  ;;  %5575 = vmatpush3.bf16.msra.mxu1 %v6051_v15  ;;  %v6069_v15 = vld [vmem:[#allocation2 + $0x2d8] ss:$36 sps:$4 sm:$0xff]  }
 0x1fc   : > { %5576 = vmatprep.subr.bf16.mxu1 %v6060_v41  ;;  %v5254_v55 = vpop.f32.mrf.mxu1 }
 0x1fe   : > { %3971 = vmatmul.mubr.bf16.gmra.mxu1 %v6026_v61  ;;  %v5255_v58 = vpop.f32.mrf.mxu1  ;;  %v6071_v61 = vld [vmem:[#allocation2 + $0x324] ss:$36 sps:$4 sm:$0xff]  }
 0x1ff   : > { %3978 = vmatprep.mubr.bf16.mxu1 %v6028_v17  ;;  %5577 = vmatpush3.bf16.msra.mxu1 %v6062_v5  ;;  %v7378_v60 = vadd.f32 %v5255_v58, %v5254_v55 }
 0x200   : > { %5578 = vmatprep.subr.bf16.mxu1 %v6068_v16  ;;  %v5257_v62 = vpop.f32.mrf.mxu1 }
 0x202   : > { %5725 = vmatmul.mubr.bf16.gmra.mxu0 %v6030_v18  ;;  %v5472_v42 = vpop.f32.mrf.mxu0  ;;  %v5258_v63 = vpop.f32.mrf.mxu1 }
 0x203   : > { %5728 = vmatprep.mubr.bf16.mxu0 %v6031_v19  ;;  %5579 = vmatpush3.bf16.msra.mxu1 %v6070_v13  ;;  %v7382_v2 = vadd.f32 %v5258_v63, %v5257_v62  ;;  %v6079_v62 = vld [vmem:[#allocation2 + $0x3b0] ss:$36 sps:$4 sm:$0xff]  }
 0x204   : > { %5580 = vmatprep.subr.bf16.mxu1 %v6077_v20  ;;  %v5473_v53 = vpop.f32.mrf.mxu0 }
 0x205   : > { %v7380_v1 = vadd.f32 %v5473_v53, %v5472_v42 }
 0x206   : > { %3979 = vmatmul.mubr.bf16.gmra.mxu1 %v6032_v23  ;;  %v5475_v3 = vpop.f32.mrf.mxu0 }
 0x207   : > { %3986 = vmatprep.mubr.bf16.mxu1 %v6033_v0  ;;  %5581 = vmatpush3.bf16.msra.mxu1 %v6078_v22 }
 0x208   : > { %5582 = vmatprep.subr.bf16.mxu1 %v6085_v24  ;;  %v5476_v7 = vpop.f32.mrf.mxu0 }
 0x209   : > { %v7384_v50 = vadd.f32 %v5476_v7, %v5475_v3  ;;  %v6084_v3 = vld [vmem:[#allocation2 + $0x3fc] ss:$36 sps:$4 sm:$0xff]  }
 0x20a   : > { %5729 = vmatmul.mubr.bf16.gmra.mxu0 %v6035_v26  ;;  %v6073_v26 = vld [vmem:[#allocation2 + $0x320] ss:$36 sps:$4 sm:$0xff]  }
 0x20b   : > { %5732 = vmatprep.mubr.bf16.mxu0 %v6036_v27  ;;  %5583 = vmatpush3.bf16.msra.mxu1 %v6086_v28  ;;  %v5260_v6 = vpop.f32.mrf.mxu1  ;;  %v6076_v28 = vld [vmem:[#allocation2 + $0x36c] ss:$36 sps:$4 sm:$0xff]  }
 0x20c   : > { %v5478_v51 = vpop.f32.mrf.mxu0 }
 0x20d   : > { %v5261_v8 = vpop.f32.mrf.mxu1 }
 0x20e   : > { %3987 = vmatmul.mubr.bf16.gmra.mxu1 %v6038_v29  ;;  %v7386_v25 = vadd.f32 %v5261_v8, %v5260_v6  ;;  %v5479_v10 = vpop.f32.mrf.mxu0 }
 0x20f   : > { %3994 = vmatprep.mubr.bf16.mxu1 %v6040_v57  ;;  %v5263_v9 = vpop.f32.mrf.mxu1  ;;  %v7388_v11 = vadd.f32 %v5479_v10, %v5478_v51 }
 0x210   : > { %v5481_v46 = vpop.f32.mrf.mxu0 }
 0x211   : > { %v5264_v12 = vpop.f32.mrf.mxu1 }
 0x212   : > { %5733 = vmatmul.mubr.bf16.gmra.mxu0 %v6042_v30  ;;  %v7390_v14 = vadd.f32 %v5264_v12, %v5263_v9  ;;  %v5482_v5 = vpop.f32.mrf.mxu0  ;;  %v6082_v12 = vld [vmem:[#allocation2 + $0x3f8] ss:$36 sps:$4 sm:$0xff]  }
 0x213   : > { %5736 = vmatprep.mubr.bf16.mxu0 %v6043_v31  ;;  %v7392_v16 = vadd.f32 %v5482_v5, %v5481_v46 }
 0x216   : > { %3995 = vmatmul.mubr.bf16.gmra.mxu1 %v6044_v34  ;;  %v5266_v41 = vpop.f32.mrf.mxu1 }
 0x217   : > { %4002 = vmatprep.mubr.bf16.mxu1 %v6045_v35 }
 0x218   : > { %v5267_v17 = vpop.f32.mrf.mxu1  ;;  %v5484_v18 = vpop.f32.mrf.mxu0 }
 0x219   : > { %v7394_v19 = vadd.f32 %v5267_v17, %v5266_v41  ;;  %v6089_v41 = vld [vmem:[#allocation2 + $0x444] ss:$36 sps:$4 sm:$0xff]  }
 0x21a   : > { %5737 = vmatmul.mubr.bf16.gmra.mxu0 %v6047_v32  ;;  %v5269_v13 = vpop.f32.mrf.mxu1  ;;  %v5485_v20 = vpop.f32.mrf.mxu0 }
 0x21b   : > { %5740 = vmatprep.mubr.bf16.mxu0 %v6048_v36  ;;  %v7396_v22 = vadd.f32 %v5485_v20, %v5484_v18 }
 0x21c   : > { %v5270_v23 = vpop.f32.mrf.mxu1  ;;  %v5487_v24 = vpop.f32.mrf.mxu0 }
 0x21d   : > { %v7398_v0 = vadd.f32 %v5270_v23, %v5269_v13 }
 0x21e   : > { %4003 = vmatmul.mubr.bf16.gmra.mxu1 %v6050_v37  ;;  %v5488_v27 = vpop.f32.mrf.mxu0 }
 0x21f   : > { %4010 = vmatprep.mubr.bf16.mxu1 %v6052_v39  ;;  %v7400_v57 = vadd.f32 %v5488_v27, %v5487_v24  ;;  %v6074_v39 = vld [vmem:[#allocation2 + $0x368] ss:$36 sps:$4 sm:$0xff]  }
 0x222   : > { %5741 = vmatmul.mubr.bf16.gmra.mxu0 %v6054_v33  ;;  %v5272_v29 = vpop.f32.mrf.mxu1 }
 0x223   : > { %5744 = vmatprep.mubr.bf16.mxu0 %v6055_v43 }
 0x224   : > { %v5273_v30 = vpop.f32.mrf.mxu1 }
 0x225   : > { %v7402_v31 = vadd.f32 %v5273_v30, %v5272_v29  ;;  %v5490_v34 = vpop.f32.mrf.mxu0  ;;  %v6087_v29 = vld [vmem:[#allocation2 + $0x440] ss:$36 sps:$4 sm:$0xff]  }
 0x226   : > { %4011 = vmatmul.mubr.bf16.gmra.mxu1 %v6056_v45  ;;  %v5275_v35 = vpop.f32.mrf.mxu1  ;;  %v6081_v45 = vld [vmem:[#allocation2 + $0x3b4] ss:$36 sps:$4 sm:$0xff]  }
 0x227   : > { %4018 = vmatprep.mubr.bf16.mxu1 %v6057_v49  ;;  %v5491_v32 = vpop.f32.mrf.mxu0 }
 0x228   : > { %v7404_v36 = vadd.f32 %v5491_v32, %v5490_v34  ;;  %v5276_v37 = vpop.f32.mrf.mxu1  ;;  %v6093_v32 = vld [vmem:[#allocation2 + $0x1c] ss:$36 sps:$4 sm:$0xff]  }
 0x229   : > { %v7406_v33 = vadd.f32 %v5276_v37, %v5275_v35  ;;  %v5493_v43 = vpop.f32.mrf.mxu0 }
 0x22a   : > { %5745 = vmatmul.mubr.bf16.gmra.mxu0 %v6059_v52 }
 0x22b   : > { %5748 = vmatprep.mubr.bf16.mxu0 %v6090_v40  ;;  %v5494_v40 = vpop.f32.mrf.mxu0 }
 0x22c   : > { %v7408_v52 = vadd.f32 %v5494_v40, %v5493_v43 }
 0x22e   : > { %4019 = vmatmul.mubr.bf16.gmra.mxu1 %v6061_v56  ;;  %v5278_v49 = vpop.f32.mrf.mxu1 }
 0x22f   : > { %4026 = vmatprep.mubr.bf16.mxu1 %v6063_v47 }
 0x230   : > { %v5279_v55 = vpop.f32.mrf.mxu1 }
 0x231   : > { %v7410_v56 = vadd.f32 %v5279_v55, %v5278_v49  ;;  %v2084_v49 = vld [vmem:[#allocation2 + $0x450] sm:$0x1] }
 0x232   : > { %v5496_v58 = vpop.f32.mrf.mxu0  ;;  %v5281_v47 = vpop.f32.mrf.mxu1  ;;  %v2085_v55 = vsel %vm6505_vm3, 0, %v2084_v49  ;;  %v6097_v49 = vld [vmem:[#allocation2 + $0xa8] ss:$36 sps:$4 sm:$0xff]  }
 0x233   : > { %2086 = vst [vmem:[#allocation2 + $0x450] sm:$0x1] %v2085_v55 }
 0x234   : > { %v5497_v42 = vpop.f32.mrf.mxu0  ;;  %v5282_v63 = vpop.f32.mrf.mxu1 }
 0x235   : > { %v7412_v53 = vadd.f32 %v5497_v42, %v5496_v58 }
 0x236   : > { %4027 = vmatmul.mubr.bf16.gmra.mxu1 %v6065_v4  ;;  %v7414_v4 = vadd.f32 %v5282_v63, %v5281_v47  ;;  %v5499_v6 = vpop.f32.mrf.mxu0  ;;  %v6091_v47 = vld [vmem:[#allocation2 + $0x18] ss:$36 sps:$4 sm:$0xff]   ;;  %v6096_v63 = vld [vmem:[#allocation2 + $0x64] ss:$36 sps:$4 sm:$0xff]  }
 0x237   : > { %4034 = vmatprep.mubr.bf16.mxu1 %v6066_v21 }
 0x238   : > { %v5500_v7 = vpop.f32.mrf.mxu0 }
 0x239   : > { %v7416_v8 = vadd.f32 %v5500_v7, %v5499_v6 }
 0x23d   : > { %v5284_v21 = vpop.f32.mrf.mxu1 }
 0x23e   : > { %4035 = vmatmul.mubr.bf16.gmra.mxu1 %v6069_v15 }
 0x23f   : > { %4042 = vmatprep.mubr.bf16.mxu1 %v6071_v61  ;;  %v5285_v51 = vpop.f32.mrf.mxu1  ;;  %v5502_v9 = vpop.f32.mrf.mxu0 }
 0x240   : > { %v7418_v10 = vadd.f32 %v5285_v51, %v5284_v21 }
 0x241   : > { %v5287_v46 = vpop.f32.mrf.mxu1  ;;  %v5503_v15 = vpop.f32.mrf.mxu0 }
 0x242   : > { %v7420_v5 = vadd.f32 %v5503_v15, %v5502_v9 }
 0x243   : > { %v5288_v61 = vpop.f32.mrf.mxu1  ;;  %v5505_v17 = vpop.f32.mrf.mxu0 }
 0x244   : > { %v7422_v18 = vadd.f32 %v5288_v61, %v5287_v46  ;;  %v6094_v61 = vld [vmem:[#allocation2 + $0x60] ss:$36 sps:$4 sm:$0xff]  }
 0x245   : > { %v5506_v20 = vpop.f32.mrf.mxu0 }
 0x246   : > { %4043 = vmatmul.mubr.bf16.gmra.mxu1 %v6073_v26  ;;  %v7424_v23 = vadd.f32 %v5506_v20, %v5505_v17 }
 0x247   : > { %4050 = vmatprep.mubr.bf16.mxu1 %v6076_v28  ;;  %v2226_v28 = vld [vmem:[#allocation2 + $0x47c] sm:$0x8] }
 0x248   : > { %v5290_v13 = vpop.f32.mrf.mxu1  ;;  %v2227_v35 = vsel %vm6536_vm6, 0, %v2226_v28 }
 0x249   : > { %2228 = vst [vmem:[#allocation2 + $0x47c] sm:$0x8] %v2227_v35 }
 0x24a   : > { %v5291_v24 = vpop.f32.mrf.mxu1 }
 0x24b   : > { %v5508_v26 = vpop.f32.mrf.mxu0  ;;  %v7426_v27 = vadd.f32 %v5291_v24, %v5290_v13  ;;  %v6099_v13 = vld [vmem:[#allocation2 + $0xac] ss:$36 sps:$4 sm:$0xff]  }
 0x24c   : > { %v5293_v30 = vpop.f32.mrf.mxu1 }
 0x24d   : > { %v5509_v34 = vpop.f32.mrf.mxu0 }
 0x24e   : > { %4051 = vmatmul.mubr.bf16.gmra.mxu1 %v6074_v39  ;;  %v7430_v37 = vadd.f32 %v5509_v34, %v5508_v26  ;;  %v5294_v39 = vpop.f32.mrf.mxu1 }
 0x24f   : > { %4058 = vmatprep.mubr.bf16.mxu1 %v6081_v45  ;;  %v5511_v43 = vpop.f32.mrf.mxu0  ;;  %v7432_v45 = vadd.f32 %v5294_v39, %v5293_v30 }
 0x251   : > { %v5512_v40 = vpop.f32.mrf.mxu0 }
 0x252   : > { %v7436_v58 = vadd.f32 %v5512_v40, %v5511_v43  ;;  %v6102_v40 = vld [vmem:[#allocation2 + $0xf4] ss:$36 sps:$4 sm:$0xff]  }
 0x256   : > { %4059 = vmatmul.mubr.bf16.gmra.mxu1 %v6079_v62  ;;  %v6136_v62 = vld [vmem:[#allocation2 + $0x458] ss:$36 sps:$4 sm:$0xff]  }
 0x257   : > { %4066 = vmatprep.mubr.bf16.mxu1 %v6084_v3  ;;  %v5296_v59 = vpop.f32.mrf.mxu1  ;;  %5749 = vmatmul.mubr.bf16.gmra.mxu0 %v6136_v62 }
 0x259   : > { %v5514_v42 = vpop.f32.mrf.mxu0  ;;  %v5297_v3 = vpop.f32.mrf.mxu1 }
 0x25a   : > { %v7438_v6 = vadd.f32 %v5297_v3, %v5296_v59 }
 0x25b   : > { %v5515_v7 = vpop.f32.mrf.mxu0  ;;  %v5299_v21 = vpop.f32.mrf.mxu1 }
 0x25c   : > { %v7440_v51 = vadd.f32 %v5515_v7, %v5514_v42 }
 0x25d   : > { %v5517_v44 = vpop.f32.mrf.mxu0  ;;  %v5300_v9 = vpop.f32.mrf.mxu1 }
 0x25e   : > { %4067 = vmatmul.mubr.bf16.gmra.mxu1 %v6082_v12  ;;  %v7442_v12 = vadd.f32 %v5300_v9, %v5299_v21 }
 0x25f   : > { %4074 = vmatprep.mubr.bf16.mxu1 %v6089_v41  ;;  %v5518_v46 = vpop.f32.mrf.mxu0 }
 0x260   : > { %v5302_v15 = vpop.f32.mrf.mxu1  ;;  %v7444_v41 = vadd.f32 %v5518_v46, %v5517_v44  ;;  %v6100_v46 = vld [vmem:[#allocation2 + $0xf0] ss:$36 sps:$4 sm:$0xff]  }
 0x262   : > { %v5303_v20 = vpop.f32.mrf.mxu1 }
 0x263   : > { %v7446_v24 = vadd.f32 %v5303_v20, %v5302_v15 }
 0x264   : > { %v5520_v17 = vpop.f32.mrf.mxu0  ;;  %v5305_v28 = vpop.f32.mrf.mxu1 }
 0x266   : > { %4075 = vmatmul.mubr.bf16.gmra.mxu1 %v6087_v29  ;;  %v5521_v26 = vpop.f32.mrf.mxu0  ;;  %v5306_v34 = vpop.f32.mrf.mxu1 }
 0x267   : > { %4276 = vmatprep.mubr.bf16.mxu1 %v6093_v32  ;;  %v7448_v29 = vadd.f32 %v5521_v26, %v5520_v17  ;;  %v7450_v35 = vadd.f32 %v5306_v34, %v5305_v28 }
 0x268   : > { %v5523_v30 = vpop.f32.mrf.mxu0 }
 0x26a   : > { %v5524_v32 = vpop.f32.mrf.mxu0 }
 0x26b   : > { %v7452_v43 = vadd.f32 %v5524_v32, %v5523_v30 }
 0x26e   : > { %4277 = vmatmul.mubr.bf16.vlgmr.msra.gmra.mxu1 %v6091_v47  ;;  %v5308_v39 = vpop.f32.mrf.mxu1 }
 0x26f   : > { %4284 = vmatprep.mubr.bf16.mxu1 %v6096_v63 }
 0x270   : > { %v5309_v55 = vpop.f32.mrf.mxu1 }
 0x271   : > { %v5526_v59 = vpop.f32.mrf.mxu0  ;;  %v7454_v47 = vadd.f32 %v5309_v55, %v5308_v39 }
 0x272   : > { %v5311_v42 = vpop.f32.mrf.mxu1 }
 0x273   : > { %v5527_v62 = vpop.f32.mrf.mxu0 }
 0x274   : > { %v7456_v63 = vadd.f32 %v5527_v62, %v5526_v59  ;;  %v5312_v3 = vpop.f32.mrf.mxu1  ;;  %v6108_v59 = vld [vmem:[#allocation2 + $0x184] ss:$36 sps:$4 sm:$0xff]  }
 0x275   : > { %v5529_v7 = vpop.f32.mrf.mxu0  ;;  %v7458_v21 = vadd.f32 %v5312_v3, %v5311_v42 }
 0x276   : > { %4285 = vmatmul.mubr.bf16.gmra.mxu1 %v6094_v61  ;;  %v6105_v61 = vld [vmem:[#allocation2 + $0x13c] ss:$36 sps:$4 sm:$0xff]  }
 0x277   : > { %4292 = vmatprep.mubr.bf16.mxu1 %v6099_v13  ;;  %v5314_v44 = vpop.f32.mrf.mxu1  ;;  %v5530_v9 = vpop.f32.mrf.mxu0 }
 0x278   : > { %v7460_v15 = vadd.f32 %v5530_v9, %v5529_v7 }
 0x279   : > { %v5315_v17 = vpop.f32.mrf.mxu1 }
 0x27a   : > { %v7462_v20 = vadd.f32 %v5315_v17, %v5314_v44 }
 0x27b   : > { %v5532_v13 = vpop.f32.mrf.mxu0  ;;  %v5317_v26 = vpop.f32.mrf.mxu1 }
 0x27c   : > { %7889 = vst [vmem:[#allocation10_spill] sm:$0xff] %v7462_v20 }
 0x27d   : > { %v5533_v28 = vpop.f32.mrf.mxu0  ;;  %v5318_v34 = vpop.f32.mrf.mxu1 }
 0x27e   : > { %4293 = vmatmul.mubr.bf16.gmra.mxu1 %v6097_v49  ;;  %v7464_v30 = vadd.f32 %v5533_v28, %v5532_v13  ;;  %v7466_v39 = vadd.f32 %v5318_v34, %v5317_v26  ;;  %v6111_v28 = vld [vmem:[#allocation2 + $0x1cc] ss:$36 sps:$4 sm:$0xff]  }
 0x27f   : > { %4300 = vmatprep.mubr.bf16.mxu1 %v6102_v40  ;;  %v5535_v32 = vpop.f32.mrf.mxu0  ;;  %v6103_v40 = vld [vmem:[#allocation2 + $0x138] ss:$36 sps:$4 sm:$0xff]  }
 0x280   : > { %7890 = vst [vmem:[#allocation11_spill] sm:$0xff] %v7466_v39 }
 0x281   : > { %v5536_v49 = vpop.f32.mrf.mxu0 }
 0x282   : > { %v7468_v55 = vadd.f32 %v5536_v49, %v5535_v32 }
 0x286   : > { %4301 = vmatmul.mubr.bf16.gmra.mxu1 %v6100_v46 }
 0x287   : > { %4308 = vmatprep.mubr.bf16.mxu1 %v6105_v61  ;;  %v6106_v61 = vld [vmem:[#allocation2 + $0x180] ss:$36 sps:$4 sm:$0xff]  }
 0x289   : > { %v5320_v42 = vpop.f32.mrf.mxu1 }
 0x28b   : > { %v5321_v62 = vpop.f32.mrf.mxu1 }
 0x28c   : > { %v7470_v7 = vadd.f32 %v5321_v62, %v5320_v42 }
 0x28d   : > { %v5538_v3 = vpop.f32.mrf.mxu0  ;;  %v5323_v44 = vpop.f32.mrf.mxu1 }
 0x28e   : > { %4309 = vmatmul.mubr.bf16.gmra.mxu1 %v6103_v40  ;;  %7891 = vst [vmem:[#allocation12_spill] sm:$0xff] %v7470_v7 }
 0x28f   : > { %4316 = vmatprep.mubr.bf16.mxu1 %v6108_v59  ;;  %v5539_v9 = vpop.f32.mrf.mxu0  ;;  %v5324_v17 = vpop.f32.mrf.mxu1 }
 0x290   : > { %v7472_v46 = vadd.f32 %v5539_v9, %v5538_v3  ;;  %v7474_v26 = vadd.f32 %v5324_v17, %v5323_v44  ;;  %v6109_v9 = vld [vmem:[#allocation2 + $0x1c8] ss:$36 sps:$4 sm:$0xff]   ;;  %v6114_v17 = vld [vmem:[#allocation2 + $0x214] ss:$36 sps:$4 sm:$0xff]  }
 0x291   : > { %v5541_v13 = vpop.f32.mrf.mxu0 }
 0x292   : > { %7892 = vst [vmem:[#allocation13_spill] sm:$0xff] %v7472_v46  ;;  %7893 = vst [vmem:[#allocation14_spill] sm:$0xff] %v7474_v26 }
 0x293   : > { %v5326_v34 = vpop.f32.mrf.mxu1  ;;  %v5542_v32 = vpop.f32.mrf.mxu0 }
 0x294   : > { %v7476_v49 = vadd.f32 %v5542_v32, %v5541_v13 }
 0x295   : > { %v5327_v40 = vpop.f32.mrf.mxu1  ;;  %v5544_v59 = vpop.f32.mrf.mxu0 }
 0x296   : > { %4317 = vmatmul.mubr.bf16.gmra.mxu1 %v6106_v61  ;;  %7894 = vst [vmem:[#allocation15_spill] sm:$0xff] %v7476_v49  ;;  %v7478_v42 = vadd.f32 %v5327_v40, %v5326_v34 }
 0x297   : > { %4324 = vmatprep.mubr.bf16.mxu1 %v6111_v28  ;;  %v5329_v62 = vpop.f32.mrf.mxu1  ;;  %v5545_v7 = vpop.f32.mrf.mxu0 }
 0x298   : > { %7895 = vst [vmem:[#allocation16_spill] sm:$0xff] %v7478_v42  ;;  %v7480_v3 = vadd.f32 %v5545_v7, %v5544_v59  ;;  %v6112_v59 = vld [vmem:[#allocation2 + $0x210] ss:$36 sps:$4 sm:$0xff]  }
 0x299   : > { %v5330_v39 = vpop.f32.mrf.mxu1  ;;  %v5547_v46 = vpop.f32.mrf.mxu0 }
 0x29a   : > { %7896 = vst [vmem:[#allocation17_spill] sm:$0xff] %v7480_v3  ;;  %v7482_v44 = vadd.f32 %v5330_v39, %v5329_v62  ;;  %v6117_v62 = vld [vmem:[#allocation2 + $0x25c] ss:$36 sps:$4 sm:$0xff]  }
 0x29b   : > { %v5548_v20 = vpop.f32.mrf.mxu0 }
 0x29c   : > { %7897 = vst [vmem:[#allocation18_spill] sm:$0xff] %v7482_v44  ;;  %v7484_v61 = vadd.f32 %v5548_v20, %v5547_v46 }
 0x29e   : > { %v5332_v26 = vpop.f32.mrf.mxu1  ;;  %4325 = vmatmul.mubr.bf16.gmra.mxu1 %v6109_v9  ;;  %7898 = vst [vmem:[#allocation19_spill] sm:$0xff] %v7484_v61 }
 0x29f   : > { %4332 = vmatprep.mubr.bf16.mxu1 %v6114_v17 }
 0x2a0   : > { %v5333_v13 = vpop.f32.mrf.mxu1 }
 0x2a1   : > { %v7486_v34 = vadd.f32 %v5333_v13, %v5332_v26 }
 0x2a2   : > { %v5550_v28 = vpop.f32.mrf.mxu0  ;;  %v5335_v32 = vpop.f32.mrf.mxu1 }
 0x2a3   : > { %7899 = vst [vmem:[#allocation20_spill] sm:$0xff] %v7486_v34 }
 0x2a4   : > { %v5551_v40 = vpop.f32.mrf.mxu0  ;;  %v5336_v42 = vpop.f32.mrf.mxu1 }
 0x2a5   : > { %v7488_v7 = vadd.f32 %v5551_v40, %v5550_v28  ;;  %v7490_v39 = vadd.f32 %v5336_v42, %v5335_v32  ;;  %v6115_v40 = vld [vmem:[#allocation2 + $0x258] ss:$36 sps:$4 sm:$0xff]   ;;  %v6120_v32 = vld [vmem:[#allocation2 + $0x2a4] ss:$36 sps:$4 sm:$0xff]  }
 0x2a6   : > { %v5553_v3 = vpop.f32.mrf.mxu0  ;;  %v5338_v44 = vpop.f32.mrf.mxu1  ;;  %4333 = vmatmul.mubr.bf16.gmra.mxu1 %v6112_v59 }
 0x2a7   : > { %7900 = vst [vmem:[#allocation21_spill] sm:$0xff] %v7488_v7  ;;  %7901 = vst [vmem:[#allocation22_spill] sm:$0xff] %v7490_v39  ;;  %4340 = vmatprep.mubr.bf16.mxu1 %v6117_v62 }
 0x2a8   : > { %v5554_v49 = vpop.f32.mrf.mxu0  ;;  %v5339_v46 = vpop.f32.mrf.mxu1 }
 0x2a9   : > { %v7492_v20 = vadd.f32 %v5554_v49, %v5553_v3  ;;  %v7494_v26 = vadd.f32 %v5339_v46, %v5338_v44 }
 0x2aa   : > { %v5556_v9 = vpop.f32.mrf.mxu0  ;;  %v5341_v17 = vpop.f32.mrf.mxu1 }
 0x2ab   : > { %7902 = vst [vmem:[#allocation23_spill] sm:$0xff] %v7494_v26  ;;  %v6118_v26 = vld [vmem:[#allocation2 + $0x2a0] ss:$36 sps:$4 sm:$0xff]  }
 0x2ac   : > { %v5557_v13 = vpop.f32.mrf.mxu0  ;;  %v5342_v34 = vpop.f32.mrf.mxu1 }
 0x2ad   : > { %v7496_v28 = vadd.f32 %v5557_v13, %v5556_v9  ;;  %v7498_v42 = vadd.f32 %v5342_v34, %v5341_v17  ;;  %v5253_v17 = vadd.f32 %v7376_v54, %v7374_v48  ;;  %v6121_v54 = vld [vmem:[#allocation2 + $0x2e8] ss:$36 sps:$4 sm:$0xff]  }
 0x2ae   : > { %v5559_v7 = vpop.f32.mrf.mxu0  ;;  %v5360_v39 = vpop.f32.mrf.mxu1  ;;  %4341 = vmatmul.mubr.bf16.gmra.mxu1 %v6115_v40  ;;  %v6123_v40 = vld [vmem:[#allocation2 + $0x2ec] ss:$36 sps:$4 sm:$0xff]  }
 0x2af   : > { %7903 = vst [vmem:[#allocation24_spill] sm:$0xff] %v7496_v28  ;;  %7904 = vst [vmem:[#allocation25_spill] sm:$0xff] %v7498_v42  ;;  %4348 = vmatprep.mubr.bf16.mxu1 %v6120_v32 }
 0x2b0   : > { %v5560_v61 = vpop.f32.mrf.mxu0  ;;  %v5361_v3 = vpop.f32.mrf.mxu1 }
 0x2b1   : > { %v7500_v49 = vadd.f32 %v5560_v61, %v5559_v7  ;;  %v5362_v44 = vadd.f32 %v5361_v3, %v5360_v39 }
 0x2b2   : > { %v5562_v59 = vpop.f32.mrf.mxu0  ;;  %v5363_v62 = vpop.f32.mrf.mxu1 }
 0x2b3   : > { %v3957_v9 = vadd.f32 %v5362_v44, %v7223_v38 }
 0x2b4   : > { %v5563_v46 = vpop.f32.mrf.mxu0  ;;  %v5364_v28 = vpop.f32.mrf.mxu1 }
 0x2b5   : > { %v7503_v13 = vadd.f32 %v5563_v46, %v5562_v59  ;;  %v5365_v42 = vadd.f32 %v5364_v28, %v5363_v62  ;;  %v7508_v61 = vadd.f32 %v7380_v1, %v3957_v9  ;;  %v6126_v1 = vld [vmem:[#allocation2 + $0x334] ss:$36 sps:$4 sm:$0xff]  }
 0x2b6   : > { %v5565_v34 = vpop.f32.mrf.mxu0  ;;  %v5366_v7 = vpop.f32.mrf.mxu1  ;;  %4349 = vmatmul.mubr.bf16.gmra.mxu1 %v6118_v26 }
 0x2b7   : > { %v3960_v39 = vadd.f32 %v5365_v42, %v5253_v17  ;;  %4356 = vmatprep.mubr.bf16.mxu1 %v6123_v40 }
 0x2b8   : > { %v5566_v32 = vpop.f32.mrf.mxu0  ;;  %v5367_v38 = vpop.f32.mrf.mxu1 }
 0x2b9   : > { %v7510_v3 = vadd.f32 %v5566_v32, %v5565_v34  ;;  %v5368_v59 = vadd.f32 %v5367_v38, %v5366_v7  ;;  %v7513_v44 = vadd.f32 %v7384_v50, %v3960_v39  ;;  %v6124_v7 = vld [vmem:[#allocation2 + $0x330] ss:$36 sps:$4 sm:$0xff]   ;;  %v6129_v38 = vld [vmem:[#allocation2 + $0x37c] ss:$36 sps:$4 sm:$0xff]  }
 0x2ba   : > { %v5369_v46 = vpop.f32.mrf.mxu1 }
 0x2bb   : > { %v3965_v48 = vadd.f32 %v5368_v59, %v7378_v60 }
 0x2bc   : > { %v5370_v28 = vpop.f32.mrf.mxu1 }
 0x2bd   : > { %v5371_v62 = vadd.f32 %v5370_v28, %v5369_v46  ;;  %v7517_v9 = vadd.f32 %v7388_v11, %v3965_v48  ;;  %v6127_v28 = vld [vmem:[#allocation2 + $0x378] ss:$36 sps:$4 sm:$0xff]  }
 0x2be   : > { %v5372_v26 = vpop.f32.mrf.mxu1  ;;  %4357 = vmatmul.mubr.bf16.gmra.mxu1 %v6121_v54 }
 0x2bf   : > { %v3968_v42 = vadd.f32 %v5371_v62, %v7382_v2  ;;  %4364 = vmatprep.mubr.bf16.mxu1 %v6126_v1 }
 0x2c0   : > { %v5373_v34 = vpop.f32.mrf.mxu1 }
 0x2c1   : > { %v5374_v17 = vadd.f32 %v5373_v34, %v5372_v26  ;;  %v7521_v50 = vadd.f32 %v7392_v16, %v3968_v42  ;;  %v6132_v26 = vld [vmem:[#allocation2 + $0x3c4] ss:$36 sps:$4 sm:$0xff]  }
 0x2c2   : > { %v5375_v40 = vpop.f32.mrf.mxu1 }
 0x2c3   : > { %v3973_v60 = vadd.f32 %v5374_v17, %v7386_v25 }
 0x2c4   : > { %v5376_v32 = vpop.f32.mrf.mxu1 }
 0x2c5   : > { %v5377_v39 = vadd.f32 %v5376_v32, %v5375_v40  ;;  %v7525_v11 = vadd.f32 %v7396_v22, %v3973_v60  ;;  %v6130_v60 = vld [vmem:[#allocation2 + $0x3c0] ss:$36 sps:$4 sm:$0xff]  }
 0x2c6   : > { %v5378_v59 = vpop.f32.mrf.mxu1  ;;  %4365 = vmatmul.mubr.bf16.gmra.mxu1 %v6124_v7 }
 0x2c7   : > { %v3976_v2 = vadd.f32 %v5377_v39, %v7390_v14  ;;  %4372 = vmatprep.mubr.bf16.mxu1 %v6129_v38  ;;  %v6135_v39 = vld [vmem:[#allocation2 + $0x40c] ss:$36 sps:$4 sm:$0xff]  }
 0x2c8   : > { %v5379_v46 = vpop.f32.mrf.mxu1 }
 0x2c9   : > { %v5380_v48 = vadd.f32 %v5379_v46, %v5378_v59  ;;  %v7529_v16 = vadd.f32 %v7400_v57, %v3976_v2 }
 0x2ca   : > { %v5381_v54 = vpop.f32.mrf.mxu1 }
 0x2cb   : > { %v3981_v25 = vadd.f32 %v5380_v48, %v7394_v19  ;;  %v6139_v48 = vld [vmem:[#allocation2 + $0x454] ss:$36 sps:$4 sm:$0xff]  }
 0x2cc   : > { %v5382_v62 = vpop.f32.mrf.mxu1 }
 0x2cd   : > { %v5383_v1 = vadd.f32 %v5382_v62, %v5381_v54  ;;  %v7533_v22 = vadd.f32 %v7404_v36, %v3981_v25  ;;  %v6133_v54 = vld [vmem:[#allocation2 + $0x408] ss:$36 sps:$4 sm:$0xff]  }
 0x2ce   : > { %v5384_v42 = vpop.f32.mrf.mxu1  ;;  %4373 = vmatmul.mubr.bf16.gmra.mxu1 %v6127_v28 }
 0x2cf   : > { %v3984_v14 = vadd.f32 %v5383_v1, %v7398_v0  ;;  %4380 = vmatprep.mubr.bf16.mxu1 %v6132_v26 }
 0x2d0   : > { %v5385_v34 = vpop.f32.mrf.mxu1 }
 0x2d1   : > { %v5386_v17 = vadd.f32 %v5385_v34, %v5384_v42  ;;  %v7537_v57 = vadd.f32 %v7408_v52, %v3984_v14  ;;  %v6137_v14 = vld [vmem:[#allocation2 + $0x450] ss:$36 sps:$4 sm:$0xff]  }
 0x2d2   : > { %v5387_v40 = vpop.f32.mrf.mxu1 }
 0x2d3   : > { %v3989_v19 = vadd.f32 %v5386_v17, %v7402_v31 }
 0x2d4   : > { %v5388_v7 = vpop.f32.mrf.mxu1 }
 0x2d5   : > { %v5389_v32 = vadd.f32 %v5388_v7, %v5387_v40  ;;  %v7541_v36 = vadd.f32 %v7412_v53, %v3989_v19 }
 0x2d6   : > { %v5390_v38 = vpop.f32.mrf.mxu1  ;;  %4381 = vmatmul.mubr.bf16.gmra.mxu1 %v6130_v60 }
 0x2d7   : > { %v3992_v0 = vadd.f32 %v5389_v32, %v7406_v33  ;;  %4388 = vmatprep.mubr.bf16.mxu1 %v6135_v39 }
 0x2d8   : > { %v5391_v59 = vpop.f32.mrf.mxu1 }
 0x2d9   : > { %v5392_v2 = vadd.f32 %v5391_v59, %v5390_v38  ;;  %v7545_v52 = vadd.f32 %v7416_v8, %v3992_v0 }
 0x2da   : > { %v5393_v46 = vpop.f32.mrf.mxu1 }
 0x2db   : > { %v3997_v31 = vadd.f32 %v5392_v2, %v7410_v56 }
 0x2dc   : > { %v5394_v25 = vpop.f32.mrf.mxu1 }
 0x2dd   : > { %v5395_v28 = vadd.f32 %v5394_v25, %v5393_v46  ;;  %v7549_v53 = vadd.f32 %v7420_v5, %v3997_v31 }
 0x2de   : > { %v5396_v62 = vpop.f32.mrf.mxu1  ;;  %4389 = vmatmul.mubr.bf16.gmra.mxu1 %v6133_v54 }
 0x2df   : > { %v4000_v33 = vadd.f32 %v5395_v28, %v7414_v4  ;;  %4396 = vmatprep.mubr.bf16.mxu1 %v6139_v48 }
 0x2e0   : > { %v5397_v1 = vpop.f32.mrf.mxu1 }
 0x2e1   : > { %v5398_v26 = vadd.f32 %v5397_v1, %v5396_v62  ;;  %v7553_v8 = vadd.f32 %v7424_v23, %v4000_v33 }
 0x2e2   : > { %v5399_v42 = vpop.f32.mrf.mxu1 }
 0x2e3   : > { %v4005_v56 = vadd.f32 %v5398_v26, %v7418_v10 }
 0x2e4   : > { %v5400_v34 = vpop.f32.mrf.mxu1 }
 0x2e5   : > { %v5401_v17 = vadd.f32 %v5400_v34, %v5399_v42  ;;  %v7557_v40 = vadd.f32 %v7430_v37, %v4005_v56 }
 0x2e6   : > { %v5402_v5 = vpop.f32.mrf.mxu1  ;;  %4397 = vmatmul.mubr.bf16.gmra.mxu1 %v6137_v14 }
 0x2e7   : > { %v4008_v19 = vadd.f32 %v5401_v17, %v7422_v18 }
 0x2e8   : > { %v5403_v4 = vpop.f32.mrf.mxu1 }
 0x2e9   : > { %v5404_v60 = vadd.f32 %v5403_v4, %v5402_v5  ;;  %v7561_v7 = vadd.f32 %v7436_v58, %v4008_v19 }
 0x2ea   : > { %v5405_v23 = vpop.f32.mrf.mxu1 }
 0x2eb   : > { %v4013_v32 = vadd.f32 %v5404_v60, %v7426_v27 }
 0x2ec   : > { %v5406_v39 = vpop.f32.mrf.mxu1 }
 0x2ed   : > { %v5407_v38 = vadd.f32 %v5406_v39, %v5405_v23  ;;  %v7565_v10 = vadd.f32 %v7440_v51, %v4013_v32  ;;  %v7905_v23 = vld [vmem:[#allocation10_spill] sm:$0xff] }
 0x2ee   : > { %v5408_v0 = vpop.f32.mrf.mxu1 }
 0x2ef   : > { %v4016_v37 = vadd.f32 %v5407_v38, %v7432_v45  ;;  %v7906_v38 = vld [vmem:[#allocation13_spill] sm:$0xff] }
 0x2f0   : > { %v5409_v59 = vpop.f32.mrf.mxu1 }
 0x2f1   : > { %v5410_v2 = vadd.f32 %v5409_v59, %v5408_v0  ;;  %v7569_v18 = vadd.f32 %v7444_v41, %v4016_v37  ;;  %v7907_v37 = vld [vmem:[#allocation11_spill] sm:$0xff] }
 0x2f2   : > { %v5411_v46 = vpop.f32.mrf.mxu1 }
 0x2f3   : > { %v4021_v58 = vadd.f32 %v5410_v2, %v7438_v6 }
 0x2f4   : > { %v5412_v31 = vpop.f32.mrf.mxu1 }
 0x2f5   : > { %v5413_v48 = vadd.f32 %v5412_v31, %v5411_v46  ;;  %v7573_v27 = vadd.f32 %v7448_v29, %v4021_v58  ;;  %v7908_v46 = vld [vmem:[#allocation15_spill] sm:$0xff]  ;;  %v7909_v31 = vld [vmem:[#allocation12_spill] sm:$0xff] }
 0x2f6   : > { %v5414_v54 = vpop.f32.mrf.mxu1 }
 0x2f7   : > { %v4024_v51 = vadd.f32 %v5413_v48, %v7442_v12 }
 0x2f8   : > { %v5415_v25 = vpop.f32.mrf.mxu1 }
 0x2f9   : > { %v5416_v28 = vadd.f32 %v5415_v25, %v5414_v54  ;;  %v7577_v45 = vadd.f32 %v7452_v43, %v4024_v51  ;;  %v7910_v51 = vld [vmem:[#allocation17_spill] sm:$0xff] }
 0x2fa   : > { %v5417_v62 = vpop.f32.mrf.mxu1 }
 0x2fb   : > { %v4029_v41 = vadd.f32 %v5416_v28, %v7446_v24 }
 0x2fc   : > { %v5418_v33 = vpop.f32.mrf.mxu1 }
 0x2fd   : > { %v5419_v1 = vadd.f32 %v5418_v33, %v5417_v62  ;;  %v7581_v6 = vadd.f32 %v7456_v63, %v4029_v41  ;;  %v7911_v62 = vld [vmem:[#allocation14_spill] sm:$0xff] }
 0x2fe   : > { %v5420_v26 = vpop.f32.mrf.mxu1 }
 0x2ff   : > { %v4032_v29 = vadd.f32 %v5419_v1, %v7450_v35 }
 0x300   : > { %v5421_v42 = vpop.f32.mrf.mxu1 }
 0x301   : > { %v5422_v14 = vadd.f32 %v5421_v42, %v5420_v26  ;;  %v7585_v12 = vadd.f32 %v7460_v15, %v4032_v29  ;;  %v7912_v26 = vld [vmem:[#allocation19_spill] sm:$0xff] }
 0x302   : > { %v5423_v56 = vpop.f32.mrf.mxu1 }
 0x303   : > { %v4037_v43 = vadd.f32 %v5422_v14, %v7454_v47  ;;  %v7913_v14 = vld [vmem:[#allocation16_spill] sm:$0xff] }
 0x304   : > { %v5424_v34 = vpop.f32.mrf.mxu1 }
 0x305   : > { %v5425_v17 = vadd.f32 %v5424_v34, %v5423_v56  ;;  %v7589_v24 = vadd.f32 %v7464_v30, %v4037_v43 }
 0x306   : > { %v5426_v5 = vpop.f32.mrf.mxu1 }
 0x307   : > { %v4040_v63 = vadd.f32 %v5425_v17, %v7458_v21  ;;  %v7914_v17 = vld [vmem:[#allocation21_spill] sm:$0xff] }
 0x308   : > { %v5427_v19 = vpop.f32.mrf.mxu1 }
 0x309   : > { %v5428_v4 = vadd.f32 %v5427_v19, %v5426_v5  ;;  %v7593_v35 = vadd.f32 %v7468_v55, %v4040_v63  ;;  %v7915_v19 = vld [vmem:[#allocation18_spill] sm:$0xff] }
 0x30a   : > { %v5429_v60 = vpop.f32.mrf.mxu1 }
 0x30b   : > { %v4045_v15 = vadd.f32 %v5428_v4, %v7905_v23 }
 0x30c   : > { %v5430_v32 = vpop.f32.mrf.mxu1 }
 0x30d   : > { %v5431_v39 = vadd.f32 %v5430_v32, %v5429_v60  ;;  %v7597_v47 = vadd.f32 %v7906_v38, %v4045_v15 }
 0x30e   : > { %v5432_v0 = vpop.f32.mrf.mxu1 }
 0x30f   : > { %v4048_v30 = vadd.f32 %v5431_v39, %v7907_v37  ;;  %v7916_v39 = vld [vmem:[#allocation20_spill] sm:$0xff] }
 0x310   : > { %v5433_v59 = vpop.f32.mrf.mxu1 }
 0x311   : > { %v5434_v2 = vadd.f32 %v5433_v59, %v5432_v0  ;;  %v7601_v21 = vadd.f32 %v7908_v46, %v4048_v30  ;;  %v7917_v30 = vld [vmem:[#allocation24_spill] sm:$0xff]  ;;  %v7918_v46 = vld [vmem:[#allocation22_spill] sm:$0xff] }
 0x312   : > { %v5435_v58 = vpop.f32.mrf.mxu1 }
 0x313   : > { %v4053_v55 = vadd.f32 %v5434_v2, %v7909_v31 }
 0x314   : > { %v5436_v48 = vpop.f32.mrf.mxu1 }
 0x315   : > { %v5437_v54 = vadd.f32 %v5436_v48, %v5435_v58  ;;  %v7605_v25 = vadd.f32 %v7910_v51, %v4053_v55  ;;  %v7919_v51 = vld [vmem:[#allocation23_spill] sm:$0xff] }
 0x316   : > { %v5438_v28 = vpop.f32.mrf.mxu1 }
 0x317   : > { %v4056_v41 = vadd.f32 %v5437_v54, %v7911_v62 }
 0x318   : > { %v5439_v33 = vpop.f32.mrf.mxu1 }
 0x319   : > { %v5440_v1 = vadd.f32 %v5439_v33, %v5438_v28  ;;  %v7609_v29 = vadd.f32 %v7912_v26, %v4056_v41  ;;  %v5722_v28 = vpop.f32.mrf.mxu0  ;;  %v7920_v26 = vld [vmem:[#allocation25_spill] sm:$0xff] }
 0x31a   : > { %v5441_v42 = vpop.f32.mrf.mxu1 }
 0x31b   : > { %v4061_v56 = vadd.f32 %v5440_v1, %v7913_v14  ;;  %v4439_v14 = vpop.f32.mrf.mxu0 }
 0x31c   : > { %v5442_v43 = vpop.f32.mrf.mxu1 }
 0x31d   : > { %v5443_v34 = vadd.f32 %v5442_v43, %v5441_v42  ;;  %v7613_v5 = vadd.f32 %v7914_v17, %v4061_v56 }
 0x31e   : > { %v5444_v63 = vpop.f32.mrf.mxu1 }
 0x31f   : > { %v4064_v4 = vadd.f32 %v5443_v34, %v7915_v19  ;;  %v7639_v19 = vld [vmem:[%s7865_s6] ss:$0 sm:$0xff] }
 0x320   : > { %v5445_v60 = vpop.f32.mrf.mxu1 }
 0x321   : > { %v5446_v23 = vadd.f32 %v5445_v60, %v5444_v63  ;;  %v7617_v15 = vadd.f32 %v7492_v20, %v4064_v4  ;;  %v5723_v63 = vpop.f32.mrf.mxu0 }
 0x322   : > { %v5447_v32 = vpop.f32.mrf.mxu1 }
 0x323   : > { %v4069_v38 = vadd.f32 %v5446_v23, %v7916_v39  ;;  %v7644_v23 = vld [vmem:[%s7866_s7] ss:$0 sm:$0xff]  ;;  %v4442_v39 = vpop.f32.mrf.mxu0 }
 0x324   : > { %v5448_v0 = vpop.f32.mrf.mxu1 }
 0x325   : > { %v5449_v37 = vadd.f32 %v5448_v0, %v5447_v32  ;;  %v7621_v59 = vadd.f32 %v7917_v30, %v4069_v38  ;;  %v4644_v38 = vld [vmem:[%s6393_s23] sm:$0xff] }
 0x326   : > { %v5450_v2 = vpop.f32.mrf.mxu1 }
 0x327   : > { %v4072_v58 = vadd.f32 %v5449_v37, %v7918_v46 }
 0x328   : > { %v5451_v31 = vpop.f32.mrf.mxu1 }
 0x329   : > { %v5452_v55 = vadd.f32 %v5451_v31, %v5450_v2  ;;  %v7625_v48 = vadd.f32 %v7500_v49, %v4072_v58 }
 0x32a   : > { %v5453_v54 = vpop.f32.mrf.mxu1 }
 0x32b   : > { %v4077_v20 = vadd.f32 %v5452_v55, %v7919_v51  ;;  %v4645_v51 = vld [vmem:[%s6393_s23 + $0x8] sm:$0xff] }
 0x32c   : > { %v5454_v62 = vpop.f32.mrf.mxu1 }
 0x32d   : > { %v5455_v41 = vadd.f32 %v5454_v62, %v5453_v54  ;;  %v7629_v33 = vadd.f32 %v7503_v13, %v4077_v20  ;;  %v5726_v54 = vpop.f32.mrf.mxu0 }
 0x32e   : > { %v5584_v1 = vpop.f32.mrf.mxu1 }
 0x32f   : > { %v4080_v42 = vadd.f32 %v5455_v41, %v7920_v26 }
 0x330   : > { %v5585_v56 = vpop.f32.mrf.mxu1 }
 0x331   : > { %v5586_v43 = vadd.f32 %v5585_v56, %v5584_v1  ;;  %v7633_v34 = vadd.f32 %v7510_v3, %v4080_v42  ;;  %v4455_v56 = vpop.f32.mrf.mxu0 }
 0x332   : > { %v5587_v49 = vpop.f32.mrf.mxu1 }
 0x333   : > { %v4279_v17 = vadd.f32 %v5586_v43, %v7508_v61  ;;  %v4646_v43 = vld [vmem:[%s6393_s23 + $0x10] sm:$0xff] }
 0x334   : > { %v5588_v13 = vpop.f32.mrf.mxu1 }
 0x335   : > { %v4440_v4 = vadd.f32 %v4439_v14, %v4279_v17  ;;  %v5589_v60 = vadd.f32 %v5588_v13, %v5587_v49 }
 0x336   : > { %v5590_v3 = vpop.f32.mrf.mxu1 }
 0x337   : > { %v4573_v32 = vmul.f32 %v7639_v19, %v4440_v4  ;;  %v4282_v61 = vadd.f32 %v5589_v60, %v7513_v44 }
 0x338   : > { %v5591_v0 = vpop.f32.mrf.mxu1 }
 0x339   : > { %v4612_v37 = vadd.f32 %v7644_v23, %v4573_v32  ;;  %v4443_v30 = vadd.f32 %v4442_v39, %v4282_v61  ;;  %v5592_v2 = vadd.f32 %v5591_v0, %v5590_v3  ;;  %v5727_v39 = vpop.f32.mrf.mxu0 }
 0x33a   : > { %v5593_v46 = vpop.f32.mrf.mxu1 }
 0x33b   : > { %v4676_v58 = vadd.f32 %v4644_v38, %v4612_v37  ;;  %v4574_v31 = vmul.f32 %v7639_v19, %v4443_v30  ;;  %v4287_v55 = vadd.f32 %v5592_v2, %v7517_v9  ;;  %v4647_v38 = vld [vmem:[%s6393_s23 + $0x18] sm:$0xff] }
 0x33c   : > { %v5594_v20 = vpop.f32.mrf.mxu1 }
 0x33d   : > { %v4708_v62 = vmax.f32 %v4676_v58, 0.0  ;;  %v4613_v44 = vadd.f32 %v7644_v23, %v4574_v31  ;;  %v4448_v41 = vadd.f32 %v5722_v28, %v4287_v55  ;;  %v5595_v1 = vadd.f32 %v5594_v20, %v5593_v46  ;;  %v4458_v55 = vpop.f32.mrf.mxu0 }
 0x33e   : > { %v5596_v26 = vpop.f32.mrf.mxu1 }
 0x33f   : > { %4740 = vst [vmem:[%s7656_s10] sm:$0xff] %v4708_v62  ;;  %v4677_v42 = vadd.f32 %v4645_v51, %v4613_v44  ;;  %v4575_v14 = vmul.f32 %v7639_v19, %v4448_v41  ;;  %v4290_v9 = vadd.f32 %v5595_v1, %v7521_v50  ;;  %v4648_v51 = vld [vmem:[%s6393_s23 + $0x20] sm:$0xff] }
 0x340   : > { %v5597_v49 = vpop.f32.mrf.mxu1 }
 0x341   : > { %v4709_v17 = vmax.f32 %v4677_v42, 0.0  ;;  %v4614_v28 = vadd.f32 %v7644_v23, %v4575_v14  ;;  %v4451_v13 = vadd.f32 %v5723_v63, %v4290_v9  ;;  %v5598_v4 = vadd.f32 %v5597_v49, %v5596_v26  ;;  %v5730_v9 = vpop.f32.mrf.mxu0 }
 0x342   : > { %v5599_v60 = vpop.f32.mrf.mxu1 }
 0x343   : > { %4741 = vst [vmem:[%s7656_s10 + $0x8] sm:$0xff] %v4709_v17  ;;  %v4678_v3 = vadd.f32 %v4646_v43, %v4614_v28  ;;  %v4576_v32 = vmul.f32 %v7639_v19, %v4451_v13  ;;  %v4295_v61 = vadd.f32 %v5598_v4, %v7525_v11 }
 0x344   : > { %v5600_v50 = vpop.f32.mrf.mxu1 }
 0x345   : > { %v4710_v0 = vmax.f32 %v4678_v3, 0.0  ;;  %v4615_v37 = vadd.f32 %v7644_v23, %v4576_v32  ;;  %v4456_v30 = vadd.f32 %v4455_v56, %v4295_v61  ;;  %v5601_v2 = vadd.f32 %v5600_v50, %v5599_v60  ;;  %v4649_v56 = vld [vmem:[%s6393_s23 + $0x28] sm:$0xff]  ;;  %v4471_v32 = vpop.f32.mrf.mxu0  ;;  %v4650_v61 = vld [vmem:[%s6393_s23 + $0x30] sm:$0xff] }
 0x346   : > { %v5602_v46 = vpop.f32.mrf.mxu1 }
 0x347   : > { %4742 = vst [vmem:[%s7656_s10 + $0x10] sm:$0xff] %v4710_v0  ;;  %v4679_v63 = vadd.f32 %v4647_v38, %v4615_v37  ;;  %v4577_v58 = vmul.f32 %v7639_v19, %v4456_v30  ;;  %v4298_v31 = vadd.f32 %v5601_v2, %v7529_v16 }
 0x348   : > { %v5603_v11 = vpop.f32.mrf.mxu1 }
 0x349   : > { %v4711_v20 = vmax.f32 %v4679_v63, 0.0  ;;  %v4616_v62 = vadd.f32 %v7644_v23, %v4577_v58  ;;  %v4459_v44 = vadd.f32 %v4458_v55, %v4298_v31  ;;  %v5604_v41 = vadd.f32 %v5603_v11, %v5602_v46  ;;  %v5731_v63 = vpop.f32.mrf.mxu0  ;;  %v4651_v58 = vld [vmem:[%s6393_s23 + $0x38] sm:$0xff] }
 0x34a   : > { %v5605_v1 = vpop.f32.mrf.mxu1 }
 0x34b   : > { %4743 = vst [vmem:[%s7656_s10 + $0x18] sm:$0xff] %v4711_v20  ;;  %v4680_v26 = vadd.f32 %v4648_v51, %v4616_v62  ;;  %v4578_v42 = vmul.f32 %v7639_v19, %v4459_v44  ;;  %v4303_v14 = vadd.f32 %v5604_v41, %v7533_v22  ;;  %v4474_v41 = vpop.f32.mrf.mxu0 }
 0x34c   : > { %v5606_v16 = vpop.f32.mrf.mxu1 }
 0x34d   : > { %v4712_v43 = vmax.f32 %v4680_v26, 0.0  ;;  %v4617_v49 = vadd.f32 %v7644_v23, %v4578_v42  ;;  %v4464_v17 = vadd.f32 %v5726_v54, %v4303_v14  ;;  %v5607_v28 = vadd.f32 %v5606_v16, %v5605_v1  ;;  %v4652_v1 = vld [vmem:[%s6393_s23 + $0x40] sm:$0xff] }
 0x34e   : > { %v5608_v13 = vpop.f32.mrf.mxu1 }
 0x34f   : > { %4744 = vst [vmem:[%s7656_s10 + $0x20] sm:$0xff] %v4712_v43  ;;  %v4681_v4 = vadd.f32 %v4649_v56, %v4617_v49  ;;  %v4579_v60 = vmul.f32 %v7639_v19, %v4464_v17  ;;  %v4306_v3 = vadd.f32 %v5607_v28, %v7537_v57  ;;  %v5734_v28 = vpop.f32.mrf.mxu0 }
 0x350   : > { %v5609_v22 = vpop.f32.mrf.mxu1 }
 0x351   : > { %v4713_v38 = vmax.f32 %v4681_v4, 0.0  ;;  %v4618_v50 = vadd.f32 %v7644_v23, %v4579_v60  ;;  %v4467_v0 = vadd.f32 %v5727_v39, %v4306_v3  ;;  %v5610_v37 = vadd.f32 %v5609_v22, %v5608_v13  ;;  %v4653_v13 = vld [vmem:[%s6393_s23 + $0x48] sm:$0xff] }
 0x352   : > { %v5611_v30 = vpop.f32.mrf.mxu1 }
 0x353   : > { %4745 = vst [vmem:[%s7656_s10 + $0x28] sm:$0xff] %v4713_v38  ;;  %v4682_v54 = vadd.f32 %v4650_v61, %v4618_v50  ;;  %v4580_v2 = vmul.f32 %v7639_v19, %v4467_v0  ;;  %v4311_v46 = vadd.f32 %v5610_v37, %v7541_v36  ;;  %v4487_v0 = vpop.f32.mrf.mxu0  ;;  %v4654_v37 = vld [vmem:[%s6393_s23 + $0x50] sm:$0xff] }
 0x354   : > { %v5612_v57 = vpop.f32.mrf.mxu1 }
 0x355   : > { %v4714_v31 = vmax.f32 %v4682_v54, 0.0  ;;  %v4619_v55 = vadd.f32 %v7644_v23, %v4580_v2  ;;  %v4472_v51 = vadd.f32 %v4471_v32, %v4311_v46  ;;  %v5613_v11 = vadd.f32 %v5612_v57, %v5611_v30 }
 0x356   : > { %v5614_v20 = vpop.f32.mrf.mxu1 }
 0x357   : > { %4746 = vst [vmem:[%s7656_s10 + $0x30] sm:$0xff] %v4714_v31  ;;  %v4683_v39 = vadd.f32 %v4651_v58, %v4619_v55  ;;  %v4581_v62 = vmul.f32 %v7639_v19, %v4472_v51  ;;  %v4314_v44 = vadd.f32 %v5613_v11, %v7545_v52  ;;  %v5735_v55 = vpop.f32.mrf.mxu0  ;;  %v4655_v51 = vld [vmem:[%s6393_s23 + $0x58] sm:$0xff] }
 0x358   : > { %v5615_v36 = vpop.f32.mrf.mxu1 }
 0x359   : > { %v4715_v26 = vmax.f32 %v4683_v39, 0.0  ;;  %v4620_v42 = vadd.f32 %v7644_v23, %v4581_v62  ;;  %v4475_v14 = vadd.f32 %v4474_v41, %v4314_v44  ;;  %v5616_v56 = vadd.f32 %v5615_v36, %v5614_v20  ;;  %v4490_v36 = vpop.f32.mrf.mxu0 }
 0x35a   : > { %v5617_v16 = vpop.f32.mrf.mxu1 }
 0x35b   : > { %4747 = vst [vmem:[%s7656_s10 + $0x38] sm:$0xff] %v4715_v26  ;;  %v4684_v43 = vadd.f32 %v4652_v1, %v4620_v42  ;;  %v4582_v49 = vmul.f32 %v7639_v19, %v4475_v14  ;;  %v4319_v17 = vadd.f32 %v5616_v56, %v7549_v53  ;;  %v4656_v26 = vld [vmem:[%s6393_s23 + $0x60] sm:$0xff] }
 0x35c   : > { %v5618_v52 = vpop.f32.mrf.mxu1 }
 0x35d   : > { %v4716_v4 = vmax.f32 %v4684_v43, 0.0  ;;  %v4621_v60 = vadd.f32 %v7644_v23, %v4582_v49  ;;  %v4480_v3 = vadd.f32 %v5730_v9, %v4319_v17  ;;  %v5619_v32 = vadd.f32 %v5618_v52, %v5617_v16  ;;  %v5738_v52 = vpop.f32.mrf.mxu0 }
 0x35e   : > { %v5620_v61 = vpop.f32.mrf.mxu1 }
 0x35f   : > { %4748 = vst [vmem:[%s7656_s10 + $0x40] sm:$0xff] %v4716_v4  ;;  %v4685_v22 = vadd.f32 %v4653_v13, %v4621_v60  ;;  %v4583_v38 = vmul.f32 %v7639_v19, %v4480_v3  ;;  %v4322_v50 = vadd.f32 %v5619_v32, %v7553_v8  ;;  %v4657_v4 = vld [vmem:[%s6393_s23 + $0x68] sm:$0xff] }
 0x360   : > { %v5621_v53 = vpop.f32.mrf.mxu1 }
 0x361   : > { %v4717_v30 = vmax.f32 %v4685_v22, 0.0  ;;  %v4622_v54 = vadd.f32 %v7644_v23, %v4583_v38  ;;  %v4483_v2 = vadd.f32 %v5731_v63, %v4322_v50  ;;  %v5622_v46 = vadd.f32 %v5621_v53, %v5620_v61  ;;  %v4658_v53 = vld [vmem:[%s6393_s23 + $0x70] sm:$0xff] }
 0x362   : > { %v5623_v58 = vpop.f32.mrf.mxu1 }
 0x363   : > { %4749 = vst [vmem:[%s7656_s10 + $0x48] sm:$0xff] %v4717_v30  ;;  %v4686_v9 = vadd.f32 %v4654_v37, %v4622_v54  ;;  %v4584_v57 = vmul.f32 %v7639_v19, %v4483_v2  ;;  %v4327_v31 = vadd.f32 %v5622_v46, %v7557_v40  ;;  %v4503_v37 = vpop.f32.mrf.mxu0 }
 0x364   : > { %v5624_v8 = vpop.f32.mrf.mxu1 }
 0x365   : > { %v4718_v11 = vmax.f32 %v4686_v9, 0.0  ;;  %v4623_v20 = vadd.f32 %v7644_v23, %v4584_v57  ;;  %v4488_v39 = vadd.f32 %v4487_v0, %v4327_v31  ;;  %v5625_v62 = vadd.f32 %v5624_v8, %v5623_v58  ;;  %v5739_v31 = vpop.f32.mrf.mxu0 }
 0x366   : > { %v5626_v44 = vpop.f32.mrf.mxu1 }
 0x367   : > { %4750 = vst [vmem:[%s7656_s10 + $0x50] sm:$0xff] %v4718_v11  ;;  %v4687_v63 = vadd.f32 %v4655_v51, %v4623_v20  ;;  %v4585_v41 = vmul.f32 %v7639_v19, %v4488_v39  ;;  %v4330_v1 = vadd.f32 %v5625_v62, %v7561_v7  ;;  %v4659_v51 = vld [vmem:[%s6393_s23 + $0x78] sm:$0xff] }
 0x368   : > { %v5627_v40 = vpop.f32.mrf.mxu1 }
 0x369   : > { %v4719_v42 = vmax.f32 %v4687_v63, 0.0  ;;  %v4624_v14 = vadd.f32 %v7644_v23, %v4585_v41  ;;  %v4491_v56 = vadd.f32 %v4490_v36, %v4330_v1  ;;  %v5628_v16 = vadd.f32 %v5627_v40, %v5626_v44  ;;  %v4506_v41 = vpop.f32.mrf.mxu0  ;;  %v4660_v1 = vld [vmem:[%s6393_s23 + $0x80] sm:$0xff] }
 0x36a   : > { %v5629_v43 = vpop.f32.mrf.mxu1 }
 0x36b   : > { %4751 = vst [vmem:[%s7656_s10 + $0x58] sm:$0xff] %v4719_v42  ;;  %v4688_v49 = vadd.f32 %v4656_v26, %v4624_v14  ;;  %v4586_v17 = vmul.f32 %v7639_v19, %v4491_v56  ;;  %v4335_v13 = vadd.f32 %v5628_v16, %v7565_v10 }
 0x36c   : > { %v5630_v7 = vpop.f32.mrf.mxu1 }
 0x36d   : > { %v4720_v60 = vmax.f32 %v4688_v49, 0.0  ;;  %v4625_v3 = vadd.f32 %v7644_v23, %v4586_v17  ;;  %v4496_v32 = vadd.f32 %v5734_v28, %v4335_v13  ;;  %v5631_v61 = vadd.f32 %v5630_v7, %v5629_v43  ;;  %v5742_v49 = vpop.f32.mrf.mxu0  ;;  %v4661_v17 = vld [vmem:[%s6393_s23 + $0x88] sm:$0xff] }
 0x36e   : > { %v5632_v22 = vpop.f32.mrf.mxu1 }
 0x36f   : > { %4752 = vst [vmem:[%s7656_s10 + $0x60] sm:$0xff] %v4720_v60  ;;  %v4689_v38 = vadd.f32 %v4657_v4, %v4625_v3  ;;  %v4587_v50 = vmul.f32 %v7639_v19, %v4496_v32  ;;  %v4338_v0 = vadd.f32 %v5631_v61, %v7569_v18 }
 0x370   : > { %v5633_v10 = vpop.f32.mrf.mxu1 }
 0x371   : > { %v4721_v30 = vmax.f32 %v4689_v38, 0.0  ;;  %v4626_v54 = vadd.f32 %v7644_v23, %v4587_v50  ;;  %v4499_v2 = vadd.f32 %v5735_v55, %v4338_v0  ;;  %v5634_v46 = vadd.f32 %v5633_v10, %v5632_v22  ;;  %v4519_v38 = vpop.f32.mrf.mxu0  ;;  %v4662_v50 = vld [vmem:[%s6393_s23 + $0x90] sm:$0xff] }
 0x372   : > { %v5635_v58 = vpop.f32.mrf.mxu1 }
 0x373   : > { %4753 = vst [vmem:[%s7656_s10 + $0x68] sm:$0xff] %v4721_v30  ;;  %v4690_v28 = vadd.f32 %v4658_v53, %v4626_v54  ;;  %v4588_v9 = vmul.f32 %v7639_v19, %v4499_v2  ;;  %v4343_v57 = vadd.f32 %v5634_v46, %v7573_v27  ;;  %v5743_v46 = vpop.f32.mrf.mxu0 }
 0x374   : > { %v5636_v18 = vpop.f32.mrf.mxu1 }
 0x375   : > { %v4722_v8 = vmax.f32 %v4690_v28, 0.0  ;;  %v4627_v11 = vadd.f32 %v7644_v23, %v4588_v9  ;;  %v4504_v20 = vadd.f32 %v4503_v37, %v4343_v57  ;;  %v5637_v39 = vadd.f32 %v5636_v18, %v5635_v58  ;;  %v4663_v58 = vld [vmem:[%s6393_s23 + $0x98] sm:$0xff] }
 0x376   : > { %v5638_v62 = vpop.f32.mrf.mxu1 }
 0x377   : > { %4754 = vst [vmem:[%s7656_s10 + $0x70] sm:$0xff] %v4722_v8  ;;  %v4691_v55 = vadd.f32 %v4659_v51, %v4627_v11  ;;  %v4589_v44 = vmul.f32 %v7639_v19, %v4504_v20  ;;  %v4346_v63 = vadd.f32 %v5637_v39, %v7577_v45  ;;  %v4522_v20 = vpop.f32.mrf.mxu0  ;;  %v4664_v39 = vld [vmem:[%s6393_s23 + $0xa0] sm:$0xff] }
 0x378   : > { %v5639_v27 = vpop.f32.mrf.mxu1 }
 0x379   : > { %v4723_v36 = vmax.f32 %v4691_v55, 0.0  ;;  %v4628_v26 = vadd.f32 %v7644_v23, %v4589_v44  ;;  %v4507_v40 = vadd.f32 %v4506_v41, %v4346_v63  ;;  %v5640_v42 = vadd.f32 %v5639_v27, %v5638_v62 }
 0x37a   : > { %v5641_v14 = vpop.f32.mrf.mxu1 }
 0x37b   : > { %4755 = vst [vmem:[%s7656_s10 + $0x78] sm:$0xff] %v4723_v36  ;;  %v4692_v56 = vadd.f32 %v4660_v1, %v4628_v26  ;;  %v4590_v16 = vmul.f32 %v7639_v19, %v4507_v40  ;;  %v4351_v43 = vadd.f32 %v5640_v42, %v7581_v6  ;;  %v5746_v26 = vpop.f32.mrf.mxu0  ;;  %v4665_v40 = vld [vmem:[%s6393_s23 + $0xa8] sm:$0xff] }
 0x37c   : > { %v5642_v45 = vpop.f32.mrf.mxu1 }
 0x37d   : > { %v4724_v13 = vmax.f32 %v4692_v56, 0.0  ;;  %v4629_v4 = vadd.f32 %v7644_v23, %v4590_v16  ;;  %v4512_v7 = vadd.f32 %v5738_v52, %v4351_v43  ;;  %v5643_v60 = vadd.f32 %v5642_v45, %v5641_v14 }
 0x37e   : > { %v5644_v3 = vpop.f32.mrf.mxu1 }
 0x37f   : > { %4756 = vst [vmem:[%s7656_s10 + $0x80] sm:$0xff] %v4724_v13  ;;  %v4693_v32 = vadd.f32 %v4661_v17, %v4629_v4  ;;  %v4591_v61 = vmul.f32 %v7639_v19, %v4512_v7  ;;  %v4354_v22 = vadd.f32 %v5643_v60, %v7585_v12  ;;  %v4535_v4 = vpop.f32.mrf.mxu0  ;;  %v4666_v7 = vld [vmem:[%s6393_s23 + $0xb0] sm:$0xff] }
 0x380   : > { %v5645_v6 = vpop.f32.mrf.mxu1 }
 0x381   : > { %v4725_v0 = vmax.f32 %v4693_v32, 0.0  ;;  %v4630_v37 = vadd.f32 %v7644_v23, %v4591_v61  ;;  %v4515_v53 = vadd.f32 %v5739_v31, %v4354_v22  ;;  %v5646_v10 = vadd.f32 %v5645_v6, %v5644_v3  ;;  %v5747_v6 = vpop.f32.mrf.mxu0 }
 0x382   : > { %v5647_v30 = vpop.f32.mrf.mxu1 }
 0x383   : > { %4757 = vst [vmem:[%s7656_s10 + $0x88] sm:$0xff] %v4725_v0  ;;  %v4694_v52 = vadd.f32 %v4662_v50, %v4630_v37  ;;  %v4592_v54 = vmul.f32 %v7639_v19, %v4515_v53  ;;  %v4359_v2 = vadd.f32 %v5646_v10, %v7589_v24  ;;  %v4667_v0 = vld [vmem:[%s6393_s23 + $0xb8] sm:$0xff] }
 0x384   : > { %v5648_v12 = vpop.f32.mrf.mxu1 }
 0x385   : > { %v4726_v28 = vmax.f32 %v4694_v52, 0.0  ;;  %v4631_v9 = vadd.f32 %v7644_v23, %v4592_v54  ;;  %v4520_v57 = vadd.f32 %v4519_v38, %v4359_v2  ;;  %v5649_v51 = vadd.f32 %v5648_v12, %v5647_v30  ;;  %v4668_v12 = vld [vmem:[%s6393_s23 + $0xc0] sm:$0xff] }
 0x386   : > { %v5650_v18 = vpop.f32.mrf.mxu1 }
 0x387   : > { %4758 = vst [vmem:[%s7656_s10 + $0x90] sm:$0xff] %v4726_v28  ;;  %v4695_v31 = vadd.f32 %v4663_v58, %v4631_v9  ;;  %v4593_v8 = vmul.f32 %v7639_v19, %v4520_v57  ;;  %v4362_v11 = vadd.f32 %v5649_v51, %v7593_v35  ;;  %v4538_v58 = vpop.f32.mrf.mxu0 }
 0x388   : > { %v5651_v24 = vpop.f32.mrf.mxu1 }
 0x389   : > { %v4727_v62 = vmax.f32 %v4695_v31, 0.0  ;;  %v4632_v55 = vadd.f32 %v7644_v23, %v4593_v8  ;;  %v4523_v44 = vadd.f32 %v4522_v20, %v4362_v11  ;;  %v5652_v63 = vadd.f32 %v5651_v24, %v5650_v18  ;;  %v5750_v31 = vpop.f32.mrf.mxu0 }
 0x38a   : > { %v5653_v41 = vpop.f32.mrf.mxu1 }
 0x38b   : > { %4759 = vst [vmem:[%s7656_s10 + $0x98] sm:$0xff] %v4727_v62  ;;  %v4696_v1 = vadd.f32 %v4664_v39, %v4632_v55  ;;  %v4594_v27 = vmul.f32 %v7639_v19, %v4523_v44  ;;  %v4367_v36 = vadd.f32 %v5652_v63, %v7597_v47  ;;  %v4669_v39 = vld [vmem:[%s6393_s23 + $0xc8] sm:$0xff] }
 0x38c   : > { %v5654_v35 = vpop.f32.mrf.mxu1 }
 0x38d   : > { %v4728_v42 = vmax.f32 %v4696_v1, 0.0  ;;  %v4633_v14 = vadd.f32 %v7644_v23, %v4594_v27  ;;  %v4528_v56 = vadd.f32 %v5742_v49, %v4367_v36  ;;  %v5655_v16 = vadd.f32 %v5654_v35, %v5653_v41  ;;  %v4551_v41 = vpop.f32.mrf.mxu0 }
 0x38e   : > { %v5656_v43 = vpop.f32.mrf.mxu1 }
 0x38f   : > { %4760 = vst [vmem:[%s7656_s10 + $0xa0] sm:$0xff] %v4728_v42  ;;  %v4697_v17 = vadd.f32 %v4665_v40, %v4633_v14  ;;  %v4595_v45 = vmul.f32 %v7639_v19, %v4528_v56  ;;  %v4370_v13 = vadd.f32 %v5655_v16, %v7601_v21  ;;  %v4670_v40 = vld [vmem:[%s6393_s23 + $0xd0] sm:$0xff]  ;;  %v5751_v16 = vpop.f32.mrf.mxu0 }
 0x390   : > { %v5657_v47 = vpop.f32.mrf.mxu1 }
 0x391   : > { %v4729_v60 = vmax.f32 %v4697_v17, 0.0  ;;  %v4634_v3 = vadd.f32 %v7644_v23, %v4595_v45  ;;  %v4531_v32 = vadd.f32 %v5743_v46, %v4370_v13  ;;  %v5658_v61 = vadd.f32 %v5657_v47, %v5656_v43  ;;  %v4671_v13 = vld [vmem:[%s6393_s23 + $0xd8] sm:$0xff] }
 0x392   : > { %v5659_v22 = vpop.f32.mrf.mxu1 }
 0x393   : > { %4761 = vst [vmem:[%s7656_s10 + $0xa8] sm:$0xff] %v4729_v60  ;;  %v4698_v49 = vadd.f32 %v4666_v7, %v4634_v3  ;;  %v4596_v38 = vmul.f32 %v7639_v19, %v4531_v32  ;;  %v4375_v50 = vadd.f32 %v5658_v61, %v7605_v25  ;;  %v4554_v32 = vpop.f32.mrf.mxu0 }
 0x394   : > { %v5660_v21 = vpop.f32.mrf.mxu1 }
 0x395   : > { %v4730_v37 = vmax.f32 %v4698_v49, 0.0  ;;  %v4635_v53 = vadd.f32 %v7644_v23, %v4596_v38  ;;  %v4536_v10 = vadd.f32 %v4535_v4, %v4375_v50  ;;  %v5661_v30 = vadd.f32 %v5660_v21, %v5659_v22  ;;  %v4672_v38 = vld [vmem:[%s6393_s23 + $0xe0] sm:$0xff] }
 0x396   : > { %v5662_v52 = vpop.f32.mrf.mxu1 }
 0x397   : > { %4762 = vst [vmem:[%s7656_s10 + $0xb0] sm:$0xff] %v4730_v37  ;;  %v4699_v54 = vadd.f32 %v4667_v0, %v4635_v53  ;;  %v4597_v2 = vmul.f32 %v7639_v19, %v4536_v10  ;;  %v4378_v46 = vadd.f32 %v5661_v30, %v7609_v29 }
 0x398   : > { %v5663_v25 = vpop.f32.mrf.mxu1 }
 0x399   : > { %v4731_v28 = vmax.f32 %v4699_v54, 0.0  ;;  %v4636_v9 = vadd.f32 %v7644_v23, %v4597_v2  ;;  %v4539_v57 = vadd.f32 %v4538_v58, %v4378_v46  ;;  %v5664_v51 = vadd.f32 %v5663_v25, %v5662_v52  ;;  %v4673_v52 = vld [vmem:[%s6393_s23 + $0xe8] sm:$0xff] }
 0x39a   : > { %v5665_v18 = vpop.f32.mrf.mxu1 }
 0x39b   : > { %4763 = vst [vmem:[%s7656_s10 + $0xb8] sm:$0xff] %v4731_v28  ;;  %v4700_v8 = vadd.f32 %v4668_v12, %v4636_v9  ;;  %v4598_v11 = vmul.f32 %v7639_v19, %v4539_v57  ;;  %v4383_v20 = vadd.f32 %v5664_v51, %v7613_v5  ;;  %v4674_v28 = vld [vmem:[%s6393_s23 + $0xf0] sm:$0xff] }
 0x39c   : > { %v5666_v29 = vpop.f32.mrf.mxu1 }
 0x39d   : > { %v4732_v24 = vmax.f32 %v4700_v8, 0.0  ;;  %v4637_v62 = vadd.f32 %v7644_v23, %v4598_v11  ;;  %v4544_v55 = vadd.f32 %v5746_v26, %v4383_v20  ;;  %v5667_v44 = vadd.f32 %v5666_v29, %v5665_v18  ;;  %v4675_v8 = vld [vmem:[%s6393_s23 + $0xf8] sm:$0xff]  ;;  %s4773_s23 = scalar_lea.sflag [#allocation5], %s6387_s14 }
 0x39e   : > { %v5668_v63 = vpop.f32.mrf.mxu1 }
 0x39f   : > { %4764 = vst [vmem:[%s7656_s10 + $0xc0] sm:$0xff] %v4732_v24  ;;  %v4701_v1 = vadd.f32 %v4669_v39, %v4637_v62  ;;  %v4599_v27 = vmul.f32 %v7639_v19, %v4544_v55  ;;  %v4386_v36 = vadd.f32 %v5667_v44, %v7617_v15 }
 0x3a0   : > { %v5669_v35 = vpop.f32.mrf.mxu1 }
 0x3a1   : > { %v4733_v5 = vmax.f32 %v4701_v1, 0.0  ;;  %v4638_v42 = vadd.f32 %v7644_v23, %v4599_v27  ;;  %v4547_v14 = vadd.f32 %v5747_v6, %v4386_v36  ;;  %v5670_v56 = vadd.f32 %v5669_v35, %v5668_v63 }
 0x3a2   : > { %v5671_v26 = vpop.f32.mrf.mxu1 }
 0x3a3   : > { %4765 = vst [vmem:[%s7656_s10 + $0xc8] sm:$0xff] %v4733_v5  ;;  %v4702_v43 = vadd.f32 %v4670_v40, %v4638_v42  ;;  %v4600_v17 = vmul.f32 %v7639_v19, %v4547_v14  ;;  %v4391_v45 = vadd.f32 %v5670_v56, %v7621_v59 }
 0x3a4   : > { %v5672_v4 = vpop.f32.mrf.mxu1 }
 0x3a5   : > { %v4734_v15 = vmax.f32 %v4702_v43, 0.0  ;;  %v4639_v7 = vadd.f32 %v7644_v23, %v4600_v17  ;;  %v5673_v47 = vadd.f32 %v5672_v4, %v5671_v26  ;;  %v4552_v60 = vadd.f32 %v4551_v41, %v4391_v45 }
 0x3a6   : > { %v5674_v3 = vpop.f32.mrf.mxu1 }
 0x3a7   : > { %4766 = vst [vmem:[%s7656_s10 + $0xd0] sm:$0xff] %v4734_v15  ;;  %v4703_v61 = vadd.f32 %v4671_v13, %v4639_v7  ;;  %v4601_v22 = vmul.f32 %v7639_v19, %v4552_v60  ;;  %v4394_v49 = vadd.f32 %v5673_v47, %v7625_v48 }
 0x3a8   : > { %v5675_v50 = vpop.f32.mrf.mxu1 }
 0x3a9   : > { %v4735_v59 = vmax.f32 %v4703_v61, 0.0  ;;  %v4640_v6 = vadd.f32 %v7644_v23, %v4601_v22  ;;  %v5676_v0 = vadd.f32 %v5675_v50, %v5674_v3  ;;  %v4555_v21 = vadd.f32 %v4554_v32, %v4394_v49 }
 0x3aa   : > { %v5677_v37 = vpop.f32.mrf.mxu1 }
 0x3ab   : > { %4767 = vst [vmem:[%s7656_s10 + $0xd8] sm:$0xff] %v4735_v59  ;;  %v4704_v53 = vadd.f32 %v4672_v38, %v4640_v6  ;;  %v4399_v10 = vadd.f32 %v5676_v0, %v7629_v33  ;;  %v4602_v30 = vmul.f32 %v7639_v19, %v4555_v21 }
 0x3ac   : > { %v5678_v54 = vpop.f32.mrf.mxu1 }
 0x3ad   : > { %v4736_v48 = vmax.f32 %v4704_v53, 0.0  ;;  %v4560_v2 = vadd.f32 %v5750_v31, %v4399_v10  ;;  %v4641_v46 = vadd.f32 %v7644_v23, %v4602_v30  ;;  %v5679_v58 = vadd.f32 %v5678_v54, %v5677_v37 }
 0x3af   : > { %4768 = vst [vmem:[%s7656_s10 + $0xe0] sm:$0xff] %v4736_v48  ;;  %v4603_v12 = vmul.f32 %v7639_v19, %v4560_v2  ;;  %v4705_v25 = vadd.f32 %v4673_v52, %v4641_v46  ;;  %v4402_v33 = vadd.f32 %v5679_v58, %v7633_v34 }
 0x3b1   : > { %v4642_v9 = vadd.f32 %v7644_v23, %v4603_v12  ;;  %v4737_v57 = vmax.f32 %v4705_v25, 0.0  ;;  %v4563_v51 = vadd.f32 %v5751_v16, %v4402_v33 }
 0x3b3   : > { %v4706_v18 = vadd.f32 %v4674_v28, %v4642_v9  ;;  %4769 = vst [vmem:[%s7656_s10 + $0xe8] sm:$0xff] %v4737_v57  ;;  %v4604_v31 = vmul.f32 %v7639_v19, %v4563_v51 }
 0x3b5   : > { %v4738_v11 = vmax.f32 %v4706_v18, 0.0  ;;  %v4643_v20 = vadd.f32 %v7644_v23, %v4604_v31 }
 0x3b7   : > { %4770 = vst [vmem:[%s7656_s10 + $0xf0] sm:$0xff] %v4738_v11  ;;  %v4707_v34 = vadd.f32 %v4675_v8, %v4643_v20 }
 0x3b9   : > { %v4739_v39 = vmax.f32 %v4707_v34, 0.0 }
 0x3bb   : > { %4771 = vst [vmem:[%s7656_s10 + $0xf8] sm:$0xff] %v4739_v39 }
 0x3bc   : > { %6185 = shalt.err (!%p6182_p0)
}
 0x3bd   : > { %s6186_s16 = scalar_lea.hbm %s7813_s20, 4096  ;;  %s6190_s10 = scalar_lea.hbm %s7867_s8, 8192 }
 0x3be   : > { %p6187_p2 = scmp.ne.s32.totalorder %s7813_s20, %s6186_s16  ;;  %p6191_p3 = scmp.lt.s32.totalorder %s7813_s20, %s7867_s8 }
 0x3bf   : > { %p6192_p6 = scmp.lt.s32.totalorder %s6190_s10, %s6186_s16 }
 0x3c0   : > { %p6188_p9 = pnand %p6187_p2, %p7921_p13 }
 0x3c1   : > { %p6193_p11 = por %p6192_p6, %p6191_p3 }
 0x3c2   : > { %p6189_p1 = pneg %p6188_p9 }
 0x3c4   : > { %p6194_p12 = pnand %p6193_p11, %p6189_p1 }
 0x3c6   : > { %6197 = shalt.err (!%p6194_p12)
}
 0x3c7   : > { %s6243_s25 = smov 128   ;;  %s6244_s13 = smov 8  }
 0x3c8   : > { %5754 = dma.vmem_to_hbm [thread:$0]  (%p7921_p13), %s7815_s12, 4096, %s7813_s20, %s4773_s23, %s6243_s25, %s6243_s25, %s6244_s13  }
 0x3c9 PF: > { %s4801_s9 = sand.u32 1, %s6224_s27   ;;  %p7922_p4 = scmp.ne.s32.totalorder %s7874_s18, 0 }
 0x3ca   : > { %p7923_p5 = scmp.ge.s32.totalorder %s6236_s30, 2  ;;  %s4802_s22 = scalar_lea.sflag [#allocation5], %s4801_s9 }
 0x3cc   : > { %p5761_p7 = pnand %p7923_p5, %p7922_p4 }
 0x3ce   : > { %p5762_p8 = pneg %p5761_p7 }
 0x3d0   : > { %6219 = dma.done.wait (%p5762_p8), %s4802_s22, 4096  }
 0x3d1   : > { %6221 = vsyncadd (%p5762_p8), %s4802_s22, 4294963200  ;;  %s7924_s26 = sld [smem:[#allocation9_spill]]  ;;  %p21_p10 = scmp.ge.s32.totalorder %s6315_s11, 4  }
 0x3d2   : > { %s7925_s27 = smov %s6228_s28  ;;  %s7926_s28 = smov %s6232_s29 }
 0x3d3   : > { %s7928_s30 = smov %s6315_s11  ;;  %23 = sbr.rel (!%p21_p10) target bundleno = 5 (0x5), region = 102 }
 0x3d7   : > { %s7927_s29 = smov %s7924_s26 }
 0x3d8   :  { %4807 = vsyncpa [#allocation4], 1 }
 0x3d9   :  { %4809 = vsyncpa [#allocation4 + $0x1], 1 }
 0x3da   :  { %4810 = vsyncpa [#allocation5], 1 }
 0x3db   :  { %4812 = vsyncpa [#allocation5 + $0x1], 1 }

</bundles_post_ra>
